<compile_context>
chip_gen: v5e
topology: v5e:2x2
jax: 0.10.0
libtpu: 0.0.40
codegen_flags: <defaults>
</compile_context>

<pallas_src>
import functools

import jax
import jax.numpy as jnp
from jax.experimental import pallas as pl
from jax.experimental.pallas import tpu as pltpu

EPS = 1e-8       # _norm_no_nan clamp
LN_EPS = 1e-5    # nn.LayerNorm default eps
VMEM_LIMIT = 32 * 1024 * 1024


def _round_up(x, m):
    return (x + m - 1) // m * m


# ---------------------------------------------------------------------------
# Kernel 1: 3-layer GVP message function, per (edge, conformer) row tile.
#   s_ref : [TILE, s_in]        bf16
#   v_ref : [3, TILE, v_in]     bf16   (x / y / z planes)
#   21 weight refs (7 per GVP layer: whT, ws_sT, ws_vT, bs, wvT, wsvT, bsv)
#   out   : [TILE, d_s + 3*d_v] f32    ([s | vx | vy | vz] lane-packed)
# ---------------------------------------------------------------------------
def gvp_messages_kernel(s_ref, v_ref, *refs, tile_rows):
    T = tile_rows
    w_refs, out_ref = refs[:-1], refs[-1]
    s = s_ref[...]
    v3 = v_ref[...]
    # stack x/y/z along sublanes -> one MXU pass per vector matmul
    vrows = jnp.concatenate([v3[0], v3[1], v3[2]], axis=0)          # [3T, vi]
    for layer in range(3):
        whT, ws_sT, ws_vT, bs, wvT, wsvT, bsv = (
            r[...] for r in w_refs[7 * layer:7 * layer + 7])
        vh = jnp.dot(vrows.astype(jnp.bfloat16), whT,
                     preferred_element_type=jnp.float32)            # [3T, h]
        hx, hy, hz = vh[:T], vh[T:2 * T], vh[2 * T:]
        vn = jnp.sqrt(jnp.maximum(hx * hx + hy * hy + hz * hz, EPS))  # [T, h]
        # ws(cat([s, vn])) without the lane concat: row-split weight
        s_out = (jnp.dot(s.astype(jnp.bfloat16), ws_sT,
                         preferred_element_type=jnp.float32)
                 + jnp.dot(vn.astype(jnp.bfloat16), ws_vT,
                           preferred_element_type=jnp.float32) + bs)  # [T, so]
        vo = jnp.dot(vh.astype(jnp.bfloat16), wvT,
                     preferred_element_type=jnp.float32)            # [3T, vo]
        # vector gate (vector_act=None -> gate = sigmoid(wsv(s)))
        gate = jax.nn.sigmoid(
            jnp.dot(s_out.astype(jnp.bfloat16), wsvT,
                    preferred_element_type=jnp.float32) + bsv)      # [T, vo]
        vo = vo * jnp.concatenate([gate, gate, gate], axis=0)
        if layer < 2:                       # scalar_act = SiLU (None on last)
            s_out = s_out * jax.nn.sigmoid(s_out)
        s, vrows = s_out, vo
    out_ref[...] = jnp.concatenate(
        [s, vrows[:T], vrows[T:2 * T], vrows[2 * T:]], axis=-1)


# ---------------------------------------------------------------------------
# Kernel 2 (fused): per-conformer graph attention (concat=False)
#                   + 0.5*conv + 0.5*attn + residual + tuple LayerNorm.
# Grid over conformers ("parallel"); conformer-major layout [C, n, d].
# ---------------------------------------------------------------------------
def attn_combine_norm_kernel(s_ref, v_ref, conv_ref,
                             wq_s_ref, wq_v_ref, bq_ref,
                             wk_s_ref, wk_v_ref, bk_ref,
                             wv_ref, bv_ref, wo_ref, bo_ref,
                             gamma_ref, beta_ref,
                             out_s_ref, out_v_ref,
                             *, n_heads, d_s, d_v):
    head_dim = d_s + d_v
    s = s_ref[0]                                       # [n, d_s]
    vpk = v_ref[0]                                     # [n, 3*d_v]  (x|y|z)
    vx, vy, vz = vpk[:, :d_v], vpk[:, d_v:2 * d_v], vpk[:, 2 * d_v:]

    # --- GraphAttentionLayer -------------------------------------------------
    vn = jnp.sqrt(vx * vx + vy * vy + vz * vz)         # torch.norm(v, dim=2)
    s16, vn16 = s.astype(jnp.bfloat16), vn.astype(jnp.bfloat16)
    q = (jnp.dot(s16, wq_s_ref[...], preferred_element_type=jnp.float32)
         + jnp.dot(vn16, wq_v_ref[...], preferred_element_type=jnp.float32)
         + bq_ref[...])
    k = (jnp.dot(s16, wk_s_ref[...], preferred_element_type=jnp.float32)
         + jnp.dot(vn16, wk_v_ref[...], preferred_element_type=jnp.float32)
         + bk_ref[...])
    vv = jnp.dot(s16, wv_ref[...], preferred_element_type=jnp.float32) + bv_ref[...]
    scale = head_dim ** -0.5
    acc = jnp.zeros((s.shape[0], d_s), jnp.float32)
    for h in range(n_heads):                           # static unroll over heads
        qh = q[:, h * head_dim:(h + 1) * head_dim].astype(jnp.bfloat16)
        kh = k[:, h * head_dim:(h + 1) * head_dim].astype(jnp.bfloat16)
        vh = vv[:, h * d_s:(h + 1) * d_s].astype(jnp.bfloat16)
        scores = jax.lax.dot_general(qh, kh, (((1,), (1,)), ((), ())),
                                     preferred_element_type=jnp.float32) * scale
        p = jax.nn.softmax(scores, axis=-1)
        acc = acc + jnp.dot(p.astype(jnp.bfloat16), vh,
                            preferred_element_type=jnp.float32)
    h_mean = acc * (1.0 / n_heads)                     # mean over heads
    attn_s = (jnp.dot(h_mean.astype(jnp.bfloat16), wo_ref[...],
                      preferred_element_type=jnp.float32) + bo_ref[...])

    # --- combine + residual + tuple LayerNorm --------------------------------
    conv = conv_ref[0]                                 # [n, d_s + 3*d_v]
    conv_s, conv_v = conv[:, :d_s], conv[:, d_s:]
    res_s = s + 0.5 * conv_s + 0.5 * attn_s
    mu = jnp.mean(res_s, axis=-1, keepdims=True)
    xc = res_s - mu
    var = jnp.mean(xc * xc, axis=-1, keepdims=True)
    out_s_ref[0] = (xc * jax.lax.rsqrt(var + LN_EPS) * gamma_ref[...]
                    + beta_ref[...])

    res_v = vpk + conv_v                               # [n, 3*d_v]
    rvx, rvy, rvz = res_v[:, :d_v], res_v[:, d_v:2 * d_v], res_v[:, 2 * d_v:]
    sq = jnp.maximum(rvx * rvx + rvy * rvy + rvz * rvz, EPS)   # [n, d_v]
    inv = jax.lax.rsqrt(jnp.mean(sq, axis=-1, keepdims=True))  # [n, 1]
    out_v_ref[0] = res_v * inv


# ---------------------------------------------------------------------------
# Parameters (nn.Linear-style Kaiming-uniform, pre-transposed to x @ W^T form).
# ---------------------------------------------------------------------------
def init_params(key, d_s, d_v, d_se, d_ve, n_heads):
    keys = iter(jax.random.split(key, 40))

    def lin(out_d, in_d, bias=True):
        k1, k2 = next(keys), next(keys)
        bound = 1.0 / (in_d ** 0.5)
        w = jax.random.uniform(k1, (out_d, in_d), jnp.float32, -bound, bound)
        b = (jax.random.uniform(k2, (out_d,), jnp.float32, -bound, bound)
             if bias else None)
        return w, b

    gvp_layers = []
    dims = [((2 * d_s + d_se, 2 * d_v + d_ve), (d_s, d_v)),
            ((d_s, d_v), (d_s, d_v)),
            ((d_s, d_v), (d_s, d_v))]
    for (si, vi), (so, vo) in dims:
        h = max(vi, vo)
        wh, _ = lin(h, vi, bias=False)
        ws, bs = lin(so, h + si)
        wv, _ = lin(vo, h, bias=False)
        wsv, bsv = lin(vo, so)
        gvp_layers.append((wh.T, ws.T, bs.reshape(1, -1),
                           wv.T, wsv.T, bsv.reshape(1, -1)))

    comb = d_s + d_v
    wq, bq = lin(n_heads * comb, comb)
    wk, bk = lin(n_heads * comb, comb)
    wv_, bv = lin(n_heads * d_s, d_s)
    wo, bo = lin(d_s, d_s)
    attn = (wq.T, bq.reshape(1, -1), wk.T, bk.reshape(1, -1),
            wv_.T, bv.reshape(1, -1), wo.T, bo.reshape(1, -1))
    ln = (jnp.ones((1, d_s), jnp.float32), jnp.zeros((1, d_s), jnp.float32))
    return {"gvp": gvp_layers, "attn": attn, "ln": ln}


# ---------------------------------------------------------------------------
# Forward pass.
# ---------------------------------------------------------------------------
@functools.partial(jax.jit, static_argnames=("n_heads", "tile_rows"))
def multi_attentive_gvp_forward(params, s, v, edge_index, edge_s, edge_v,
                                n_heads, tile_rows=1024):
    n_nodes, n_conf, d_s = s.shape
    d_v = v.shape[2]
    n_edges = edge_index.shape[1]
    src, dst = edge_index[0], edge_index[1]

    # ---- glue: gather endpoints, build per-edge message features (bf16) ----
    msg_s = jnp.concatenate([s[src], edge_s, s[dst]], axis=-1)        # [E,C,si]
    s_in = msg_s.shape[-1]
    v_xyz = jnp.moveaxis(v, -1, 0)                                    # [3,n,C,dv]
    ev_xyz = jnp.moveaxis(edge_v, -1, 0)                              # [3,E,C,dve]
    msg_v = jnp.concatenate([v_xyz[:, src], ev_xyz, v_xyz[:, dst]], axis=-1)
    v_in = msg_v.shape[-1]

    N = n_edges * n_conf
    tile = min(tile_rows, _round_up(N, 16))
    n_pad = _round_up(N, tile)
    msg_s_flat = msg_s.reshape(N, s_in).astype(jnp.bfloat16)
    msg_v_flat = msg_v.reshape(3, N, v_in).astype(jnp.bfloat16)
    if n_pad != N:
        msg_s_flat = jnp.pad(msg_s_flat, ((0, n_pad - N), (0, 0)))
        msg_v_flat = jnp.pad(msg_v_flat, ((0, 0), (0, n_pad - N), (0, 0)))

    # per-layer (whT, ws_sT, ws_vT, bs, wvT, wsvT, bsv); weights bf16, biases f32
    gvp_w = []
    for (whT, wsT, bs, wvT, wsvT, bsv) in params["gvp"]:
        si = wsT.shape[0] - whT.shape[1]
        gvp_w += [whT.astype(jnp.bfloat16),
                  wsT[:si].astype(jnp.bfloat16), wsT[si:].astype(jnp.bfloat16),
                  bs,
                  wvT.astype(jnp.bfloat16), wsvT.astype(jnp.bfloat16), bsv]

    d_msg = d_s + 3 * d_v
    act_specs = [pl.BlockSpec((tile, s_in), lambda i: (i, 0)),
                 pl.BlockSpec((3, tile, v_in), lambda i: (0, i, 0))]
    w_specs = [pl.BlockSpec(w.shape, lambda i: (0, 0)) for w in gvp_w]
    msg_out = pl.pallas_call(
        functools.partial(gvp_messages_kernel, tile_rows=tile),
        out_shape=jax.ShapeDtypeStruct((n_pad, d_msg), jnp.float32),
        grid=(n_pad // tile,),
        in_specs=act_specs + w_specs,
        out_specs=pl.BlockSpec((tile, d_msg), lambda i: (i, 0)),
        compiler_params=pltpu.CompilerParams(
            dimension_semantics=("parallel",),
            vmem_limit_bytes=VMEM_LIMIT),
    )(msg_s_flat, msg_v_flat, *gvp_w)

    # ---- mean aggregation at target nodes (XLA segment_sum; no dense A) ----
    msg_edges = msg_out[:N].reshape(n_edges, n_conf * d_msg)
    deg = jnp.maximum(
        jax.ops.segment_sum(jnp.ones((n_edges,), jnp.float32), dst,
                            num_segments=n_nodes), 1.0)
    conv = (jax.ops.segment_sum(msg_edges, dst, num_segments=n_nodes)
            / deg[:, None])
    conv_cf = jnp.transpose(conv.reshape(n_nodes, n_conf, d_msg), (1, 0, 2))

    # ---- fused attention + combine + LayerNorm (grid over conformers) ------
    s_cf = jnp.transpose(s, (1, 0, 2))                                # [C,n,ds]
    v_cf = jnp.transpose(v, (1, 0, 3, 2)).reshape(n_conf, n_nodes, 3 * d_v)

    wqT, bq, wkT, bk, wvT, bv, woT, bo = params["attn"]
    attn_w = [wqT[:d_s].astype(jnp.bfloat16), wqT[d_s:].astype(jnp.bfloat16), bq,
              wkT[:d_s].astype(jnp.bfloat16), wkT[d_s:].astype(jnp.bfloat16), bk,
              wvT.astype(jnp.bfloat16), bv,
              woT.astype(jnp.bfloat16), bo]
    gamma, beta = params["ln"]

    node_specs = [pl.BlockSpec((1, n_nodes, d_s), lambda c: (c, 0, 0)),
                  pl.BlockSpec((1, n_nodes, 3 * d_v), lambda c: (c, 0, 0)),
                  pl.BlockSpec((1, n_nodes, d_msg), lambda c: (c, 0, 0))]
    w_specs2 = [pl.BlockSpec(w.shape, lambda c: (0, 0))
                for w in attn_w + [gamma, beta]]
    out_s_cf, out_v_cf = pl.pallas_call(
        functools.partial(attn_combine_norm_kernel, n_heads=n_heads,
                          d_s=d_s, d_v=d_v),
        out_shape=(jax.ShapeDtypeStruct((n_conf, n_nodes, d_s), jnp.float32),
                   jax.ShapeDtypeStruct((n_conf, n_nodes, 3 * d_v), jnp.float32)),
        grid=(n_conf,),
        in_specs=node_specs + w_specs2,
        out_specs=(pl.BlockSpec((1, n_nodes, d_s), lambda c: (c, 0, 0)),
                   pl.BlockSpec((1, n_nodes, 3 * d_v), lambda c: (c, 0, 0))),
        compiler_params=pltpu.CompilerParams(
            dimension_semantics=("parallel",),
            vmem_limit_bytes=VMEM_LIMIT),
    )(s_cf, v_cf, conv_cf, *attn_w, gamma, beta)

    out_s = jnp.transpose(out_s_cf, (1, 0, 2))
    out_v = jnp.transpose(out_v_cf.reshape(n_conf, n_nodes, 3, d_v), (1, 0, 3, 2))
    return out_s, out_v


# ---------------------------------------------------------------------------
# Pure-JAX f32 reference (mirrors the PyTorch forward) for correctness check.
# ---------------------------------------------------------------------------
def reference_forward(params, s, v, edge_index, edge_s, edge_v, n_heads):
    n_nodes, n_conf, d_s = s.shape
    d_v = v.shape[2]
    n_edges = edge_index.shape[1]
    src, dst = edge_index[0], edge_index[1]

    def gvp(si, vi_, layer, use_silu):
        whT, wsT, bs, wvT, wsvT, bsv = layer
        vt = jnp.swapaxes(vi_, -1, -2)
        vh = vt @ whT
        vn = jnp.sqrt(jnp.maximum(jnp.sum(vh * vh, axis=-2), EPS))
        s_out = jnp.concatenate([si, vn], axis=-1) @ wsT + bs
        vo = jnp.swapaxes(vh @ wvT, -1, -2)
        gate = jax.nn.sigmoid(s_out @ wsvT + bsv)
        vo = vo * gate[..., None]
        if use_silu:
            s_out = jax.nn.silu(s_out)
        return s_out, vo

    ms = jnp.concatenate([s[src], edge_s, s[dst]], axis=-1)
    mv = jnp.concatenate([v[src], edge_v, v[dst]], axis=2)
    for i, layer in enumerate(params["gvp"]):
        ms, mv = gvp(ms, mv, layer, use_silu=(i < 2))
    cnt = jnp.maximum(jax.ops.segment_sum(jnp.ones((n_edges,)), dst,
                                          num_segments=n_nodes), 1.0)
    conv_s = jax.ops.segment_sum(ms, dst, num_segments=n_nodes) / cnt[:, None, None]
    conv_v = jax.ops.segment_sum(mv, dst, num_segments=n_nodes) / cnt[:, None, None, None]

    wqT, bq, wkT, bk, wvT, bv, woT, bo = params["attn"]
    head_dim = d_s + d_v
    scale = head_dim ** -0.5
    attn_out = []
    for c in range(n_conf):
        sc, vc = s[:, c], v[:, c]
        vn = jnp.sqrt(jnp.sum(vc * vc, axis=-1))
        comb = jnp.concatenate([sc, vn], axis=-1)
        Q = (comb @ wqT + bq).reshape(n_nodes, n_heads, head_dim).transpose(1, 0, 2)
        K = (comb @ wkT + bk).reshape(n_nodes, n_heads, head_dim).transpose(1, 0, 2)
        V = (sc @ wvT + bv).reshape(n_nodes, n_heads, d_s).transpose(1, 0, 2)
        scores = jnp.einsum("hnd,hmd->hnm", Q, K) * scale
        aw = jax.nn.softmax(scores, axis=-1)
        hp = jnp.einsum("hnm,hmd->hnd", aw, V).transpose(1, 0, 2).mean(axis=1)
        attn_out.append(hp @ woT + bo)
    attn_s = jnp.stack(attn_out, axis=1)

    res_s = s + 0.5 * conv_s + 0.5 * attn_s
    res_v = v + conv_v
    mu = jnp.mean(res_s, axis=-1, keepdims=True)
    var = jnp.mean((res_s - mu) ** 2, axis=-1, keepdims=True)
    gamma, beta = params["ln"]
    out_s = (res_s - mu) / jnp.sqrt(var + LN_EPS) * gamma + beta
    vn2 = jnp.maximum(jnp.sum(res_v * res_v, axis=-1, keepdims=True), EPS)
    vnorm = jnp.sqrt(jnp.mean(vn2, axis=-2, keepdims=True))
    out_v = res_v / vnorm
    return out_s, out_v


if __name__ == "__main__":
    n_nodes, n_conf = 8, 3
    d_s, d_v = 16, 4
    d_se, d_ve = 8, 2
    n_edges = 16
    n_heads = 4

    key = jax.random.PRNGKey(0)
    k_par, k_s, k_v, k_es, k_ev = jax.random.split(key, 5)
    params = init_params(k_par, d_s, d_v, d_se, d_ve, n_heads)

    s = jax.random.normal(k_s, (n_nodes, n_conf, d_s), jnp.float32)
    v = jax.random.normal(k_v, (n_nodes, n_conf, d_v, 3), jnp.float32)
    edge_s = jax.random.normal(k_es, (n_edges, n_conf, d_se), jnp.float32)
    edge_v = jax.random.normal(k_ev, (n_edges, n_conf, d_ve, 3), jnp.float32)
    e = jnp.arange(n_edges, dtype=jnp.int32)
    edge_index = jnp.stack([e % n_nodes, (3 * e + 1) % n_nodes], axis=0)  # [2, E]

    out_s, out_v = multi_attentive_gvp_forward(params, s, v, edge_index,
                                               edge_s, edge_v, n_heads)
    jax.block_until_ready((out_s, out_v))

    ref_s, ref_v = reference_forward(params, s, v, edge_index, edge_s, edge_v,
                                     n_heads)
    assert out_s.shape == (n_nodes, n_conf, d_s)
    assert out_v.shape == (n_nodes, n_conf, d_v, 3)
    # bf16 MXU operands (f32 accumulation) vs f32 reference -> looser tolerance
    assert jnp.allclose(out_s, ref_s, atol=3e-2, rtol=3e-2), \
        float(jnp.max(jnp.abs(out_s - ref_s)))
    assert jnp.allclose(out_v, ref_v, atol=3e-2, rtol=3e-2), \
        float(jnp.max(jnp.abs(out_v - ref_v)))
    print("KERNEL_OK")
</pallas_src>

<mosaic_0001>
module attributes {stable_mosaic.version = 11 : i64} {
  func.func @gvp_messages_kernel(%arg0: i32, %arg1: memref<48x40xbf16, #tpu.memory_space<vmem>>, %arg2: memref<3x48x10xbf16, #tpu.memory_space<vmem>>, %arg3: memref<10x10xbf16, #tpu.memory_space<vmem>>, %arg4: memref<40x16xbf16, #tpu.memory_space<vmem>>, %arg5: memref<10x16xbf16, #tpu.memory_space<vmem>>, %arg6: memref<1x16xf32, #tpu.memory_space<vmem>>, %arg7: memref<10x4xbf16, #tpu.memory_space<vmem>>, %arg8: memref<16x4xbf16, #tpu.memory_space<vmem>>, %arg9: memref<1x4xf32, #tpu.memory_space<vmem>>, %arg10: memref<4x4xbf16, #tpu.memory_space<vmem>>, %arg11: memref<16x16xbf16, #tpu.memory_space<vmem>>, %arg12: memref<4x16xbf16, #tpu.memory_space<vmem>>, %arg13: memref<1x16xf32, #tpu.memory_space<vmem>>, %arg14: memref<4x4xbf16, #tpu.memory_space<vmem>>, %arg15: memref<16x4xbf16, #tpu.memory_space<vmem>>, %arg16: memref<1x4xf32, #tpu.memory_space<vmem>>, %arg17: memref<4x4xbf16, #tpu.memory_space<vmem>>, %arg18: memref<16x16xbf16, #tpu.memory_space<vmem>>, %arg19: memref<4x16xbf16, #tpu.memory_space<vmem>>, %arg20: memref<1x16xf32, #tpu.memory_space<vmem>>, %arg21: memref<4x4xbf16, #tpu.memory_space<vmem>>, %arg22: memref<16x4xbf16, #tpu.memory_space<vmem>>, %arg23: memref<1x4xf32, #tpu.memory_space<vmem>>, %arg24: memref<48x28xf32, #tpu.memory_space<vmem>>) attributes {dimension_semantics = [#tpu.dimension_semantics<parallel>], iteration_bounds = array<i64: 1>, scalar_prefetch = 0 : i64, scratch_operands = 0 : i64, tpu.core_type = #tpu.core_type<tc>, window_params = [{transform_indices = @transform_0, window_bounds = array<i64: 48, 40>}, {transform_indices = @transform_1, window_bounds = array<i64: 3, 48, 10>}, {pipeline_mode = #tpu.pipeline_mode<synchronous>, transform_indices = @transform_2, window_bounds = array<i64: 10, 10>}, {pipeline_mode = #tpu.pipeline_mode<synchronous>, transform_indices = @transform_3, window_bounds = array<i64: 40, 16>}, {pipeline_mode = #tpu.pipeline_mode<synchronous>, transform_indices = @transform_4, window_bounds = array<i64: 10, 16>}, {pipeline_mode = #tpu.pipeline_mode<synchronous>, transform_indices = @transform_5, window_bounds = array<i64: 1, 16>}, {pipeline_mode = #tpu.pipeline_mode<synchronous>, transform_indices = @transform_6, window_bounds = array<i64: 10, 4>}, {pipeline_mode = #tpu.pipeline_mode<synchronous>, transform_indices = @transform_7, window_bounds = array<i64: 16, 4>}, {pipeline_mode = #tpu.pipeline_mode<synchronous>, transform_indices = @transform_8, window_bounds = array<i64: 1, 4>}, {pipeline_mode = #tpu.pipeline_mode<synchronous>, transform_indices = @transform_9, window_bounds = array<i64: 4, 4>}, {pipeline_mode = #tpu.pipeline_mode<synchronous>, transform_indices = @transform_10, window_bounds = array<i64: 16, 16>}, {pipeline_mode = #tpu.pipeline_mode<synchronous>, transform_indices = @transform_11, window_bounds = array<i64: 4, 16>}, {pipeline_mode = #tpu.pipeline_mode<synchronous>, transform_indices = @transform_12, window_bounds = array<i64: 1, 16>}, {pipeline_mode = #tpu.pipeline_mode<synchronous>, transform_indices = @transform_13, window_bounds = array<i64: 4, 4>}, {pipeline_mode = #tpu.pipeline_mode<synchronous>, transform_indices = @transform_14, window_bounds = array<i64: 16, 4>}, {pipeline_mode = #tpu.pipeline_mode<synchronous>, transform_indices = @transform_15, window_bounds = array<i64: 1, 4>}, {pipeline_mode = #tpu.pipeline_mode<synchronous>, transform_indices = @transform_16, window_bounds = array<i64: 4, 4>}, {pipeline_mode = #tpu.pipeline_mode<synchronous>, transform_indices = @transform_17, window_bounds = array<i64: 16, 16>}, {pipeline_mode = #tpu.pipeline_mode<synchronous>, transform_indices = @transform_18, window_bounds = array<i64: 4, 16>}, {pipeline_mode = #tpu.pipeline_mode<synchronous>, transform_indices = @transform_19, window_bounds = array<i64: 1, 16>}, {pipeline_mode = #tpu.pipeline_mode<synchronous>, transform_indices = @transform_20, window_bounds = array<i64: 4, 4>}, {pipeline_mode = #tpu.pipeline_mode<synchronous>, transform_indices = @transform_21, window_bounds = array<i64: 16, 4>}, {pipeline_mode = #tpu.pipeline_mode<synchronous>, transform_indices = @transform_22, window_bounds = array<i64: 1, 4>}, {transform_indices = @transform_23, window_bounds = array<i64: 48, 28>}]} {
    %c0 = arith.constant 0 : index
    %c0_0 = arith.constant 0 : index
    %0 = vector.load %arg1[%c0, %c0_0] : memref<48x40xbf16, #tpu.memory_space<vmem>>, vector<48x40xbf16>
    %c0_1 = arith.constant 0 : index
    %c0_2 = arith.constant 0 : index
    %c0_3 = arith.constant 0 : index
    %1 = vector.load %arg2[%c0_1, %c0_2, %c0_3] : memref<3x48x10xbf16, #tpu.memory_space<vmem>>, vector<3x48x10xbf16>
    %2 = vector.extract_strided_slice %1 {offsets = [0, 0, 0], sizes = [1, 48, 10], strides = [1, 1, 1]} : vector<3x48x10xbf16> to vector<1x48x10xbf16>
    %3 = vector.shape_cast %2 : vector<1x48x10xbf16> to vector<48x10xbf16>
    %4 = vector.extract_strided_slice %1 {offsets = [1, 0, 0], sizes = [1, 48, 10], strides = [1, 1, 1]} : vector<3x48x10xbf16> to vector<1x48x10xbf16>
    %5 = vector.shape_cast %4 : vector<1x48x10xbf16> to vector<48x10xbf16>
    %6 = vector.extract_strided_slice %1 {offsets = [2, 0, 0], sizes = [1, 48, 10], strides = [1, 1, 1]} : vector<3x48x10xbf16> to vector<1x48x10xbf16>
    %7 = vector.shape_cast %6 : vector<1x48x10xbf16> to vector<48x10xbf16>
    %8 = tpu.concatenate %3, %5, %7 in 0 : vector<48x10xbf16>, vector<48x10xbf16>, vector<48x10xbf16> -> vector<144x10xbf16>
    %c0_4 = arith.constant 0 : index
    %c0_5 = arith.constant 0 : index
    %9 = vector.load %arg3[%c0_4, %c0_5] : memref<10x10xbf16, #tpu.memory_space<vmem>>, vector<10x10xbf16>
    %c0_6 = arith.constant 0 : index
    %c0_7 = arith.constant 0 : index
    %10 = vector.load %arg4[%c0_6, %c0_7] : memref<40x16xbf16, #tpu.memory_space<vmem>>, vector<40x16xbf16>
    %c0_8 = arith.constant 0 : index
    %c0_9 = arith.constant 0 : index
    %11 = vector.load %arg5[%c0_8, %c0_9] : memref<10x16xbf16, #tpu.memory_space<vmem>>, vector<10x16xbf16>
    %c0_10 = arith.constant 0 : index
    %c0_11 = arith.constant 0 : index
    %12 = vector.load %arg6[%c0_10, %c0_11] : memref<1x16xf32, #tpu.memory_space<vmem>>, vector<1x16xf32>
    %c0_12 = arith.constant 0 : index
    %c0_13 = arith.constant 0 : index
    %13 = vector.load %arg7[%c0_12, %c0_13] : memref<10x4xbf16, #tpu.memory_space<vmem>>, vector<10x4xbf16>
    %c0_14 = arith.constant 0 : index
    %c0_15 = arith.constant 0 : index
    %14 = vector.load %arg8[%c0_14, %c0_15] : memref<16x4xbf16, #tpu.memory_space<vmem>>, vector<16x4xbf16>
    %c0_16 = arith.constant 0 : index
    %c0_17 = arith.constant 0 : index
    %15 = vector.load %arg9[%c0_16, %c0_17] : memref<1x4xf32, #tpu.memory_space<vmem>>, vector<1x4xf32>
    %cst = arith.constant dense<0.000000e+00> : vector<144x10xf32>
    %16 = tpu.matmul %8, %9, %cst {dimension_numbers = #tpu.dot_dimension_numbers<[1], [0], [0], [1], [0, 0, 1, 1], [], []>} : vector<144x10xbf16>, vector<10x10xbf16>, vector<144x10xf32> -> vector<144x10xf32>
    %17 = vector.extract_strided_slice %16 {offsets = [0, 0], sizes = [48, 10], strides = [1, 1]} : vector<144x10xf32> to vector<48x10xf32>
    %18 = vector.extract_strided_slice %16 {offsets = [48, 0], sizes = [48, 10], strides = [1, 1]} : vector<144x10xf32> to vector<48x10xf32>
    %19 = vector.extract_strided_slice %16 {offsets = [96, 0], sizes = [48, 10], strides = [1, 1]} : vector<144x10xf32> to vector<48x10xf32>
    %20 = arith.mulf %17, %17 : vector<48x10xf32>
    %21 = arith.mulf %18, %18 : vector<48x10xf32>
    %22 = arith.addf %20, %21 : vector<48x10xf32>
    %23 = arith.mulf %19, %19 : vector<48x10xf32>
    %24 = arith.addf %22, %23 : vector<48x10xf32>
    %cst_18 = arith.constant 9.99999993E-9 : f32
    %25 = vector.broadcast %cst_18 : f32 to vector<48x10xf32>
    %26 = arith.maximumf %24, %25 : vector<48x10xf32>
    %27 = math.sqrt %26 : vector<48x10xf32>
    %cst_19 = arith.constant dense<0.000000e+00> : vector<48x16xf32>
    %28 = tpu.matmul %0, %10, %cst_19 {dimension_numbers = #tpu.dot_dimension_numbers<[1], [0], [0], [1], [0, 0, 1, 1], [], []>} : vector<48x40xbf16>, vector<40x16xbf16>, vector<48x16xf32> -> vector<48x16xf32>
    %29 = arith.truncf %27 : vector<48x10xf32> to vector<48x10xbf16>
    %cst_20 = arith.constant dense<0.000000e+00> : vector<48x16xf32>
    %30 = tpu.matmul %29, %11, %cst_20 {dimension_numbers = #tpu.dot_dimension_numbers<[1], [0], [0], [1], [0, 0, 1, 1], [], []>} : vector<48x10xbf16>, vector<10x16xbf16>, vector<48x16xf32> -> vector<48x16xf32>
    %31 = arith.addf %28, %30 : vector<48x16xf32>
    %32 = vector.broadcast %12 : vector<1x16xf32> to vector<48x16xf32>
    %33 = arith.addf %31, %32 : vector<48x16xf32>
    %34 = arith.truncf %16 : vector<144x10xf32> to vector<144x10xbf16>
    %cst_21 = arith.constant dense<0.000000e+00> : vector<144x4xf32>
    %35 = tpu.matmul %34, %13, %cst_21 {dimension_numbers = #tpu.dot_dimension_numbers<[1], [0], [0], [1], [0, 0, 1, 1], [], []>} : vector<144x10xbf16>, vector<10x4xbf16>, vector<144x4xf32> -> vector<144x4xf32>
    %36 = arith.truncf %33 : vector<48x16xf32> to vector<48x16xbf16>
    %cst_22 = arith.constant dense<0.000000e+00> : vector<48x4xf32>
    %37 = tpu.matmul %36, %14, %cst_22 {dimension_numbers = #tpu.dot_dimension_numbers<[1], [0], [0], [1], [0, 0, 1, 1], [], []>} : vector<48x16xbf16>, vector<16x4xbf16>, vector<48x4xf32> -> vector<48x4xf32>
    %38 = vector.broadcast %15 : vector<1x4xf32> to vector<48x4xf32>
    %39 = arith.addf %37, %38 : vector<48x4xf32>
    %40 = arith.negf %39 : vector<48x4xf32>
    %41 = math.exp %40 : vector<48x4xf32>
    %cst_23 = arith.constant 1.000000e+00 : f32
    %42 = vector.broadcast %cst_23 : f32 to vector<48x4xf32>
    %43 = arith.addf %42, %41 : vector<48x4xf32>
    %44 = arith.divf %42, %43 : vector<48x4xf32>
    %45 = tpu.concatenate %44, %44, %44 in 0 : vector<48x4xf32>, vector<48x4xf32>, vector<48x4xf32> -> vector<144x4xf32>
    %46 = arith.mulf %35, %45 : vector<144x4xf32>
    %47 = arith.negf %33 : vector<48x16xf32>
    %48 = math.exp %47 : vector<48x16xf32>
    %cst_24 = arith.constant 1.000000e+00 : f32
    %49 = vector.broadcast %cst_24 : f32 to vector<48x16xf32>
    %50 = arith.addf %49, %48 : vector<48x16xf32>
    %51 = arith.divf %49, %50 : vector<48x16xf32>
    %52 = arith.mulf %33, %51 : vector<48x16xf32>
    %c0_25 = arith.constant 0 : index
    %c0_26 = arith.constant 0 : index
    %53 = vector.load %arg10[%c0_25, %c0_26] : memref<4x4xbf16, #tpu.memory_space<vmem>>, vector<4x4xbf16>
    %c0_27 = arith.constant 0 : index
    %c0_28 = arith.constant 0 : index
    %54 = vector.load %arg11[%c0_27, %c0_28] : memref<16x16xbf16, #tpu.memory_space<vmem>>, vector<16x16xbf16>
    %c0_29 = arith.constant 0 : index
    %c0_30 = arith.constant 0 : index
    %55 = vector.load %arg12[%c0_29, %c0_30] : memref<4x16xbf16, #tpu.memory_space<vmem>>, vector<4x16xbf16>
    %c0_31 = arith.constant 0 : index
    %c0_32 = arith.constant 0 : index
    %56 = vector.load %arg13[%c0_31, %c0_32] : memref<1x16xf32, #tpu.memory_space<vmem>>, vector<1x16xf32>
    %c0_33 = arith.constant 0 : index
    %c0_34 = arith.constant 0 : index
    %57 = vector.load %arg14[%c0_33, %c0_34] : memref<4x4xbf16, #tpu.memory_space<vmem>>, vector<4x4xbf16>
    %c0_35 = arith.constant 0 : index
    %c0_36 = arith.constant 0 : index
    %58 = vector.load %arg15[%c0_35, %c0_36] : memref<16x4xbf16, #tpu.memory_space<vmem>>, vector<16x4xbf16>
    %c0_37 = arith.constant 0 : index
    %c0_38 = arith.constant 0 : index
    %59 = vector.load %arg16[%c0_37, %c0_38] : memref<1x4xf32, #tpu.memory_space<vmem>>, vector<1x4xf32>
    %60 = arith.truncf %46 : vector<144x4xf32> to vector<144x4xbf16>
    %cst_39 = arith.constant dense<0.000000e+00> : vector<144x4xf32>
    %61 = tpu.matmul %60, %53, %cst_39 {dimension_numbers = #tpu.dot_dimension_numbers<[1], [0], [0], [1], [0, 0, 1, 1], [], []>} : vector<144x4xbf16>, vector<4x4xbf16>, vector<144x4xf32> -> vector<144x4xf32>
    %62 = vector.extract_strided_slice %61 {offsets = [0, 0], sizes = [48, 4], strides = [1, 1]} : vector<144x4xf32> to vector<48x4xf32>
    %63 = vector.extract_strided_slice %61 {offsets = [48, 0], sizes = [48, 4], strides = [1, 1]} : vector<144x4xf32> to vector<48x4xf32>
    %64 = vector.extract_strided_slice %61 {offsets = [96, 0], sizes = [48, 4], strides = [1, 1]} : vector<144x4xf32> to vector<48x4xf32>
    %65 = arith.mulf %62, %62 : vector<48x4xf32>
    %66 = arith.mulf %63, %63 : vector<48x4xf32>
    %67 = arith.addf %65, %66 : vector<48x4xf32>
    %68 = arith.mulf %64, %64 : vector<48x4xf32>
    %69 = arith.addf %67, %68 : vector<48x4xf32>
    %cst_40 = arith.constant 9.99999993E-9 : f32
    %70 = vector.broadcast %cst_40 : f32 to vector<48x4xf32>
    %71 = arith.maximumf %69, %70 : vector<48x4xf32>
    %72 = math.sqrt %71 : vector<48x4xf32>
    %73 = arith.truncf %52 : vector<48x16xf32> to vector<48x16xbf16>
    %cst_41 = arith.constant dense<0.000000e+00> : vector<48x16xf32>
    %74 = tpu.matmul %73, %54, %cst_41 {dimension_numbers = #tpu.dot_dimension_numbers<[1], [0], [0], [1], [0, 0, 1, 1], [], []>} : vector<48x16xbf16>, vector<16x16xbf16>, vector<48x16xf32> -> vector<48x16xf32>
    %75 = arith.truncf %72 : vector<48x4xf32> to vector<48x4xbf16>
    %cst_42 = arith.constant dense<0.000000e+00> : vector<48x16xf32>
    %76 = tpu.matmul %75, %55, %cst_42 {dimension_numbers = #tpu.dot_dimension_numbers<[1], [0], [0], [1], [0, 0, 1, 1], [], []>} : vector<48x4xbf16>, vector<4x16xbf16>, vector<48x16xf32> -> vector<48x16xf32>
    %77 = arith.addf %74, %76 : vector<48x16xf32>
    %78 = vector.broadcast %56 : vector<1x16xf32> to vector<48x16xf32>
    %79 = arith.addf %77, %78 : vector<48x16xf32>
    %80 = arith.truncf %61 : vector<144x4xf32> to vector<144x4xbf16>
    %cst_43 = arith.constant dense<0.000000e+00> : vector<144x4xf32>
    %81 = tpu.matmul %80, %57, %cst_43 {dimension_numbers = #tpu.dot_dimension_numbers<[1], [0], [0], [1], [0, 0, 1, 1], [], []>} : vector<144x4xbf16>, vector<4x4xbf16>, vector<144x4xf32> -> vector<144x4xf32>
    %82 = arith.truncf %79 : vector<48x16xf32> to vector<48x16xbf16>
    %cst_44 = arith.constant dense<0.000000e+00> : vector<48x4xf32>
    %83 = tpu.matmul %82, %58, %cst_44 {dimension_numbers = #tpu.dot_dimension_numbers<[1], [0], [0], [1], [0, 0, 1, 1], [], []>} : vector<48x16xbf16>, vector<16x4xbf16>, vector<48x4xf32> -> vector<48x4xf32>
    %84 = vector.broadcast %59 : vector<1x4xf32> to vector<48x4xf32>
    %85 = arith.addf %83, %84 : vector<48x4xf32>
    %86 = arith.negf %85 : vector<48x4xf32>
    %87 = math.exp %86 : vector<48x4xf32>
    %cst_45 = arith.constant 1.000000e+00 : f32
    %88 = vector.broadcast %cst_45 : f32 to vector<48x4xf32>
    %89 = arith.addf %88, %87 : vector<48x4xf32>
    %90 = arith.divf %88, %89 : vector<48x4xf32>
    %91 = tpu.concatenate %90, %90, %90 in 0 : vector<48x4xf32>, vector<48x4xf32>, vector<48x4xf32> -> vector<144x4xf32>
    %92 = arith.mulf %81, %91 : vector<144x4xf32>
    %93 = arith.negf %79 : vector<48x16xf32>
    %94 = math.exp %93 : vector<48x16xf32>
    %cst_46 = arith.constant 1.000000e+00 : f32
    %95 = vector.broadcast %cst_46 : f32 to vector<48x16xf32>
    %96 = arith.addf %95, %94 : vector<48x16xf32>
    %97 = arith.divf %95, %96 : vector<48x16xf32>
    %98 = arith.mulf %79, %97 : vector<48x16xf32>
    %c0_47 = arith.constant 0 : index
    %c0_48 = arith.constant 0 : index
    %99 = vector.load %arg17[%c0_47, %c0_48] : memref<4x4xbf16, #tpu.memory_space<vmem>>, vector<4x4xbf16>
    %c0_49 = arith.constant 0 : index
    %c0_50 = arith.constant 0 : index
    %100 = vector.load %arg18[%c0_49, %c0_50] : memref<16x16xbf16, #tpu.memory_space<vmem>>, vector<16x16xbf16>
    %c0_51 = arith.constant 0 : index
    %c0_52 = arith.constant 0 : index
    %101 = vector.load %arg19[%c0_51, %c0_52] : memref<4x16xbf16, #tpu.memory_space<vmem>>, vector<4x16xbf16>
    %c0_53 = arith.constant 0 : index
    %c0_54 = arith.constant 0 : index
    %102 = vector.load %arg20[%c0_53, %c0_54] : memref<1x16xf32, #tpu.memory_space<vmem>>, vector<1x16xf32>
    %c0_55 = arith.constant 0 : index
    %c0_56 = arith.constant 0 : index
    %103 = vector.load %arg21[%c0_55, %c0_56] : memref<4x4xbf16, #tpu.memory_space<vmem>>, vector<4x4xbf16>
    %c0_57 = arith.constant 0 : index
    %c0_58 = arith.constant 0 : index
    %104 = vector.load %arg22[%c0_57, %c0_58] : memref<16x4xbf16, #tpu.memory_space<vmem>>, vector<16x4xbf16>
    %c0_59 = arith.constant 0 : index
    %c0_60 = arith.constant 0 : index
    %105 = vector.load %arg23[%c0_59, %c0_60] : memref<1x4xf32, #tpu.memory_space<vmem>>, vector<1x4xf32>
    %106 = arith.truncf %92 : vector<144x4xf32> to vector<144x4xbf16>
    %cst_61 = arith.constant dense<0.000000e+00> : vector<144x4xf32>
    %107 = tpu.matmul %106, %99, %cst_61 {dimension_numbers = #tpu.dot_dimension_numbers<[1], [0], [0], [1], [0, 0, 1, 1], [], []>} : vector<144x4xbf16>, vector<4x4xbf16>, vector<144x4xf32> -> vector<144x4xf32>
    %108 = vector.extract_strided_slice %107 {offsets = [0, 0], sizes = [48, 4], strides = [1, 1]} : vector<144x4xf32> to vector<48x4xf32>
    %109 = vector.extract_strided_slice %107 {offsets = [48, 0], sizes = [48, 4], strides = [1, 1]} : vector<144x4xf32> to vector<48x4xf32>
    %110 = vector.extract_strided_slice %107 {offsets = [96, 0], sizes = [48, 4], strides = [1, 1]} : vector<144x4xf32> to vector<48x4xf32>
    %111 = arith.mulf %108, %108 : vector<48x4xf32>
    %112 = arith.mulf %109, %109 : vector<48x4xf32>
    %113 = arith.addf %111, %112 : vector<48x4xf32>
    %114 = arith.mulf %110, %110 : vector<48x4xf32>
    %115 = arith.addf %113, %114 : vector<48x4xf32>
    %cst_62 = arith.constant 9.99999993E-9 : f32
    %116 = vector.broadcast %cst_62 : f32 to vector<48x4xf32>
    %117 = arith.maximumf %115, %116 : vector<48x4xf32>
    %118 = math.sqrt %117 : vector<48x4xf32>
    %119 = arith.truncf %98 : vector<48x16xf32> to vector<48x16xbf16>
    %cst_63 = arith.constant dense<0.000000e+00> : vector<48x16xf32>
    %120 = tpu.matmul %119, %100, %cst_63 {dimension_numbers = #tpu.dot_dimension_numbers<[1], [0], [0], [1], [0, 0, 1, 1], [], []>} : vector<48x16xbf16>, vector<16x16xbf16>, vector<48x16xf32> -> vector<48x16xf32>
    %121 = arith.truncf %118 : vector<48x4xf32> to vector<48x4xbf16>
    %cst_64 = arith.constant dense<0.000000e+00> : vector<48x16xf32>
    %122 = tpu.matmul %121, %101, %cst_64 {dimension_numbers = #tpu.dot_dimension_numbers<[1], [0], [0], [1], [0, 0, 1, 1], [], []>} : vector<48x4xbf16>, vector<4x16xbf16>, vector<48x16xf32> -> vector<48x16xf32>
    %123 = arith.addf %120, %122 : vector<48x16xf32>
    %124 = vector.broadcast %102 : vector<1x16xf32> to vector<48x16xf32>
    %125 = arith.addf %123, %124 : vector<48x16xf32>
    %126 = arith.truncf %107 : vector<144x4xf32> to vector<144x4xbf16>
    %cst_65 = arith.constant dense<0.000000e+00> : vector<144x4xf32>
    %127 = tpu.matmul %126, %103, %cst_65 {dimension_numbers = #tpu.dot_dimension_numbers<[1], [0], [0], [1], [0, 0, 1, 1], [], []>} : vector<144x4xbf16>, vector<4x4xbf16>, vector<144x4xf32> -> vector<144x4xf32>
    %128 = arith.truncf %125 : vector<48x16xf32> to vector<48x16xbf16>
    %cst_66 = arith.constant dense<0.000000e+00> : vector<48x4xf32>
    %129 = tpu.matmul %128, %104, %cst_66 {dimension_numbers = #tpu.dot_dimension_numbers<[1], [0], [0], [1], [0, 0, 1, 1], [], []>} : vector<48x16xbf16>, vector<16x4xbf16>, vector<48x4xf32> -> vector<48x4xf32>
    %130 = vector.broadcast %105 : vector<1x4xf32> to vector<48x4xf32>
    %131 = arith.addf %129, %130 : vector<48x4xf32>
    %132 = arith.negf %131 : vector<48x4xf32>
    %133 = math.exp %132 : vector<48x4xf32>
    %cst_67 = arith.constant 1.000000e+00 : f32
    %134 = vector.broadcast %cst_67 : f32 to vector<48x4xf32>
    %135 = arith.addf %134, %133 : vector<48x4xf32>
    %136 = arith.divf %134, %135 : vector<48x4xf32>
    %137 = tpu.concatenate %136, %136, %136 in 0 : vector<48x4xf32>, vector<48x4xf32>, vector<48x4xf32> -> vector<144x4xf32>
    %138 = arith.mulf %127, %137 : vector<144x4xf32>
    %139 = vector.extract_strided_slice %138 {offsets = [0, 0], sizes = [48, 4], strides = [1, 1]} : vector<144x4xf32> to vector<48x4xf32>
    %140 = vector.extract_strided_slice %138 {offsets = [48, 0], sizes = [48, 4], strides = [1, 1]} : vector<144x4xf32> to vector<48x4xf32>
    %141 = vector.extract_strided_slice %138 {offsets = [96, 0], sizes = [48, 4], strides = [1, 1]} : vector<144x4xf32> to vector<48x4xf32>
    %142 = tpu.concatenate %125, %139, %140, %141 in 1 : vector<48x16xf32>, vector<48x4xf32>, vector<48x4xf32>, vector<48x4xf32> -> vector<48x28xf32>
    %c0_68 = arith.constant 0 : index
    %c0_69 = arith.constant 0 : index
    %143 = vector.load %arg24[%c0_68, %c0_69] : memref<48x28xf32, #tpu.memory_space<vmem>>, vector<48x28xf32>
    tpu.vector_store %arg24[%c0_68, %c0_69], %142 {strides = array<i32>} : memref<48x28xf32, #tpu.memory_space<vmem>>, vector<48x28xf32>,
    return
  }
  func.func @transform_0(%arg0: i32) -> (i32, i32) {
    %c0_i32 = arith.constant 0 : i32
    %c0_i32_0 = arith.constant 0 : i32
    return %arg0, %c0_i32 : i32, i32
  }
  func.func @transform_1(%arg0: i32) -> (i32, i32, i32) {
    %c0_i32 = arith.constant 0 : i32
    %c0_i32_0 = arith.constant 0 : i32
    %c0_i32_1 = arith.constant 0 : i32
    return %c0_i32, %arg0, %c0_i32_0 : i32, i32, i32
  }
  func.func @transform_2(%arg0: i32) -> (i32, i32) {
    %c0_i32 = arith.constant 0 : i32
    %c0_i32_0 = arith.constant 0 : i32
    %c0_i32_1 = arith.constant 0 : i32
    return %c0_i32, %c0_i32_0 : i32, i32
  }
  func.func @transform_3(%arg0: i32) -> (i32, i32) {
    %c0_i32 = arith.constant 0 : i32
    %c0_i32_0 = arith.constant 0 : i32
    %c0_i32_1 = arith.constant 0 : i32
    return %c0_i32, %c0_i32_0 : i32, i32
  }
  func.func @transform_4(%arg0: i32) -> (i32, i32) {
    %c0_i32 = arith.constant 0 : i32
    %c0_i32_0 = arith.constant 0 : i32
    %c0_i32_1 = arith.constant 0 : i32
    return %c0_i32, %c0_i32_0 : i32, i32
  }
  func.func @transform_5(%arg0: i32) -> (i32, i32) {
    %c0_i32 = arith.constant 0 : i32
    %c0_i32_0 = arith.constant 0 : i32
    %c0_i32_1 = arith.constant 0 : i32
    return %c0_i32, %c0_i32_0 : i32, i32
  }
  func.func @transform_6(%arg0: i32) -> (i32, i32) {
    %c0_i32 = arith.constant 0 : i32
    %c0_i32_0 = arith.constant 0 : i32
    %c0_i32_1 = arith.constant 0 : i32
    return %c0_i32, %c0_i32_0 : i32, i32
  }
  func.func @transform_7(%arg0: i32) -> (i32, i32) {
    %c0_i32 = arith.constant 0 : i32
    %c0_i32_0 = arith.constant 0 : i32
    %c0_i32_1 = arith.constant 0 : i32
    return %c0_i32, %c0_i32_0 : i32, i32
  }
  func.func @transform_8(%arg0: i32) -> (i32, i32) {
    %c0_i32 = arith.constant 0 : i32
    %c0_i32_0 = arith.constant 0 : i32
    %c0_i32_1 = arith.constant 0 : i32
    return %c0_i32, %c0_i32_0 : i32, i32
  }
  func.func @transform_9(%arg0: i32) -> (i32, i32) {
    %c0_i32 = arith.constant 0 : i32
    %c0_i32_0 = arith.constant 0 : i32
    %c0_i32_1 = arith.constant 0 : i32
    return %c0_i32, %c0_i32_0 : i32, i32
  }
  func.func @transform_10(%arg0: i32) -> (i32, i32) {
    %c0_i32 = arith.constant 0 : i32
    %c0_i32_0 = arith.constant 0 : i32
    %c0_i32_1 = arith.constant 0 : i32
    return %c0_i32, %c0_i32_0 : i32, i32
  }
  func.func @transform_11(%arg0: i32) -> (i32, i32) {
    %c0_i32 = arith.constant 0 : i32
    %c0_i32_0 = arith.constant 0 : i32
    %c0_i32_1 = arith.constant 0 : i32
    return %c0_i32, %c0_i32_0 : i32, i32
  }
  func.func @transform_12(%arg0: i32) -> (i32, i32) {
    %c0_i32 = arith.constant 0 : i32
    %c0_i32_0 = arith.constant 0 : i32
    %c0_i32_1 = arith.constant 0 : i32
    return %c0_i32, %c0_i32_0 : i32, i32
  }
  func.func @transform_13(%arg0: i32) -> (i32, i32) {
    %c0_i32 = arith.constant 0 : i32
    %c0_i32_0 = arith.constant 0 : i32
    %c0_i32_1 = arith.constant 0 : i32
    return %c0_i32, %c0_i32_0 : i32, i32
  }
  func.func @transform_14(%arg0: i32) -> (i32, i32) {
    %c0_i32 = arith.constant 0 : i32
    %c0_i32_0 = arith.constant 0 : i32
    %c0_i32_1 = arith.constant 0 : i32
    return %c0_i32, %c0_i32_0 : i32, i32
  }
  func.func @transform_15(%arg0: i32) -> (i32, i32) {
    %c0_i32 = arith.constant 0 : i32
    %c0_i32_0 = arith.constant 0 : i32
    %c0_i32_1 = arith.constant 0 : i32
    return %c0_i32, %c0_i32_0 : i32, i32
  }
  func.func @transform_16(%arg0: i32) -> (i32, i32) {
    %c0_i32 = arith.constant 0 : i32
    %c0_i32_0 = arith.constant 0 : i32
    %c0_i32_1 = arith.constant 0 : i32
    return %c0_i32, %c0_i32_0 : i32, i32
  }
  func.func @transform_17(%arg0: i32) -> (i32, i32) {
    %c0_i32 = arith.constant 0 : i32
    %c0_i32_0 = arith.constant 0 : i32
    %c0_i32_1 = arith.constant 0 : i32
    return %c0_i32, %c0_i32_0 : i32, i32
  }
  func.func @transform_18(%arg0: i32) -> (i32, i32) {
    %c0_i32 = arith.constant 0 : i32
    %c0_i32_0 = arith.constant 0 : i32
    %c0_i32_1 = arith.constant 0 : i32
    return %c0_i32, %c0_i32_0 : i32, i32
  }
  func.func @transform_19(%arg0: i32) -> (i32, i32) {
    %c0_i32 = arith.constant 0 : i32
    %c0_i32_0 = arith.constant 0 : i32
    %c0_i32_1 = arith.constant 0 : i32
    return %c0_i32, %c0_i32_0 : i32, i32
  }
  func.func @transform_20(%arg0: i32) -> (i32, i32) {
    %c0_i32 = arith.constant 0 : i32
    %c0_i32_0 = arith.constant 0 : i32
    %c0_i32_1 = arith.constant 0 : i32
    return %c0_i32, %c0_i32_0 : i32, i32
  }
  func.func @transform_21(%arg0: i32) -> (i32, i32) {
    %c0_i32 = arith.constant 0 : i32
    %c0_i32_0 = arith.constant 0 : i32
    %c0_i32_1 = arith.constant 0 : i32
    return %c0_i32, %c0_i32_0 : i32, i32
  }
  func.func @transform_22(%arg0: i32) -> (i32, i32) {
    %c0_i32 = arith.constant 0 : i32
    %c0_i32_0 = arith.constant 0 : i32
    %c0_i32_1 = arith.constant 0 : i32
    return %c0_i32, %c0_i32_0 : i32, i32
  }
  func.func @transform_23(%arg0: i32) -> (i32, i32) {
    %c0_i32 = arith.constant 0 : i32
    %c0_i32_0 = arith.constant 0 : i32
    return %arg0, %c0_i32 : i32, i32
  }
}

module attributes {stable_mosaic.version = 11 : i64} {
  func.func @attn_combine_norm_kernel(%arg0: i32, %arg1: memref<1x8x16xf32, #tpu.memory_space<vmem>>, %arg2: memref<1x8x12xf32, #tpu.memory_space<vmem>>, %arg3: memref<1x8x28xf32, #tpu.memory_space<vmem>>, %arg4: memref<16x80xbf16, #tpu.memory_space<vmem>>, %arg5: memref<4x80xbf16, #tpu.memory_space<vmem>>, %arg6: memref<1x80xf32, #tpu.memory_space<vmem>>, %arg7: memref<16x80xbf16, #tpu.memory_space<vmem>>, %arg8: memref<4x80xbf16, #tpu.memory_space<vmem>>, %arg9: memref<1x80xf32, #tpu.memory_space<vmem>>, %arg10: memref<16x64xbf16, #tpu.memory_space<vmem>>, %arg11: memref<1x64xf32, #tpu.memory_space<vmem>>, %arg12: memref<16x16xbf16, #tpu.memory_space<vmem>>, %arg13: memref<1x16xf32, #tpu.memory_space<vmem>>, %arg14: memref<1x16xf32, #tpu.memory_space<vmem>>, %arg15: memref<1x16xf32, #tpu.memory_space<vmem>>, %arg16: memref<1x8x16xf32, #tpu.memory_space<vmem>>, %arg17: memref<1x8x12xf32, #tpu.memory_space<vmem>>) attributes {dimension_semantics = [#tpu.dimension_semantics<parallel>], iteration_bounds = array<i64: 3>, scalar_prefetch = 0 : i64, scratch_operands = 0 : i64, tpu.core_type = #tpu.core_type<tc>, window_params = [{transform_indices = @transform_0, window_bounds = array<i64: 1, 8, 16>}, {transform_indices = @transform_1, window_bounds = array<i64: 1, 8, 12>}, {transform_indices = @transform_2, window_bounds = array<i64: 1, 8, 28>}, {pipeline_mode = #tpu.pipeline_mode<synchronous>, transform_indices = @transform_3, window_bounds = array<i64: 16, 80>}, {pipeline_mode = #tpu.pipeline_mode<synchronous>, transform_indices = @transform_4, window_bounds = array<i64: 4, 80>}, {pipeline_mode = #tpu.pipeline_mode<synchronous>, transform_indices = @transform_5, window_bounds = array<i64: 1, 80>}, {pipeline_mode = #tpu.pipeline_mode<synchronous>, transform_indices = @transform_6, window_bounds = array<i64: 16, 80>}, {pipeline_mode = #tpu.pipeline_mode<synchronous>, transform_indices = @transform_7, window_bounds = array<i64: 4, 80>}, {pipeline_mode = #tpu.pipeline_mode<synchronous>, transform_indices = @transform_8, window_bounds = array<i64: 1, 80>}, {pipeline_mode = #tpu.pipeline_mode<synchronous>, transform_indices = @transform_9, window_bounds = array<i64: 16, 64>}, {pipeline_mode = #tpu.pipeline_mode<synchronous>, transform_indices = @transform_10, window_bounds = array<i64: 1, 64>}, {pipeline_mode = #tpu.pipeline_mode<synchronous>, transform_indices = @transform_11, window_bounds = array<i64: 16, 16>}, {pipeline_mode = #tpu.pipeline_mode<synchronous>, transform_indices = @transform_12, window_bounds = array<i64: 1, 16>}, {pipeline_mode = #tpu.pipeline_mode<synchronous>, transform_indices = @transform_13, window_bounds = array<i64: 1, 16>}, {pipeline_mode = #tpu.pipeline_mode<synchronous>, transform_indices = @transform_14, window_bounds = array<i64: 1, 16>}, {transform_indices = @transform_15, window_bounds = array<i64: 1, 8, 16>}, {transform_indices = @transform_16, window_bounds = array<i64: 1, 8, 12>}]} {
    %c0 = arith.constant 0 : index
    %c0_0 = arith.constant 0 : index
    %c0_1 = arith.constant 0 : index
    %0 = vector.load %arg1[%c0, %c0_0, %c0_1] : memref<1x8x16xf32, #tpu.memory_space<vmem>>, vector<1x8x16xf32>
    %1 = vector.shape_cast %0 : vector<1x8x16xf32> to vector<8x16xf32>
    %c0_2 = arith.constant 0 : index
    %c0_3 = arith.constant 0 : index
    %c0_4 = arith.constant 0 : index
    %2 = vector.load %arg2[%c0_2, %c0_3, %c0_4] : memref<1x8x12xf32, #tpu.memory_space<vmem>>, vector<1x8x12xf32>
    %3 = vector.shape_cast %2 : vector<1x8x12xf32> to vector<8x12xf32>
    %4 = vector.extract_strided_slice %3 {offsets = [0, 0], sizes = [8, 4], strides = [1, 1]} : vector<8x12xf32> to vector<8x4xf32>
    %5 = vector.extract_strided_slice %3 {offsets = [0, 4], sizes = [8, 4], strides = [1, 1]} : vector<8x12xf32> to vector<8x4xf32>
    %6 = vector.extract_strided_slice %3 {offsets = [0, 8], sizes = [8, 4], strides = [1, 1]} : vector<8x12xf32> to vector<8x4xf32>
    %7 = arith.mulf %4, %4 : vector<8x4xf32>
    %8 = arith.mulf %5, %5 : vector<8x4xf32>
    %9 = arith.addf %7, %8 : vector<8x4xf32>
    %10 = arith.mulf %6, %6 : vector<8x4xf32>
    %11 = arith.addf %9, %10 : vector<8x4xf32>
    %12 = math.sqrt %11 : vector<8x4xf32>
    %13 = arith.truncf %1 : vector<8x16xf32> to vector<8x16xbf16>
    %14 = arith.truncf %12 : vector<8x4xf32> to vector<8x4xbf16>
    %c0_5 = arith.constant 0 : index
    %c0_6 = arith.constant 0 : index
    %15 = vector.load %arg4[%c0_5, %c0_6] : memref<16x80xbf16, #tpu.memory_space<vmem>>, vector<16x80xbf16>
    %cst = arith.constant dense<0.000000e+00> : vector<8x80xf32>
    %16 = tpu.matmul %13, %15, %cst {dimension_numbers = #tpu.dot_dimension_numbers<[1], [0], [0], [1], [0, 0, 1, 1], [], []>} : vector<8x16xbf16>, vector<16x80xbf16>, vector<8x80xf32> -> vector<8x80xf32>
    %c0_7 = arith.constant 0 : index
    %c0_8 = arith.constant 0 : index
    %17 = vector.load %arg5[%c0_7, %c0_8] : memref<4x80xbf16, #tpu.memory_space<vmem>>, vector<4x80xbf16>
    %cst_9 = arith.constant dense<0.000000e+00> : vector<8x80xf32>
    %18 = tpu.matmul %14, %17, %cst_9 {dimension_numbers = #tpu.dot_dimension_numbers<[1], [0], [0], [1], [0, 0, 1, 1], [], []>} : vector<8x4xbf16>, vector<4x80xbf16>, vector<8x80xf32> -> vector<8x80xf32>
    %19 = arith.addf %16, %18 : vector<8x80xf32>
    %c0_10 = arith.constant 0 : index
    %c0_11 = arith.constant 0 : index
    %20 = vector.load %arg6[%c0_10, %c0_11] : memref<1x80xf32, #tpu.memory_space<vmem>>, vector<1x80xf32>
    %21 = vector.broadcast %20 : vector<1x80xf32> to vector<8x80xf32>
    %22 = arith.addf %19, %21 : vector<8x80xf32>
    %c0_12 = arith.constant 0 : index
    %c0_13 = arith.constant 0 : index
    %23 = vector.load %arg7[%c0_12, %c0_13] : memref<16x80xbf16, #tpu.memory_space<vmem>>, vector<16x80xbf16>
    %cst_14 = arith.constant dense<0.000000e+00> : vector<8x80xf32>
    %24 = tpu.matmul %13, %23, %cst_14 {dimension_numbers = #tpu.dot_dimension_numbers<[1], [0], [0], [1], [0, 0, 1, 1], [], []>} : vector<8x16xbf16>, vector<16x80xbf16>, vector<8x80xf32> -> vector<8x80xf32>
    %c0_15 = arith.constant 0 : index
    %c0_16 = arith.constant 0 : index
    %25 = vector.load %arg8[%c0_15, %c0_16] : memref<4x80xbf16, #tpu.memory_space<vmem>>, vector<4x80xbf16>
    %cst_17 = arith.constant dense<0.000000e+00> : vector<8x80xf32>
    %26 = tpu.matmul %14, %25, %cst_17 {dimension_numbers = #tpu.dot_dimension_numbers<[1], [0], [0], [1], [0, 0, 1, 1], [], []>} : vector<8x4xbf16>, vector<4x80xbf16>, vector<8x80xf32> -> vector<8x80xf32>
    %27 = arith.addf %24, %26 : vector<8x80xf32>
    %c0_18 = arith.constant 0 : index
    %c0_19 = arith.constant 0 : index
    %28 = vector.load %arg9[%c0_18, %c0_19] : memref<1x80xf32, #tpu.memory_space<vmem>>, vector<1x80xf32>
    %29 = vector.broadcast %28 : vector<1x80xf32> to vector<8x80xf32>
    %30 = arith.addf %27, %29 : vector<8x80xf32>
    %c0_20 = arith.constant 0 : index
    %c0_21 = arith.constant 0 : index
    %31 = vector.load %arg10[%c0_20, %c0_21] : memref<16x64xbf16, #tpu.memory_space<vmem>>, vector<16x64xbf16>
    %cst_22 = arith.constant dense<0.000000e+00> : vector<8x64xf32>
    %32 = tpu.matmul %13, %31, %cst_22 {dimension_numbers = #tpu.dot_dimension_numbers<[1], [0], [0], [1], [0, 0, 1, 1], [], []>} : vector<8x16xbf16>, vector<16x64xbf16>, vector<8x64xf32> -> vector<8x64xf32>
    %c0_23 = arith.constant 0 : index
    %c0_24 = arith.constant 0 : index
    %33 = vector.load %arg11[%c0_23, %c0_24] : memref<1x64xf32, #tpu.memory_space<vmem>>, vector<1x64xf32>
    %34 = vector.broadcast %33 : vector<1x64xf32> to vector<8x64xf32>
    %35 = arith.addf %32, %34 : vector<8x64xf32>
    %cst_25 = arith.constant 0.000000e+00 : f32
    %36 = vector.broadcast %cst_25 : f32 to vector<8x16xf32>
    %37 = vector.extract_strided_slice %22 {offsets = [0, 0], sizes = [8, 20], strides = [1, 1]} : vector<8x80xf32> to vector<8x20xf32>
    %38 = arith.truncf %37 : vector<8x20xf32> to vector<8x20xbf16>
    %39 = vector.extract_strided_slice %30 {offsets = [0, 0], sizes = [8, 20], strides = [1, 1]} : vector<8x80xf32> to vector<8x20xf32>
    %40 = arith.truncf %39 : vector<8x20xf32> to vector<8x20xbf16>
    %41 = vector.extract_strided_slice %35 {offsets = [0, 0], sizes = [8, 16], strides = [1, 1]} : vector<8x64xf32> to vector<8x16xf32>
    %42 = arith.truncf %41 : vector<8x16xf32> to vector<8x16xbf16>
    %cst_26 = arith.constant dense<0.000000e+00> : vector<8x8xf32>
    %43 = tpu.matmul %38, %40, %cst_26 {dimension_numbers = #tpu.dot_dimension_numbers<[1], [1], [0], [0], [0, 0, 1, 0], [], []>} : vector<8x20xbf16>, vector<8x20xbf16>, vector<8x8xf32> -> vector<8x8xf32>
    %cst_27 = arith.constant 0.223606795 : f32
    %44 = vector.broadcast %cst_27 : f32 to vector<8x8xf32>
    %45 = arith.mulf %43, %44 : vector<8x8xf32>
    %cst_28 = arith.constant dense<0xFF800000> : vector<8xf32>
    %46 = vector.multi_reduction <maximumf>, %45, %cst_28 [1] : vector<8x8xf32> to vector<8xf32>
    %cst_29 = arith.constant 0xFF800000 : f32
    %47 = vector.broadcast %cst_29 : f32 to vector<8xf32>
    %48 = arith.maximumf %47, %46 : vector<8xf32>
    %49 = vector.shape_cast %48 : vector<8xf32> to vector<8x1xf32>
    %50 = vector.broadcast %49 : vector<8x1xf32> to vector<8x8xf32>
    %51 = arith.subf %45, %50 : vector<8x8xf32>
    %52 = math.exp %51 : vector<8x8xf32>
    %cst_30 = arith.constant dense<0.000000e+00> : vector<8xf32>
    %53 = vector.multi_reduction <add>, %52, %cst_30 [1] : vector<8x8xf32> to vector<8xf32>
    %54 = vector.shape_cast %53 : vector<8xf32> to vector<8x1xf32>
    %55 = vector.broadcast %54 : vector<8x1xf32> to vector<8x8xf32>
    %56 = arith.divf %52, %55 : vector<8x8xf32>
    %57 = arith.truncf %56 : vector<8x8xf32> to vector<8x8xbf16>
    %cst_31 = arith.constant dense<0.000000e+00> : vector<8x16xf32>
    %58 = tpu.matmul %57, %42, %cst_31 {dimension_numbers = #tpu.dot_dimension_numbers<[1], [0], [0], [1], [0, 0, 1, 1], [], []>} : vector<8x8xbf16>, vector<8x16xbf16>, vector<8x16xf32> -> vector<8x16xf32>
    %59 = arith.addf %36, %58 : vector<8x16xf32>
    %60 = vector.extract_strided_slice %22 {offsets = [0, 20], sizes = [8, 20], strides = [1, 1]} : vector<8x80xf32> to vector<8x20xf32>
    %61 = arith.truncf %60 : vector<8x20xf32> to vector<8x20xbf16>
    %62 = vector.extract_strided_slice %30 {offsets = [0, 20], sizes = [8, 20], strides = [1, 1]} : vector<8x80xf32> to vector<8x20xf32>
    %63 = arith.truncf %62 : vector<8x20xf32> to vector<8x20xbf16>
    %64 = vector.extract_strided_slice %35 {offsets = [0, 16], sizes = [8, 16], strides = [1, 1]} : vector<8x64xf32> to vector<8x16xf32>
    %65 = arith.truncf %64 : vector<8x16xf32> to vector<8x16xbf16>
    %cst_32 = arith.constant dense<0.000000e+00> : vector<8x8xf32>
    %66 = tpu.matmul %61, %63, %cst_32 {dimension_numbers = #tpu.dot_dimension_numbers<[1], [1], [0], [0], [0, 0, 1, 0], [], []>} : vector<8x20xbf16>, vector<8x20xbf16>, vector<8x8xf32> -> vector<8x8xf32>
    %cst_33 = arith.constant 0.223606795 : f32
    %67 = vector.broadcast %cst_33 : f32 to vector<8x8xf32>
    %68 = arith.mulf %66, %67 : vector<8x8xf32>
    %cst_34 = arith.constant dense<0xFF800000> : vector<8xf32>
    %69 = vector.multi_reduction <maximumf>, %68, %cst_34 [1] : vector<8x8xf32> to vector<8xf32>
    %cst_35 = arith.constant 0xFF800000 : f32
    %70 = vector.broadcast %cst_35 : f32 to vector<8xf32>
    %71 = arith.maximumf %70, %69 : vector<8xf32>
    %72 = vector.shape_cast %71 : vector<8xf32> to vector<8x1xf32>
    %73 = vector.broadcast %72 : vector<8x1xf32> to vector<8x8xf32>
    %74 = arith.subf %68, %73 : vector<8x8xf32>
    %75 = math.exp %74 : vector<8x8xf32>
    %cst_36 = arith.constant dense<0.000000e+00> : vector<8xf32>
    %76 = vector.multi_reduction <add>, %75, %cst_36 [1] : vector<8x8xf32> to vector<8xf32>
    %77 = vector.shape_cast %76 : vector<8xf32> to vector<8x1xf32>
    %78 = vector.broadcast %77 : vector<8x1xf32> to vector<8x8xf32>
    %79 = arith.divf %75, %78 : vector<8x8xf32>
    %80 = arith.truncf %79 : vector<8x8xf32> to vector<8x8xbf16>
    %cst_37 = arith.constant dense<0.000000e+00> : vector<8x16xf32>
    %81 = tpu.matmul %80, %65, %cst_37 {dimension_numbers = #tpu.dot_dimension_numbers<[1], [0], [0], [1], [0, 0, 1, 1], [], []>} : vector<8x8xbf16>, vector<8x16xbf16>, vector<8x16xf32> -> vector<8x16xf32>
    %82 = arith.addf %59, %81 : vector<8x16xf32>
    %83 = vector.extract_strided_slice %22 {offsets = [0, 40], sizes = [8, 20], strides = [1, 1]} : vector<8x80xf32> to vector<8x20xf32>
    %84 = arith.truncf %83 : vector<8x20xf32> to vector<8x20xbf16>
    %85 = vector.extract_strided_slice %30 {offsets = [0, 40], sizes = [8, 20], strides = [1, 1]} : vector<8x80xf32> to vector<8x20xf32>
    %86 = arith.truncf %85 : vector<8x20xf32> to vector<8x20xbf16>
    %87 = vector.extract_strided_slice %35 {offsets = [0, 32], sizes = [8, 16], strides = [1, 1]} : vector<8x64xf32> to vector<8x16xf32>
    %88 = arith.truncf %87 : vector<8x16xf32> to vector<8x16xbf16>
    %cst_38 = arith.constant dense<0.000000e+00> : vector<8x8xf32>
    %89 = tpu.matmul %84, %86, %cst_38 {dimension_numbers = #tpu.dot_dimension_numbers<[1], [1], [0], [0], [0, 0, 1, 0], [], []>} : vector<8x20xbf16>, vector<8x20xbf16>, vector<8x8xf32> -> vector<8x8xf32>
    %cst_39 = arith.constant 0.223606795 : f32
    %90 = vector.broadcast %cst_39 : f32 to vector<8x8xf32>
    %91 = arith.mulf %89, %90 : vector<8x8xf32>
    %cst_40 = arith.constant dense<0xFF800000> : vector<8xf32>
    %92 = vector.multi_reduction <maximumf>, %91, %cst_40 [1] : vector<8x8xf32> to vector<8xf32>
    %cst_41 = arith.constant 0xFF800000 : f32
    %93 = vector.broadcast %cst_41 : f32 to vector<8xf32>
    %94 = arith.maximumf %93, %92 : vector<8xf32>
    %95 = vector.shape_cast %94 : vector<8xf32> to vector<8x1xf32>
    %96 = vector.broadcast %95 : vector<8x1xf32> to vector<8x8xf32>
    %97 = arith.subf %91, %96 : vector<8x8xf32>
    %98 = math.exp %97 : vector<8x8xf32>
    %cst_42 = arith.constant dense<0.000000e+00> : vector<8xf32>
    %99 = vector.multi_reduction <add>, %98, %cst_42 [1] : vector<8x8xf32> to vector<8xf32>
    %100 = vector.shape_cast %99 : vector<8xf32> to vector<8x1xf32>
    %101 = vector.broadcast %100 : vector<8x1xf32> to vector<8x8xf32>
    %102 = arith.divf %98, %101 : vector<8x8xf32>
    %103 = arith.truncf %102 : vector<8x8xf32> to vector<8x8xbf16>
    %cst_43 = arith.constant dense<0.000000e+00> : vector<8x16xf32>
    %104 = tpu.matmul %103, %88, %cst_43 {dimension_numbers = #tpu.dot_dimension_numbers<[1], [0], [0], [1], [0, 0, 1, 1], [], []>} : vector<8x8xbf16>, vector<8x16xbf16>, vector<8x16xf32> -> vector<8x16xf32>
    %105 = arith.addf %82, %104 : vector<8x16xf32>
    %106 = vector.extract_strided_slice %22 {offsets = [0, 60], sizes = [8, 20], strides = [1, 1]} : vector<8x80xf32> to vector<8x20xf32>
    %107 = arith.truncf %106 : vector<8x20xf32> to vector<8x20xbf16>
    %108 = vector.extract_strided_slice %30 {offsets = [0, 60], sizes = [8, 20], strides = [1, 1]} : vector<8x80xf32> to vector<8x20xf32>
    %109 = arith.truncf %108 : vector<8x20xf32> to vector<8x20xbf16>
    %110 = vector.extract_strided_slice %35 {offsets = [0, 48], sizes = [8, 16], strides = [1, 1]} : vector<8x64xf32> to vector<8x16xf32>
    %111 = arith.truncf %110 : vector<8x16xf32> to vector<8x16xbf16>
    %cst_44 = arith.constant dense<0.000000e+00> : vector<8x8xf32>
    %112 = tpu.matmul %107, %109, %cst_44 {dimension_numbers = #tpu.dot_dimension_numbers<[1], [1], [0], [0], [0, 0, 1, 0], [], []>} : vector<8x20xbf16>, vector<8x20xbf16>, vector<8x8xf32> -> vector<8x8xf32>
    %cst_45 = arith.constant 0.223606795 : f32
    %113 = vector.broadcast %cst_45 : f32 to vector<8x8xf32>
    %114 = arith.mulf %112, %113 : vector<8x8xf32>
    %cst_46 = arith.constant dense<0xFF800000> : vector<8xf32>
    %115 = vector.multi_reduction <maximumf>, %114, %cst_46 [1] : vector<8x8xf32> to vector<8xf32>
    %cst_47 = arith.constant 0xFF800000 : f32
    %116 = vector.broadcast %cst_47 : f32 to vector<8xf32>
    %117 = arith.maximumf %116, %115 : vector<8xf32>
    %118 = vector.shape_cast %117 : vector<8xf32> to vector<8x1xf32>
    %119 = vector.broadcast %118 : vector<8x1xf32> to vector<8x8xf32>
    %120 = arith.subf %114, %119 : vector<8x8xf32>
    %121 = math.exp %120 : vector<8x8xf32>
    %cst_48 = arith.constant dense<0.000000e+00> : vector<8xf32>
    %122 = vector.multi_reduction <add>, %121, %cst_48 [1] : vector<8x8xf32> to vector<8xf32>
    %123 = vector.shape_cast %122 : vector<8xf32> to vector<8x1xf32>
    %124 = vector.broadcast %123 : vector<8x1xf32> to vector<8x8xf32>
    %125 = arith.divf %121, %124 : vector<8x8xf32>
    %126 = arith.truncf %125 : vector<8x8xf32> to vector<8x8xbf16>
    %cst_49 = arith.constant dense<0.000000e+00> : vector<8x16xf32>
    %127 = tpu.matmul %126, %111, %cst_49 {dimension_numbers = #tpu.dot_dimension_numbers<[1], [0], [0], [1], [0, 0, 1, 1], [], []>} : vector<8x8xbf16>, vector<8x16xbf16>, vector<8x16xf32> -> vector<8x16xf32>
    %128 = arith.addf %105, %127 : vector<8x16xf32>
    %cst_50 = arith.constant 2.500000e-01 : f32
    %129 = vector.broadcast %cst_50 : f32 to vector<8x16xf32>
    %130 = arith.mulf %128, %129 : vector<8x16xf32>
    %131 = arith.truncf %130 : vector<8x16xf32> to vector<8x16xbf16>
    %c0_51 = arith.constant 0 : index
    %c0_52 = arith.constant 0 : index
    %132 = vector.load %arg12[%c0_51, %c0_52] : memref<16x16xbf16, #tpu.memory_space<vmem>>, vector<16x16xbf16>
    %cst_53 = arith.constant dense<0.000000e+00> : vector<8x16xf32>
    %133 = tpu.matmul %131, %132, %cst_53 {dimension_numbers = #tpu.dot_dimension_numbers<[1], [0], [0], [1], [0, 0, 1, 1], [], []>} : vector<8x16xbf16>, vector<16x16xbf16>, vector<8x16xf32> -> vector<8x16xf32>
    %c0_54 = arith.constant 0 : index
    %c0_55 = arith.constant 0 : index
    %134 = vector.load %arg13[%c0_54, %c0_55] : memref<1x16xf32, #tpu.memory_space<vmem>>, vector<1x16xf32>
    %135 = vector.broadcast %134 : vector<1x16xf32> to vector<8x16xf32>
    %136 = arith.addf %133, %135 : vector<8x16xf32>
    %c0_56 = arith.constant 0 : index
    %c0_57 = arith.constant 0 : index
    %c0_58 = arith.constant 0 : index
    %137 = vector.load %arg3[%c0_56, %c0_57, %c0_58] : memref<1x8x28xf32, #tpu.memory_space<vmem>>, vector<1x8x28xf32>
    %138 = vector.shape_cast %137 : vector<1x8x28xf32> to vector<8x28xf32>
    %139 = vector.extract_strided_slice %138 {offsets = [0, 0], sizes = [8, 16], strides = [1, 1]} : vector<8x28xf32> to vector<8x16xf32>
    %140 = vector.extract_strided_slice %138 {offsets = [0, 16], sizes = [8, 12], strides = [1, 1]} : vector<8x28xf32> to vector<8x12xf32>
    %cst_59 = arith.constant 5.000000e-01 : f32
    %141 = vector.broadcast %cst_59 : f32 to vector<8x16xf32>
    %142 = arith.mulf %141, %139 : vector<8x16xf32>
    %143 = arith.addf %1, %142 : vector<8x16xf32>
    %cst_60 = arith.constant 5.000000e-01 : f32
    %144 = vector.broadcast %cst_60 : f32 to vector<8x16xf32>
    %145 = arith.mulf %144, %136 : vector<8x16xf32>
    %146 = arith.addf %143, %145 : vector<8x16xf32>
    %cst_61 = arith.constant dense<0.000000e+00> : vector<8xf32>
    %147 = vector.multi_reduction <add>, %146, %cst_61 [1] : vector<8x16xf32> to vector<8xf32>
    %148 = vector.shape_cast %147 : vector<8xf32> to vector<8x1xf32>
    %cst_62 = arith.constant 1.600000e+01 : f32
    %149 = vector.broadcast %cst_62 : f32 to vector<8x1xf32>
    %150 = arith.divf %148, %149 : vector<8x1xf32>
    %151 = vector.broadcast %150 : vector<8x1xf32> to vector<8x16xf32>
    %152 = arith.subf %146, %151 : vector<8x16xf32>
    %153 = arith.mulf %152, %152 : vector<8x16xf32>
    %cst_63 = arith.constant dense<0.000000e+00> : vector<8xf32>
    %154 = vector.multi_reduction <add>, %153, %cst_63 [1] : vector<8x16xf32> to vector<8xf32>
    %155 = vector.shape_cast %154 : vector<8xf32> to vector<8x1xf32>
    %cst_64 = arith.constant 1.600000e+01 : f32
    %156 = vector.broadcast %cst_64 : f32 to vector<8x1xf32>
    %157 = arith.divf %155, %156 : vector<8x1xf32>
    %cst_65 = arith.constant 9.99999974E-6 : f32
    %158 = vector.broadcast %cst_65 : f32 to vector<8x1xf32>
    %159 = arith.addf %157, %158 : vector<8x1xf32>
    %160 = math.rsqrt %159 : vector<8x1xf32>
    %161 = vector.broadcast %160 : vector<8x1xf32> to vector<8x16xf32>
    %162 = arith.mulf %152, %161 : vector<8x16xf32>
    %c0_66 = arith.constant 0 : index
    %c0_67 = arith.constant 0 : index
    %163 = vector.load %arg14[%c0_66, %c0_67] : memref<1x16xf32, #tpu.memory_space<vmem>>, vector<1x16xf32>
    %164 = vector.broadcast %163 : vector<1x16xf32> to vector<8x16xf32>
    %165 = arith.mulf %162, %164 : vector<8x16xf32>
    %c0_68 = arith.constant 0 : index
    %c0_69 = arith.constant 0 : index
    %166 = vector.load %arg15[%c0_68, %c0_69] : memref<1x16xf32, #tpu.memory_space<vmem>>, vector<1x16xf32>
    %167 = vector.broadcast %166 : vector<1x16xf32> to vector<8x16xf32>
    %168 = arith.addf %165, %167 : vector<8x16xf32>
    %c0_70 = arith.constant 0 : index
    %c0_71 = arith.constant 0 : index
    %c0_72 = arith.constant 0 : index
    %169 = vector.load %arg16[%c0_70, %c0_71, %c0_72] : memref<1x8x16xf32, #tpu.memory_space<vmem>>, vector<1x8x16xf32>
    %170 = vector.shape_cast %169 : vector<1x8x16xf32> to vector<8x16xf32>
    %171 = vector.shape_cast %168 : vector<8x16xf32> to vector<1x8x16xf32>
    tpu.vector_store %arg16[%c0_70, %c0_71, %c0_72], %171 {strides = array<i32>} : memref<1x8x16xf32, #tpu.memory_space<vmem>>, vector<1x8x16xf32>,
    %172 = arith.addf %3, %140 : vector<8x12xf32>
    %173 = vector.extract_strided_slice %172 {offsets = [0, 0], sizes = [8, 4], strides = [1, 1]} : vector<8x12xf32> to vector<8x4xf32>
    %174 = vector.extract_strided_slice %172 {offsets = [0, 4], sizes = [8, 4], strides = [1, 1]} : vector<8x12xf32> to vector<8x4xf32>
    %175 = vector.extract_strided_slice %172 {offsets = [0, 8], sizes = [8, 4], strides = [1, 1]} : vector<8x12xf32> to vector<8x4xf32>
    %176 = arith.mulf %173, %173 : vector<8x4xf32>
    %177 = arith.mulf %174, %174 : vector<8x4xf32>
    %178 = arith.addf %176, %177 : vector<8x4xf32>
    %179 = arith.mulf %175, %175 : vector<8x4xf32>
    %180 = arith.addf %178, %179 : vector<8x4xf32>
    %cst_73 = arith.constant 9.99999993E-9 : f32
    %181 = vector.broadcast %cst_73 : f32 to vector<8x4xf32>
    %182 = arith.maximumf %180, %181 : vector<8x4xf32>
    %cst_74 = arith.constant dense<0.000000e+00> : vector<8xf32>
    %183 = vector.multi_reduction <add>, %182, %cst_74 [1] : vector<8x4xf32> to vector<8xf32>
    %184 = vector.shape_cast %183 : vector<8xf32> to vector<8x1xf32>
    %cst_75 = arith.constant 4.000000e+00 : f32
    %185 = vector.broadcast %cst_75 : f32 to vector<8x1xf32>
    %186 = arith.divf %184, %185 : vector<8x1xf32>
    %187 = math.rsqrt %186 : vector<8x1xf32>
    %188 = vector.broadcast %187 : vector<8x1xf32> to vector<8x12xf32>
    %189 = arith.mulf %172, %188 : vector<8x12xf32>
    %c0_76 = arith.constant 0 : index
    %c0_77 = arith.constant 0 : index
    %c0_78 = arith.constant 0 : index
    %190 = vector.load %arg17[%c0_76, %c0_77, %c0_78] : memref<1x8x12xf32, #tpu.memory_space<vmem>>, vector<1x8x12xf32>
    %191 = vector.shape_cast %190 : vector<1x8x12xf32> to vector<8x12xf32>
    %192 = vector.shape_cast %189 : vector<8x12xf32> to vector<1x8x12xf32>
    tpu.vector_store %arg17[%c0_76, %c0_77, %c0_78], %192 {strides = array<i32>} : memref<1x8x12xf32, #tpu.memory_space<vmem>>, vector<1x8x12xf32>,
    return
  }
  func.func @transform_0(%arg0: i32) -> (i32, i32, i32) {
    %c0_i32 = arith.constant 0 : i32
    %c0_i32_0 = arith.constant 0 : i32
    %c0_i32_1 = arith.constant 0 : i32
    return %arg0, %c0_i32, %c0_i32_0 : i32, i32, i32
  }
  func.func @transform_1(%arg0: i32) -> (i32, i32, i32) {
    %c0_i32 = arith.constant 0 : i32
    %c0_i32_0 = arith.constant 0 : i32
    %c0_i32_1 = arith.constant 0 : i32
    return %arg0, %c0_i32, %c0_i32_0 : i32, i32, i32
  }
  func.func @transform_2(%arg0: i32) -> (i32, i32, i32) {
    %c0_i32 = arith.constant 0 : i32
    %c0_i32_0 = arith.constant 0 : i32
    %c0_i32_1 = arith.constant 0 : i32
    return %arg0, %c0_i32, %c0_i32_0 : i32, i32, i32
  }
  func.func @transform_3(%arg0: i32) -> (i32, i32) {
    %c0_i32 = arith.constant 0 : i32
    %c0_i32_0 = arith.constant 0 : i32
    %c0_i32_1 = arith.constant 0 : i32
    return %c0_i32, %c0_i32_0 : i32, i32
  }
  func.func @transform_4(%arg0: i32) -> (i32, i32) {
    %c0_i32 = arith.constant 0 : i32
    %c0_i32_0 = arith.constant 0 : i32
    %c0_i32_1 = arith.constant 0 : i32
    return %c0_i32, %c0_i32_0 : i32, i32
  }
  func.func @transform_5(%arg0: i32) -> (i32, i32) {
    %c0_i32 = arith.constant 0 : i32
    %c0_i32_0 = arith.constant 0 : i32
    %c0_i32_1 = arith.constant 0 : i32
    return %c0_i32, %c0_i32_0 : i32, i32
  }
  func.func @transform_6(%arg0: i32) -> (i32, i32) {
    %c0_i32 = arith.constant 0 : i32
    %c0_i32_0 = arith.constant 0 : i32
    %c0_i32_1 = arith.constant 0 : i32
    return %c0_i32, %c0_i32_0 : i32, i32
  }
  func.func @transform_7(%arg0: i32) -> (i32, i32) {
    %c0_i32 = arith.constant 0 : i32
    %c0_i32_0 = arith.constant 0 : i32
    %c0_i32_1 = arith.constant 0 : i32
    return %c0_i32, %c0_i32_0 : i32, i32
  }
  func.func @transform_8(%arg0: i32) -> (i32, i32) {
    %c0_i32 = arith.constant 0 : i32
    %c0_i32_0 = arith.constant 0 : i32
    %c0_i32_1 = arith.constant 0 : i32
    return %c0_i32, %c0_i32_0 : i32, i32
  }
  func.func @transform_9(%arg0: i32) -> (i32, i32) {
    %c0_i32 = arith.constant 0 : i32
    %c0_i32_0 = arith.constant 0 : i32
    %c0_i32_1 = arith.constant 0 : i32
    return %c0_i32, %c0_i32_0 : i32, i32
  }
  func.func @transform_10(%arg0: i32) -> (i32, i32) {
    %c0_i32 = arith.constant 0 : i32
    %c0_i32_0 = arith.constant 0 : i32
    %c0_i32_1 = arith.constant 0 : i32
    return %c0_i32, %c0_i32_0 : i32, i32
  }
  func.func @transform_11(%arg0: i32) -> (i32, i32) {
    %c0_i32 = arith.constant 0 : i32
    %c0_i32_0 = arith.constant 0 : i32
    %c0_i32_1 = arith.constant 0 : i32
    return %c0_i32, %c0_i32_0 : i32, i32
  }
  func.func @transform_12(%arg0: i32) -> (i32, i32) {
    %c0_i32 = arith.constant 0 : i32
    %c0_i32_0 = arith.constant 0 : i32
    %c0_i32_1 = arith.constant 0 : i32
    return %c0_i32, %c0_i32_0 : i32, i32
  }
  func.func @transform_13(%arg0: i32) -> (i32, i32) {
    %c0_i32 = arith.constant 0 : i32
    %c0_i32_0 = arith.constant 0 : i32
    %c0_i32_1 = arith.constant 0 : i32
    return %c0_i32, %c0_i32_0 : i32, i32
  }
  func.func @transform_14(%arg0: i32) -> (i32, i32) {
    %c0_i32 = arith.constant 0 : i32
    %c0_i32_0 = arith.constant 0 : i32
    %c0_i32_1 = arith.constant 0 : i32
    return %c0_i32, %c0_i32_0 : i32, i32
  }
  func.func @transform_15(%arg0: i32) -> (i32, i32, i32) {
    %c0_i32 = arith.constant 0 : i32
    %c0_i32_0 = arith.constant 0 : i32
    %c0_i32_1 = arith.constant 0 : i32
    return %arg0, %c0_i32, %c0_i32_0 : i32, i32, i32
  }
  func.func @transform_16(%arg0: i32) -> (i32, i32, i32) {
    %c0_i32 = arith.constant 0 : i32
    %c0_i32_0 = arith.constant 0 : i32
    %c0_i32_1 = arith.constant 0 : i32
    return %arg0, %c0_i32, %c0_i32_0 : i32, i32, i32
  }
}

</mosaic_0001>

<bundles_post_ra>
// kernel: multi_attentive_gvp_forward.3
= control target key start
LH: loop header
LB: loop body
LE: loop exit
PB: predicated region body
PF: predicated region fallthrough
CT: control target
= control target key end

     0   :  { %s1736_s0 = inlined_call_operand.vmem [shape: f32[3,8,16], index: 0, kind: input, shape index: {}]   ;;  %s1737_s1 = inlined_call_operand.vmem [shape: f32[3,8,12], index: 1, kind: input, shape index: {}]   ;;  %s1738_s2 = inlined_call_operand.vmem [shape: f32[3,8,28], index: 2, kind: input, shape index: {}]   ;;  %s1739_s3 = inlined_call_operand.vmem [shape: bf16[16,80], index: 3, kind: input, shape index: {}]   ;;  %s1740_s4 = inlined_call_operand.vmem [shape: bf16[4,80], index: 4, kind: input, shape index: {}]   ;;  %s1741_s5 = inlined_call_operand.vmem [shape: f32[1,80], index: 5, kind: input, shape index: {}]   ;;  %s1742_s6 = inlined_call_operand.vmem [shape: bf16[16,80], index: 6, kind: input, shape index: {}]   ;;  %s1743_s7 = inlined_call_operand.vmem [shape: bf16[4,80], index: 7, kind: input, shape index: {}]   ;;  %s1744_s8 = inlined_call_operand.vmem [shape: f32[1,80], index: 8, kind: input, shape index: {}]   ;;  %s1745_s9 = inlined_call_operand.vmem [shape: bf16[16,64], index: 9, kind: input, shape index: {}]   ;;  %s1746_s10 = inlined_call_operand.vmem [shape: f32[1,64], index: 10, kind: input, shape index: {}]   ;;  %s1747_s11 = inlined_call_operand.vmem [shape: bf16[16,16], index: 11, kind: input, shape index: {}]   ;;  %s1748_s12 = inlined_call_operand.vmem [shape: f32[1,16], index: 12, kind: input, shape index: {}]   ;;  %s1749_s13 = inlined_call_operand.vmem [shape: f32[1,16], index: 13, kind: input, shape index: {}]   ;;  %s1750_s14 = inlined_call_operand.vmem [shape: f32[1,16], index: 14, kind: input, shape index: {}]   ;;  %s1751_s15 = inlined_call_operand.hbm [shape: f32[3,8,16], index: 15, kind: output, shape index: {0}]   ;;  %s1752_s16 = inlined_call_operand.vmem [shape: f32[3,8,12], index: 16, kind: output, shape index: {1}]  }
   0x1   :  { %1760 = sst [smem:[#allocation11_spill]] %s1736_s0 }
   0x2   :  { %1761 = sst [smem:[#allocation12_spill]] %s1737_s1 }
   0x3   :  { %22 = vsyncpa [#allocation3], 0 }
   0x4   :  { %24 = vsyncpa [#allocation3 + $0x1], 0  ;;  %s1526_s21 = smov 0   ;;  %s1528_s22 = smov 0  }
   0x5   :  { %s1530_s23 = smov 0   ;;  %s1532_s24 = smov 0  }
   0x6 LB: > { %1762 = sst [smem:[#allocation5_spill]] %s1417_s21  ;;  %s1547_s25 = sadd.s32 4294967295, %s1429_s24   ;;  %s1429_s24 = sphi %s1532_s24, %s1776_s24   ;;  %s1425_s23 = sphi %s1530_s23, %s1778_s23   ;;  %s1421_s22 = sphi %s1528_s22, %s1780_s22   ;;  %s1417_s21 = sphi %s1526_s21, %s1779_s21  }
   0x7   : > { %1763 = sst [smem:[#allocation6_spill]] %s1425_s23  ;;  %s1239_s26 = sadd.s32 4294967294, %s1429_s24  }
   0x8   : > { %1764 = sst [smem:[#allocation7_spill]] %s1429_s24  ;;  %s1551_s27 = sadd.s32 1, %s1429_s24  }
   0x9   : > { %1765 = sst [smem:[#allocation8_spill]] %s1551_s27  ;;  %s367_s28 = sadd.s32 1, %s1425_s23 }
   0xa   : > { %s364_s29 = ssub.s32 %s1429_s24, %s1551_s27  ;;  %p377_p0 = scmp.ne.s32.totalorder %s1425_s23, %s1421_s22 }
   0xb   : > { %p365_p1 = scmp.eq.s32.totalorder %s364_s29, 0  ;;  %p378_p2 = scmp.eq.s32.totalorder %s1547_s25, 2 }
   0xc   : > { %p383_p3 = scmp.ne.s32.totalorder %s1421_s22, %s1417_s21  ;;  %p384_p4 = scmp.eq.s32.totalorder %s1239_s26, 2 }
   0xd   : > { %s1562_s30 = scalar_select %p365_p1, %s1425_s23, %s367_s28  }
   0xe   : > { %p1564_p5 = por %p378_p2, %p377_p0  ;;  %p1568_p6 = por %p384_p4, %p383_p3 }
   0xf   : > { %1766 = sst [smem:[#allocation9_spill]] %s1562_s30  ;;  %p1242_p7 = scmp.ge.s32.totalorder %s1429_s24, 1 }
  0x10   : > { %s1768_s17 = scalar_select %p1568_p6, 1, 0 }
  0x11   : > { %p485_p8 = scmp.lt.s32.totalorder %s1429_s24, 4 }
  0x12   : > { %1769 = sst [smem:[#allocation10_spill]] %s1768_s17 }
  0x13   : > { %p486_p9 = pnand %p1242_p7, %p485_p8 }
  0x14   : > { %p546_p10 = scmp.lt.s32.totalorder (!%p486_p9), %s1547_s25, 2  ;;  %s1770_s1 = sld [smem:[#allocation12_spill]] (!%p486_p9) }
  0x15   : > { %489 = sbr.rel (%p486_p9) target bundleno = 1793 (0x701), region = 80  ;;  %s1431_s29 = smov (!%p486_p9), 124  }
  0x16   : > { %s1759_s30 = smov (!%p486_p9), 120   ;;  %s1771_s27 = sld [smem:[#allocation11_spill]] (!%p486_p9) }
  0x17   : > { %s1433_s26 = smov (!%p486_p9), 108   ;;  %s1435_s21 = smov (!%p486_p9), 88  }
  0x18   : > { %s1436_s24 = smov (!%p486_p9), 68   ;;  %s1279_s20 = sshll.u32 (!%p486_p9), %s1547_s25, 3 }
  0x1a   : > { %s547_s18 = scalar_select %p546_p10, %s1547_s25, 2  ;;  %v1283_v2 = vld [vmem:[%s1742_s6] sm:$0xff]  ;;  %vm596_vm0 = vcmask 1041408   ;;  %vm619_vm1 = vcmask 130048   ;;  %vm592_vm4 = vcmask 31744   ;;  %vm712_vm5 = vcmask 162816  }
  0x1b   : > { %v591_v4 = vld [vmem:[%s1740_s4] sm:$0x3]  ;;  %673 = vmatpush.bf16.msra.mxu3 %v1283_v2  ;;  %vm733_vm6 = vcmask 64512   ;;  %vm816_vm7 = vcmask 1043456  }
  0x1c   : > { %s1576_s19 = sshll.u32 %s547_s18, 3  ;;  %v598_v6 = vsel %vm596_vm0, %v591_v4, 0  ;;  %v1282_v7 = vld [vmem:[%s1739_s3] sm:$0xff] }
  0x1d   : > { %s553_s28 = scalar_lea.vmem %s1770_s1, %s1576_s19  ;;  %s549_s17 = scalar_lea.vmem %s1771_s27, %s1576_s19  ;;  %v643_v8 = vld [vmem:[%s1743_s7] sm:$0x3]  ;;  %607 = vmatpush.bf16.msra.mxu0 %v598_v6  ;;  %630 = vmatpush.bf16.msra.mxu1 %v1282_v7 }
  0x1e   : > { %v1582_v0 = vld [vmem:[%s553_s28] sm:$0xff]  ;;  %v645_v9 = vsel %vm596_vm0, %v643_v8, 0  ;;  %s1434_s27 = smov 112   ;;  %s1772_s28 = smov 120  }
  0x1f   : > { %v565_v1 = vmul.f32 %v1582_v0, %v1582_v0  ;;  %v1595_v3 = vld [vmem:[%s549_s17] sm:$0xff]  ;;  %654 = vmatpush.bf16.msra.mxu2 %v645_v9  ;;  %s1438_s17 = smov 80  }
  0x20   : > { %v587_v5 = vpack.c.bf16 %v1595_v3, %v1595_v3  ;;  %v1284_v11 = vld [vmem:[%s1745_s9] sm:$0xff] }
  0x21   : > { %567 = vrot.lane.b32.xlu0 %v565_v1, %s1431_s29  ;;  %703 = vmatpush.bf16.msrb.mxu0 %v1284_v11  ;;  %v1336_v31 = vld [vmem:[%s1744_s8] ss:$0 sm:$0xff] }
  0x22   : > { %1259 = vmatmul.msk.bf16.vlgmr.msra.gmra.mxu3 %vm619_vm1, %v587_v5  ;;  %1253 = vmatmul.msk.bf16.vlgmr.msra.gmra.mxu1 %vm619_vm1, %v587_v5  ;;  %v1335_v37 = vld [vmem:[%s1741_s5] ss:$0 sm:$0xff] }
  0x23   : > { %v1337_v40 = vld [vmem:[%s1746_s10] ss:$0 sm:$0xff] }
  0x29   : > { %571 = vrot.lane.b32.xlu0 %v565_v1, %s1759_s30  ;;  %s1437_s30 = smov 96  }
  0x93   : > { %v568_v10 = vpop.permute.xlu0 %567 }
  0x94   : > { %v570_v12 = vadd.f32 %v568_v10, %v565_v1 }
  0x9b   : > { %v572_v13 = vpop.permute.xlu0 %571 }
  0x9c   : > { %v574_v14 = vadd.f32 %v572_v13, %v570_v12 }
  0x9e   : > { %1341 = vrsqrt.f32 %v574_v14  ;;  %vm582_vm2 = vcmp.eq.f32.partialorder %v574_v14, inf  ;;  %v585_v22 = vand.u32 2147483648, %v574_v14  ;;  %vm584_vm3 = vcmp.eq.f32.partialorder %v574_v14, 0.0 }
  0x9f   : > { %v632_v28 = vpop.f32.mrf.mxu1 }
  0xa4   : > { %v1342_v15 = vpop.eup %1341 }
  0xa5   : > { %v576_v16 = vmul.f32 %v1342_v15, %v574_v14  ;;  %v675_v26 = vpop.f32.mrf.mxu3 }
  0xa7   : > { %v577_v17 = vmul.f32 %v1342_v15, %v576_v16  ;;  %v634_v29 = vpop.f32.mrf.mxu1 }
  0xa9   : > { %v578_v18 = vmul.f32 0.5, %v577_v17 }
  0xab   : > { %v579_v19 = vsub.f32 1.5, %v578_v18 }
  0xad   : > { %v580_v20 = vmul.f32 %v1342_v15, %v579_v19  ;;  %v677_v27 = vpop.f32.mrf.mxu3 }
  0xaf   : > { %v581_v21 = vmul.f32 %v580_v20, %v574_v14 }
  0xb1   : > { %v583_v23 = vsel %vm582_vm2, %v574_v14, %v581_v21 }
  0xb2   : > { %v586_v24 = vsel %vm584_vm3, %v585_v22, %v583_v23 }
  0xb3   : > { %v588_v25 = vpack.c.bf16 %v586_v24, %v586_v24 }
  0xb5   : > { %1248 = vmatmul.msk.bf16.vlgmr.msra.gmra.mxu0 %vm592_vm4, %v588_v25  ;;  %1254 = vmatmul.msk.bf16.vlgmr.msra.gmra.mxu2 %vm592_vm4, %v588_v25 }
  0xc5   : > { %1264 = vmatmul.msk.bf16.vlgmr.msrb.gmra.mxu0 %vm619_vm1, %v587_v5 }
 0x132   : > { %v609_v30 = vpop.f32.mrf.mxu0 }
 0x133   : > { %v633_v36 = vadd.f32 %v632_v28, %v609_v30 }
 0x135   : > { %v640_v42 = vadd.f32 %v1335_v37, %v633_v36 }
 0x137   : > { %v709_v45 = vpack.c.bf16 %v640_v42, %v640_v42 }
 0x138   : > { %v656_v32 = vpop.f32.mrf.mxu2 }
 0x139   : > { %v676_v33 = vadd.f32 %v675_v26, %v656_v32 }
 0x13a   : > { %v611_v34 = vpop.f32.mrf.mxu0 }
 0x13b   : > { %v683_v35 = vadd.f32 %v1336_v31, %v676_v33 }
 0x13d   : > { %v1622_v38 = vpack.c.bf16 %v683_v35, %v683_v35 }
 0x13f   : > { %763 = vrot.lane.b32.xlu1 %v1622_v38, %s1433_s26  ;;  %v717_v39 = vsel %vm712_vm5, %v1622_v38, 0 }
 0x140   : > { %v658_v41 = vpop.f32.mrf.mxu2  ;;  %726 = vmatpush.bf16.xpose.msrb.mxu1 %v717_v39 }
 0x142   : > { %v705_v43 = vpop.f32.mrf.mxu0 }
 0x143   : > { %v706_v44 = vadd.f32 %v1337_v40, %v705_v43 }
 0x145   : > { %v1630_v46 = vpack.c.bf16 %v706_v44, %v706_v44 }
 0x147   : > { %811 = vrot.lane.b32.xlu0 %v1630_v46, %s1434_s27  ;;  %760 = vrot.lane.b32.xlu1 %v709_v45, %s1433_s26  ;;  %v837_v10 = vsel %vm816_vm7, %v1630_v46, 0  ;;  %s557_s26 = scalar_lea.vmem %s1738_s2, %s1576_s19 }
 0x148   : > { %1265 = vmatmul.msk.bf16.vlgmr.msrb.gmra.mxu1 %vm712_vm5, %v709_v45  ;;  %846 = vmatpush.bf16.msra.mxu0 %v837_v10 }
 0x14a   : > { %v707_v47 = vpop.f32.mrf.mxu0 }
 0x14f   : > { %852 = vrot.lane.b32.xlu0 %v709_v45, %s1435_s21  ;;  %854 = vrot.lane.b32.xlu1 %v1622_v38, %s1435_s21 }
 0x157   : > { %923 = vrot.lane.b32.xlu1 %v709_v45, %s1436_s24 }
 0x1b1   : > { %v764_v48 = vpop.permute.xlu1 %763 }
 0x1b2   : > { %v769_v49 = vsel %vm712_vm5, %v764_v48, 0 }
 0x1b3   : > { %778 = vmatpush.bf16.xpose.msrb.mxu2 %v769_v49 }
 0x1b9   : > { %v761_v50 = vpop.permute.xlu1 %760  ;;  %v1639_v51 = vpop.permute.xlu0 %811 }
 0x1ba   : > { %1266 = vmatmul.msk.bf16.vlgmr.msrb.gmra.mxu2 %vm712_vm5, %v761_v50  ;;  %v818_v35 = vsel %vm816_vm7, %v1639_v51, 0 }
 0x1bb   : > { %827 = vmatpush.bf16.msrb.mxu3 %v818_v35 }
 0x1c1   : > { %v855_v52 = vpop.permute.xlu1 %854  ;;  %v853_v57 = vpop.permute.xlu0 %852 }
 0x1c2   : > { %v860_v53 = vsel %vm712_vm5, %v855_v52, 0 }
 0x1c3   : > { %869 = vmatpush.bf16.xpose.msra.mxu1 %v860_v53 }
 0x1c5   : > { %v728_v54 = vpop.f32.mrf.mxu1 }
 0x1c6   : > { %v732_v55 = vmul.f32 0.2236068, %v728_v54 }
 0x1c8   : > { %v734_v56 = vsel %vm733_vm6, %v732_v55, -inf }
 0x1c9   : > { %735 = vmax.xlane.f32.xlu0 %v734_v56  ;;  %v1650_v13 = vpop.permute.xlu1 %923 }
 0x1ca   : > { %1269 = vmatmul.msk.bf16.vlgmr.msra.gmra.mxu1 %vm712_vm5, %v853_v57 }
 0x1cd   : > { %v730_v58 = vpop.f32.mrf.mxu1 }
 0x23c   : > { %v736_v59 = vpop.xlane.xlu0 %735 }
 0x23d   : > { %v737_v60 = vsub.f32 %v732_v55, %v736_v59  ;;  %v780_v61 = vpop.f32.mrf.mxu2 }
 0x23e   : > { %v784_v62 = vmul.f32 0.2236068, %v780_v61 }
 0x23f   : > { %v738_v63 = vmul.f32 1.442695, %v737_v60 }
 0x240   : > { %v785_v1 = vsel %vm733_vm6, %v784_v62, -inf }
 0x241   : > { %1343 = vpow2.f32 %v738_v63  ;;  %786 = vmax.xlane.f32.xlu2 %v785_v1 }
 0x245   : > { %v782_v2 = vpop.f32.mrf.mxu2 }
 0x247   : > { %v1344_v4 = vpop.eup %1343  ;;  %v871_v5 = vpop.f32.mrf.mxu1 }
 0x248   : > { %v875_v6 = vmul.f32 0.2236068, %v871_v5  ;;  %v740_v7 = vsel %vm733_vm6, %v1344_v4, 0.0 }
 0x249   : > { %741 = vadd.xlane.f32.xlu0 %v740_v7 }
 0x24a   : > { %v876_v8 = vsel %vm733_vm6, %v875_v6, -inf }
 0x24b   : > { %877 = vmax.xlane.f32.xlu1 %v876_v8 }
 0x24f   : > { %v873_v9 = vpop.f32.mrf.mxu1 }
 0x25d   : > { %901 = vrot.lane.b32.xlu0 %v1630_v46, %s1437_s30 }
 0x2b4   : > { %v787_v11 = vpop.xlane.xlu2 %786 }
 0x2b5   : > { %v788_v12 = vsub.f32 %v784_v62, %v787_v11 }
 0x2b7   : > { %v789_v14 = vmul.f32 1.442695, %v788_v12 }
 0x2b9   : > { %1345 = vpow2.f32 %v789_v14 }
 0x2bc   : > { %v742_v15 = vpop.xlane.xlu0 %741 }
 0x2bd   : > { %1347 = vrcp.f32 %v742_v15  ;;  %v754_v24 = vand.u32 2147483648, %v742_v15  ;;  %v752_v26 = vand.u32 2147483647, %v742_v15  ;;  %vm748_vm9 = vweird.f32 %v742_v15 }
 0x2be   : > { %v878_v16 = vpop.xlane.xlu1 %877 }
 0x2bf   : > { %v1346_v17 = vpop.eup %1345  ;;  %v879_v18 = vsub.f32 %v875_v6, %v878_v16  ;;  %v755_v30 = vor.u32 1.1754944e-38, %v754_v24  ;;  %vm753_vm11 = vcmp.eq.f32.partialorder %v752_v26, 8.507059e+37 }
 0x2c0   : > { %v791_v19 = vsel %vm733_vm6, %v1346_v17, 0.0 }
 0x2c1   : > { %v880_v20 = vmul.f32 1.442695, %v879_v18  ;;  %792 = vadd.xlane.f32.xlu2 %v791_v19 }
 0x2c3   : > { %v1348_v21 = vpop.eup %1347  ;;  %1349 = vpow2.f32 %v880_v20 }
 0x2c4   : > { %v744_v22 = vmul.f32 %v1348_v21, %v742_v15  ;;  %vm749_vm8 = vweird.f32 %v1348_v21 }
 0x2c5   : > { %vm750_vm10 = vmor %vm748_vm9, %vm749_vm8 }
 0x2c6   : > { %v745_v23 = vsub.f32 1.0, %v744_v22 }
 0x2c8   : > { %v746_v25 = vmul.f32 %v1348_v21, %v745_v23  ;;  %v1673_v23 = vld [vmem:[%s557_s26] sm:$0xff] }
 0x2c9   : > { %v1350_v27 = vpop.eup %1349 }
 0x2ca   : > { %v747_v28 = vadd.f32 %v1348_v21, %v746_v25  ;;  %v882_v29 = vsel %vm733_vm6, %v1350_v27, 0.0 }
 0x2cb   : > { %883 = vadd.xlane.f32.xlu1 %v882_v29 }
 0x2cc   : > { %v751_v31 = vsel %vm750_vm10, %v1348_v21, %v747_v28 }
 0x2cd   : > { %v756_v32 = vsel %vm753_vm11, %v755_v30, %v751_v31 }
 0x2ce   : > { %v757_v33 = vmul.f32 %v1344_v4, %v756_v32 }
 0x2cf   : > { %v902_v36 = vpop.permute.xlu0 %901 }
 0x2d0   : > { %v758_v34 = vpack.c.bf16 %v757_v33, %v757_v33  ;;  %v907_v37 = vsel %vm816_vm7, %v902_v36, 0 }
 0x2d1   : > { %916 = vmatpush.bf16.msra.mxu2 %v907_v37 }
 0x2d2   : > { %1268 = vmatmul.msk.bf16.vlgmr.msra.gmra.mxu0 %vm733_vm6, %v758_v34 }
 0x2d9   : > { %925 = vrot.lane.b32.xlu2 %v1622_v38, %s1436_s24  ;;  %s561_s24 = scalar_lea.vmem %s1752_s16, %s1576_s19  ;;  %s537_s19 = sand.u32 1, %s1421_s22  }
 0x2da   : > { %s1243_s18 = sshll.u32 %s537_s19, 3  ;;  %s1110_s26 = scalar_lea.sflag [#allocation3], %s537_s19 }
 0x2db   : > { %s539_s30 = scalar_lea.vmem [#allocation2], %s1243_s18  ;;  %s1387_s18 = scalar_lea.hbm %s1751_s15, 24 }
 0x2dc   : > { %s1126_s25 = sshll.u32 %s539_s30, 4  ;;  %s1127_s25 = int_to_ptr.vmem [resolvable:$true] %s1126_s25 }
 0x2e4   : > { %972 = vrot.lane.b32.xlu1 %v1630_v46, %s1438_s17 }
 0x334   : > { %v793_v39 = vpop.xlane.xlu2 %792 }
 0x335   : > { %1351 = vrcp.f32 %v793_v39  ;;  %v805_v45 = vand.u32 2147483648, %v793_v39  ;;  %v803_v47 = vand.u32 2147483647, %v793_v39  ;;  %vm799_vm13 = vweird.f32 %v793_v39 }
 0x337   : > { %v806_v49 = vor.u32 1.1754944e-38, %v805_v45  ;;  %vm804_vm15 = vcmp.eq.f32.partialorder %v803_v47, 8.507059e+37 }
 0x33b   : > { %v1352_v40 = vpop.eup %1351 }
 0x33c   : > { %v795_v41 = vmul.f32 %v1352_v40, %v793_v39  ;;  %v926_v42 = vpop.permute.xlu2 %925  ;;  %vm800_vm12 = vweird.f32 %v1352_v40 }
 0x33d   : > { %v931_v43 = vsel %vm712_vm5, %v926_v42, 0  ;;  %vm801_vm14 = vmor %vm799_vm13, %vm800_vm12  ;;  %vm1107_vm13 = vcmask 97280  }
 0x33e   : > { %v796_v44 = vsub.f32 1.0, %v795_v41  ;;  %940 = vmatpush.bf16.xpose.msra.mxu3 %v931_v43  ;;  %v884_v38 = vpop.xlane.xlu1 %883 }
 0x33f   : > { %1353 = vrcp.f32 %v884_v38  ;;  %v896_v57 = vand.u32 2147483648, %v884_v38  ;;  %v894_v59 = vand.u32 2147483647, %v884_v38  ;;  %vm890_vm2 = vweird.f32 %v884_v38 }
 0x340   : > { %v797_v46 = vmul.f32 %v1352_v40, %v796_v44 }
 0x341   : > { %v897_v61 = vor.u32 1.1754944e-38, %v896_v57  ;;  %vm895_vm8 = vcmp.eq.f32.partialorder %v894_v59, 8.507059e+37 }
 0x342   : > { %v798_v48 = vadd.f32 %v1352_v40, %v797_v46 }
 0x344   : > { %v802_v50 = vsel %vm801_vm14, %v1352_v40, %v798_v48 }
 0x345   : > { %v1354_v51 = vpop.eup %1353  ;;  %v807_v52 = vsel %vm804_vm15, %v806_v49, %v802_v50 }
 0x346   : > { %v886_v53 = vmul.f32 %v1354_v51, %v884_v38  ;;  %v808_v54 = vmul.f32 %v1346_v17, %v807_v52  ;;  %vm891_vm0 = vweird.f32 %v1354_v51 }
 0x347   : > { %vm892_vm3 = vmor %vm890_vm2, %vm891_vm0 }
 0x348   : > { %v887_v55 = vsub.f32 1.0, %v886_v53  ;;  %v809_v56 = vpack.c.bf16 %v808_v54, %v808_v54 }
 0x34a   : > { %v888_v58 = vmul.f32 %v1354_v51, %v887_v55  ;;  %1267 = vmatmul.msk.bf16.vlgmr.msrb.gmra.mxu3 %vm733_vm6, %v809_v56 }
 0x34c   : > { %v889_v60 = vadd.f32 %v1354_v51, %v888_v58 }
 0x34e   : > { %v893_v62 = vsel %vm892_vm3, %v1354_v51, %v889_v60  ;;  %v1439_v51 = vmov 4.0  }
 0x34f   : > { %v898_v63 = vsel %vm895_vm8, %v897_v61, %v893_v62  ;;  %v848_v1 = vpop.f32.mrf.mxu0 }
 0x350   : > { %v899_v2 = vmul.f32 %v1350_v27, %v898_v63 }
 0x352   : > { %v900_v4 = vpack.c.bf16 %v899_v2, %v899_v2 }
 0x354   : > { %1270 = vmatmul.msk.bf16.vlgmr.msra.gmra.mxu2 %vm733_vm6, %v900_v4 }
 0x356   : > { %v973_v5 = vpop.permute.xlu1 %972 }
 0x357   : > { %v850_v6 = vpop.f32.mrf.mxu0  ;;  %v978_v7 = vsel %vm816_vm7, %v973_v5, 0 }
 0x358   : > { %987 = vmatpush.bf16.msrb.mxu0 %v978_v7  ;;  %v1025_v6 = vmul.f32 0.5, %v1673_v23  ;;  %v1338_v7 = vld [vmem:[%s1748_s12] ss:$0 sm:$0xff] }
 0x35a   : > { %1271 = vmatmul.msk.bf16.vlgmr.msra.gmra.mxu3 %vm712_vm5, %v1650_v13 }
 0x3cd   : > { %v829_v8 = vpop.f32.mrf.mxu3 }
 0x3ce   : > { %v849_v10 = vadd.f32 %v848_v1, %v829_v8 }
 0x3d5   : > { %v831_v9 = vpop.f32.mrf.mxu3 }
 0x3d7   : > { %v918_v11 = vpop.f32.mrf.mxu2 }
 0x3d8   : > { %v922_v12 = vadd.f32 %v918_v11, %v849_v10  ;;  %v1026_v10 = vadd.f32 %v1025_v6, %v1595_v3 }
 0x3dd   : > { %v942_v14 = vpop.f32.mrf.mxu3 }
 0x3de   : > { %v946_v15 = vmul.f32 0.2236068, %v942_v14 }
 0x3df   : > { %v920_v16 = vpop.f32.mrf.mxu2 }
 0x3e0   : > { %v947_v17 = vsel %vm733_vm6, %v946_v15, -inf  ;;  %v1440_v16 = vmov 16.0  }
 0x3e1   : > { %948 = vmax.xlane.f32.xlu2 %v947_v17 }
 0x3e5   : > { %v944_v18 = vpop.f32.mrf.mxu3 }
 0x454   : > { %v949_v19 = vpop.xlane.xlu2 %948 }
 0x455   : > { %v950_v20 = vsub.f32 %v946_v15, %v949_v19 }
 0x457   : > { %v951_v21 = vmul.f32 1.442695, %v950_v20 }
 0x459   : > { %1355 = vpow2.f32 %v951_v21 }
 0x45f   : > { %v1356_v22 = vpop.eup %1355 }
 0x460   : > { %v953_v13 = vsel %vm733_vm6, %v1356_v22, 0.0 }
 0x461   : > { %954 = vadd.xlane.f32.xlu2 %v953_v13 }
 0x479   : > { %1070 = vrot.lane.b32.xlu2 %v1673_v23, %s1434_s27 }
 0x4d4   : > { %v955_v24 = vpop.xlane.xlu2 %954 }
 0x4d5   : > { %1357 = vrcp.f32 %v955_v24  ;;  %v967_v30 = vand.u32 2147483648, %v955_v24  ;;  %v965_v33 = vand.u32 2147483647, %v955_v24  ;;  %vm961_vm7 = vweird.f32 %v955_v24 }
 0x4d6   : > { %1359 = vrcp.f32 %v1439_v51 }
 0x4d7   : > { %v968_v35 = vor.u32 1.1754944e-38, %v967_v30  ;;  %vm966_vm10 = vcmp.eq.f32.partialorder %v965_v33, 8.507059e+37 }
 0x4db   : > { %v1358_v25 = vpop.eup %1357 }
 0x4dc   : > { %v957_v26 = vmul.f32 %v1358_v25, %v955_v24  ;;  %v1071_v27 = vpop.permute.xlu2 %1070  ;;  %vm962_vm5 = vweird.f32 %v1358_v25  ;;  %v1360_v52 = vpop.eup %1359 }
 0x4dd   : > { %v1073_v28 = vadd.f32 %v1071_v27, %v1582_v0  ;;  %vm963_vm9 = vmor %vm961_vm7, %vm962_vm5  ;;  %v1285_v0 = vld [vmem:[%s1747_s11] sm:$0xff]  ;;  %v1089_v53 = vmul.f32 4.0, %v1360_v52 }
 0x4de   : > { %v958_v29 = vsub.f32 1.0, %v957_v26  ;;  %1018 = vmatpush.bf16.msrb.mxu1 %v1285_v0 }
 0x4df   : > { %v1074_v31 = vmul.f32 %v1073_v28, %v1073_v28  ;;  %v1090_v54 = vsub.f32 1.0, %v1089_v53 }
 0x4e0   : > { %v959_v32 = vmul.f32 %v1358_v25, %v958_v29 }
 0x4e1   : > { %1076 = vrot.lane.b32.xlu1 %v1074_v31, %s1431_s29  ;;  %1080 = vrot.lane.b32.xlu2 %v1074_v31, %s1772_s28  ;;  %v1091_v55 = vmul.f32 %v1360_v52, %v1090_v54  ;;  %s1124_s29 = scalar_lea.hbm %s1751_s15, %s1279_s20 }
 0x4e2   : > { %v960_v34 = vadd.f32 %v1358_v25, %v959_v32  ;;  %s1128_s17 = sshll.u32 %s1124_s29, 4  ;;  %s1129_s17 = int_to_ptr.hbm [resolvable:$true] %s1128_s17 }
 0x4e3   : > { %v1092_v56 = vadd.f32 %v1360_v52, %v1091_v55  ;;  %s1381_s28 = sshra.s32 %s1129_s17, 4  ;;  %s1382_s28 = int_to_ptr.hbm [resolvable:$true] %s1381_s28 }
 0x4e4   : > { %v964_v36 = vsel %vm963_vm9, %v1358_v25, %v960_v34  ;;  %s1383_s20 = scalar_lea.hbm %s1382_s28, 8  ;;  %p1388_p0 = scmp.lt.s32.totalorder %s1382_s28, %s1751_s15 }
 0x4e5   : > { %v969_v37 = vsel %vm966_vm10, %v968_v35, %v964_v36  ;;  %v1339_v35 = vld [vmem:[%s1749_s13] ss:$0 sm:$0xff]  ;;  %p1384_p11 = scmp.ne.s32.totalorder %s1382_s28, %s1383_s20  ;;  %p1389_p1 = scmp.lt.s32.totalorder %s1387_s18, %s1383_s20 }
 0x4e6   : > { %v970_v39 = vmul.f32 %v1356_v22, %v969_v37 }
 0x4e7   : > { %p1385_p12 = pnand %p1384_p11, %p1564_p5  ;;  %p1390_p2 = por %p1389_p1, %p1388_p0 }
 0x4e8   : > { %v971_v40 = vpack.c.bf16 %v970_v39, %v970_v39  ;;  %v1340_v39 = vld [vmem:[%s1750_s14] ss:$0 sm:$0xff] }
 0x4e9   : > { %p1386_p13 = pneg %p1385_p12 }
 0x4ea   : > { %1272 = vmatmul.msk.bf16.vlgmr.msrb.gmra.mxu0 %vm733_vm6, %v971_v40  ;;  %vm1093_vm6 = vweird.f32 %v1360_v52 }
 0x4eb   : > { %v1094_v57 = vsel %vm1093_vm6, %v1360_v52, %v1092_v56  ;;  %p1391_p3 = pnand %p1390_p2, %p1386_p13 }
 0x53b   : > { %v1081_v42 = vpop.permute.xlu2 %1080 }
 0x553   : > { %v1077_v41 = vpop.permute.xlu1 %1076 }
 0x554   : > { %v1079_v43 = vadd.f32 %v1077_v41, %v1074_v31 }
 0x556   : > { %v1083_v44 = vadd.f32 %v1081_v42, %v1079_v43 }
 0x558   : > { %v1084_v38 = vmax.f32 %v1083_v44, 1e-08 }
 0x55a   : > { %v1085_v45 = vsel %vm592_vm4, %v1084_v38, 0.0 }
 0x55b   : > { %1086 = vadd.xlane.f32.xlu2 %v1085_v45 }
 0x567   : > { %v989_v46 = vpop.f32.mrf.mxu0 }
 0x568   : > { %v993_v47 = vadd.f32 %v989_v46, %v922_v12 }
 0x56a   : > { %v994_v48 = vmul.f32 0.25, %v993_v47 }
 0x56c   : > { %v995_v49 = vpack.c.bf16 %v994_v48, %v994_v48 }
 0x56e   : > { %1277 = vmatmul.msk.bf16.vlgmr.msrb.gmra.mxu1 %vm619_vm1, %v995_v49 }
 0x56f   : > { %v991_v50 = vpop.f32.mrf.mxu0 }
 0x5ce   : > { %v1087_v58 = vpop.xlane.xlu2 %1086 }
 0x5cf   : > { %v1095_v59 = vmul.f32 %v1094_v57, %v1087_v58 }
 0x5d1   : > { %1361 = vrsqrt.f32 %v1095_v59  ;;  %vm1102_vm4 = vweird.f32 %v1095_v59 }
 0x5d2   : > { %1363 = vrcp.f32 %v1440_v16 }
 0x5d7   : > { %v1362_v60 = vpop.eup %1361 }
 0x5d8   : > { %v1097_v61 = vmul.f32 %v1362_v60, %v1095_v59  ;;  %vm1103_vm11 = vweird.f32 %v1362_v60  ;;  %v1364_v17 = vpop.eup %1363 }
 0x5d9   : > { %vm1104_vm12 = vmor %vm1102_vm4, %vm1103_vm11  ;;  %v1033_v18 = vmul.f32 16.0, %v1364_v17  ;;  %vm1037_vm14 = vweird.f32 %v1364_v17 }
 0x5da   : > { %v1098_v62 = vmul.f32 %v1362_v60, %v1097_v61 }
 0x5db   : > { %v1034_v19 = vsub.f32 1.0, %v1033_v18 }
 0x5dc   : > { %v1099_v63 = vmul.f32 0.5, %v1098_v62 }
 0x5dd   : > { %v1035_v20 = vmul.f32 %v1364_v17, %v1034_v19 }
 0x5de   : > { %v1100_v1 = vsub.f32 1.5, %v1099_v63 }
 0x5df   : > { %v1036_v21 = vadd.f32 %v1364_v17, %v1035_v20 }
 0x5e0   : > { %v1101_v2 = vmul.f32 %v1362_v60, %v1100_v1 }
 0x5e1   : > { %v1038_v22 = vsel %vm1037_vm14, %v1364_v17, %v1036_v21 }
 0x5e2   : > { %v1105_v4 = vsel %vm1104_vm12, %v1362_v60, %v1101_v2 }
 0x5e3   : > { %v1106_v5 = vmul.f32 %v1105_v4, %v1073_v28 }
 0x5e5   : > { %1108 = vst.msk [vmem:[%s561_s24] sm:$0xff] %vm1107_vm13, %v1106_v5 }
 0x5eb   : > { %v1020_v8 = vpop.f32.mrf.mxu1 }
 0x5ec   : > { %v1021_v9 = vadd.f32 %v1338_v7, %v1020_v8 }
 0x5ee   : > { %v1027_v11 = vmul.f32 0.5, %v1021_v9 }
 0x5f0   : > { %v1028_v12 = vadd.f32 %v1027_v11, %v1026_v10 }
 0x5f2   : > { %v1029_v14 = vsel %vm619_vm1, %v1028_v12, 0.0 }
 0x5f3   : > { %v1022_v15 = vpop.f32.mrf.mxu1  ;;  %1030 = vadd.xlane.f32.xlu0 %v1029_v14 }
 0x666   : > { %v1031_v13 = vpop.xlane.xlu0 %1030 }
 0x667   : > { %v1039_v23 = vmul.f32 %v1038_v22, %v1031_v13 }
 0x669   : > { %v1040_v24 = vsub.f32 %v1028_v12, %v1039_v23 }
 0x66b   : > { %v1041_v3 = vmul.f32 %v1040_v24, %v1040_v24 }
 0x66d   : > { %v1042_v25 = vsel %vm619_vm1, %v1041_v3, 0.0 }
 0x66e   : > { %1043 = vadd.xlane.f32.xlu1 %v1042_v25 }
 0x6e1   : > { %v1044_v26 = vpop.xlane.xlu1 %1043 }
 0x6e2   : > { %v1045_v27 = vmul.f32 %v1044_v26, %v1038_v22 }
 0x6e4   : > { %v1046_v28 = vadd.f32 1e-05, %v1045_v27 }
 0x6e6   : > { %1365 = vrsqrt.f32 %v1046_v28  ;;  %vm1053_vm0 = vweird.f32 %v1046_v28 }
 0x6ec   : > { %v1366_v29 = vpop.eup %1365 }
 0x6ed   : > { %v1048_v30 = vmul.f32 %v1366_v29, %v1046_v28  ;;  %vm1054_vm15 = vweird.f32 %v1366_v29 }
 0x6ee   : > { %vm1055_vm2 = vmor %vm1053_vm0, %vm1054_vm15 }
 0x6ef   : > { %v1049_v31 = vmul.f32 %v1366_v29, %v1048_v30 }
 0x6f1   : > { %v1050_v32 = vmul.f32 0.5, %v1049_v31 }
 0x6f3   : > { %v1051_v33 = vsub.f32 1.5, %v1050_v32 }
 0x6f5   : > { %v1052_v34 = vmul.f32 %v1366_v29, %v1051_v33 }
 0x6f7   : > { %v1056_v36 = vsel %vm1055_vm2, %v1366_v29, %v1052_v34 }
 0x6f8   : > { %v1057_v37 = vmul.f32 %v1056_v36, %v1040_v24 }
 0x6fa   : > { %v1062_v40 = vmul.f32 %v1339_v35, %v1057_v37 }
 0x6fc   : > { %v1067_v0 = vadd.f32 %v1340_v39, %v1062_v40 }
 0x6fe   : > { %1068 = vst.msk [vmem:[%s539_s30] sm:$0xff] %vm619_vm1, %v1067_v0 }
 0x6ff   : > { %1394 = shalt.err (!%p1391_p3)
}
 0x700   : > { %1286 = dma.vmem_to_hbm [thread:$0]  (%p1564_p5), %s1127_s25, 128, %s1129_s17, %s1110_s26  }
 0x701 PF: > { %s1773_s19 = sld [smem:[#allocation7_spill]] }
 0x702   : > { %s1774_s24 = sld [smem:[#allocation5_spill]] }
 0x707   : > { %p1292_p4 = scmp.ge.s32.totalorder %s1773_s19, 2 }
 0x708   : > { %s1143_s1 = sand.u32 1, %s1774_s24  }
 0x709   : > { %p1289_p7 = pnand %p1292_p4, %p1568_p6  ;;  %s1144_s23 = scalar_lea.sflag [#allocation3], %s1143_s1 }
 0x70b   : > { %p1290_p8 = pneg %p1289_p7 }
 0x70d   : > { %1412 = dma.done.wait (%p1290_p8), %s1144_s23, 128  }
 0x70e   : > { %1414 = vsyncadd (%p1290_p8), %s1144_s23, 4294967168  ;;  %s1776_s24 = sld [smem:[#allocation8_spill]]  ;;  %s1779_s21 = smov %s1421_s22 }
 0x70f   : > { %s1777_s28 = sld [smem:[#allocation6_spill]] }
 0x710   : > { %s1778_s23 = sld [smem:[#allocation9_spill]] }
 0x714   : > { %p27_p9 = scmp.ge.s32.totalorder %s1776_s24, 5  }
 0x715   : > { %s1780_s22 = smov %s1777_s28 }
 0x716   :  { %29 = sbr.rel (!%p27_p9) target bundleno = 6 (0x6), region = 133 }
 0x71b   :  { %1157 = vsyncpa [#allocation3], 1 }
 0x71c   :  { %1159 = vsyncpa [#allocation3 + $0x1], 1 }

// kernel: multi_attentive_gvp_forward.2
= control target key start
LH: loop header
LB: loop body
LE: loop exit
PB: predicated region body
PF: predicated region fallthrough
CT: control target
= control target key end

     0   :  { %vm192_vm0 = vcmask 1044480   ;;  %vm164_vm1 = vcmask 80896   ;;  %vm442_vm2 = vcmask 1043456   ;;  %vm432_vm3 = vcmask 326656   ;;  %s2629_s28 = smov 20   ;;  %s3670_s2 = inlined_call_operand.vmem [shape: bf16[10,10], index: 2, kind: input, shape index: {}]   ;;  %s3671_s1 = inlined_call_operand.vmem [shape: bf16[3,48,10], index: 1, kind: input, shape index: {}]   ;;  %s3672_s6 = inlined_call_operand.vmem [shape: bf16[10,4], index: 6, kind: input, shape index: {}]   ;;  %s3673_s3 = inlined_call_operand.vmem [shape: bf16[40,16], index: 3, kind: input, shape index: {}]   ;;  %s3674_s0 = inlined_call_operand.vmem [shape: bf16[48,40], index: 0, kind: input, shape index: {}]   ;;  %s3675_s4 = inlined_call_operand.vmem [shape: bf16[10,16], index: 4, kind: input, shape index: {}]   ;;  %s3676_s5 = inlined_call_operand.vmem [shape: f32[1,16], index: 5, kind: input, shape index: {}]   ;;  %s3677_s7 = inlined_call_operand.vmem [shape: bf16[16,4], index: 7, kind: input, shape index: {}]   ;;  %s3678_s8 = inlined_call_operand.vmem [shape: f32[1,4], index: 8, kind: input, shape index: {}]   ;;  %s3679_s10 = inlined_call_operand.vmem [shape: bf16[16,16], index: 10, kind: input, shape index: {}]   ;;  %s3680_s9 = inlined_call_operand.vmem [shape: bf16[4,4], index: 9, kind: input, shape index: {}]   ;;  %s3681_s11 = inlined_call_operand.vmem [shape: bf16[4,16], index: 11, kind: input, shape index: {}]   ;;  %s3682_s12 = inlined_call_operand.vmem [shape: f32[1,16], index: 12, kind: input, shape index: {}]   ;;  %s3683_s14 = inlined_call_operand.vmem [shape: bf16[16,4], index: 14, kind: input, shape index: {}]   ;;  %s3684_s13 = inlined_call_operand.vmem [shape: bf16[4,4], index: 13, kind: input, shape index: {}]   ;;  %s3685_s17 = inlined_call_operand.vmem [shape: bf16[16,16], index: 17, kind: input, shape index: {}]   ;;  %s3686_s15 = inlined_call_operand.vmem [shape: f32[1,4], index: 15, kind: input, shape index: {}]   ;;  %s3687_s16 = inlined_call_operand.vmem [shape: bf16[4,4], index: 16, kind: input, shape index: {}]   ;;  %s3688_s18 = inlined_call_operand.vmem [shape: bf16[4,16], index: 18, kind: input, shape index: {}]   ;;  %s3689_s20 = inlined_call_operand.vmem [shape: bf16[4,4], index: 20, kind: input, shape index: {}]   ;;  %s3690_s19 = inlined_call_operand.vmem [shape: f32[1,16], index: 19, kind: input, shape index: {}]   ;;  %s3691_s21 = inlined_call_operand.vmem [shape: bf16[16,4], index: 21, kind: input, shape index: {}]   ;;  %s3692_s22 = inlined_call_operand.vmem [shape: f32[1,4], index: 22, kind: input, shape index: {}]   ;;  %s3693_s23 = inlined_call_operand.vmem [shape: f32[48,28], index: 23, kind: output, shape index: {}]  }
   0x1   :  { %3700 = sst [smem:[#allocation2_spill]] %s3670_s2 }
   0x2   :  { %3701 = sst [smem:[#allocation3_spill]] %s3671_s1 }
   0x3   :  { %3702 = sst [smem:[#allocation4_spill]] %s3672_s6 }
   0x4   :  { %3703 = sst [smem:[#allocation5_spill]] %s3673_s3 }
   0x5   :  { %3704 = sst [smem:[#allocation6_spill]] %s3674_s0 }
   0x6   :  { %3705 = sst [smem:[#allocation7_spill]] %s3675_s4 }
   0x7   :  { %3706 = sst [smem:[#allocation8_spill]] %s3676_s5 }
   0x8   :  { %3707 = sst [smem:[#allocation9_spill]] %s3677_s7 }
   0x9   :  { %s3708_s24 = sld [smem:[#allocation2_spill]] }
   0xa   :  { %s3709_s26 = sld [smem:[#allocation3_spill]] }
   0xb   :  { %s3710_s29 = sld [smem:[#allocation4_spill]] }
   0xc   :  { %s3711_s30 = sld [smem:[#allocation5_spill]] }
   0xd   :  { %s3712_s27 = sld [smem:[#allocation6_spill]] }
   0xe   :  { %s3714_s1 = sld [smem:[#allocation9_spill]] }
   0xf   :  { %v2278_v0 = vld [vmem:[%s3708_s24] sm:$0xf]  ;;  %v2451_v1 = vld [vmem:[%s3708_s24] sm:$0x10] }
  0x10   :  { %v2279_v2 = vor.u32 %v2451_v1, %v2278_v0  ;;  %v2442_v4 = vld [vmem:[%s3709_s26] sm:$0xff]  ;;  %v2443_v5 = vld [vmem:[%s3709_s26 + $0x8] sm:$0xff]  ;;  %v2444_v6 = vld [vmem:[%s3709_s26 + $0x10] sm:$0xff] }
  0x11   :  { %v2445_v7 = vld [vmem:[%s3709_s26 + $0x18] sm:$0xff]  ;;  %v2446_v8 = vld [vmem:[%s3709_s26 + $0x20] sm:$0xff]  ;;  %v2447_v9 = vld [vmem:[%s3709_s26 + $0x28] sm:$0xff] }
  0x12   :  { %v194_v3 = vsel %vm192_vm0, %v2279_v2, 0  ;;  %v2448_v10 = vld [vmem:[%s3709_s26 + $0x30] sm:$0xff]  ;;  %v2449_v11 = vld [vmem:[%s3709_s26 + $0x38] sm:$0xff]  ;;  %v2450_v12 = vld [vmem:[%s3709_s26 + $0x40] sm:$0xff] }
  0x13   :  { %203 = vmatpush.bf16.msra.mxu0 %v194_v3  ;;  %v2321_v16 = vld [vmem:[%s3710_s29] sm:$0xf]  ;;  %v2455_v17 = vld [vmem:[%s3710_s29] sm:$0x10]  ;;  %v150_v27 = vld [vmem:[%s3711_s30 + $0x10] sm:$0xf] }
  0x14   :  { %v2322_v18 = vor.u32 %v2455_v17, %v2321_v16  ;;  %v426_v29 = vunpack.c.l.b16 %v150_v27  ;;  %v2453_v33 = vld [vmem:[%s3711_s30 + $0x8] sm:$0xff]  ;;  %v2452_v35 = vld [vmem:[%s3711_s30] sm:$0xff]  ;;  %s3713_s29 = sld [smem:[#allocation7_spill]] }
  0x15   :  { %v2439_v36 = vld [vmem:[%s3712_s27] sm:$0xff]  ;;  %v2440_v51 = vld [vmem:[%s3712_s27 + $0x8] sm:$0xff] }
  0x16   :  { %2280 = vmatmul.msk.bf16.vlgmr.msra.gmra.mxu0 %vm164_vm1, %v2442_v4  ;;  %v521_v19 = vsel %vm192_vm0, %v2322_v18, 0  ;;  %v429_v31 = vpack.c.b16 %v426_v29, %v426_v29 }
  0x17   :  { %2461 = vmatpush.bf16.msra.mxu3 %v521_v19 }
  0x18   :  { %v444_v32 = vsel %vm442_vm2, %v429_v31, 0 }
  0x19   :  { %451 = vmatpush.bf16.msra.mxu2 %v444_v32 }
  0x1a   :  { %v2291_v41 = vld [vmem:[%s3713_s29] sm:$0xf]  ;;  %v2454_v42 = vld [vmem:[%s3713_s29] sm:$0x10] }
  0x1b   :  { %v2292_v44 = vor.u32 %v2454_v42, %v2291_v41 }
  0x1d   :  { %452 = vmatpush.bf16.msra.mxu2 %v2453_v33  ;;  %v376_v47 = vsel %vm192_vm0, %v2292_v44, 0  ;;  %vm589_vm0 = vcmask 130048  }
  0x1e   :  { %385 = vmatpush.bf16.msra.mxu1 %v376_v47 }
  0x21   :  { %453 = vmatpush.bf16.msra.mxu2 %v2452_v35 }
  0x22   :  { %530 = vmatpush.bf16.msrb.mxu1 %v521_v19 }
  0x24   :  { %2316 = vmatmul.msk.bf16.vlgmr.msra.gmra.mxu2 %vm432_vm3, %v2439_v36 }
  0x26   :  { %2281 = vmatmul.msk.bf16.gmra.mxu0 %vm164_vm1, %v2443_v5 }
  0x34   :  { %2317 = vmatmul.msk.bf16.gmra.mxu2 %vm432_vm3, %v2440_v51 }
  0x36   :  { %2282 = vmatmul.msk.bf16.gmra.mxu0 %vm164_vm1, %v2444_v6 }
  0x46   :  { %2283 = vmatmul.msk.bf16.gmra.mxu0 %vm164_vm1, %v2445_v7 }
  0x56   :  { %2284 = vmatmul.msk.bf16.gmra.mxu0 %vm164_vm1, %v2446_v8 }
  0x66   :  { %2285 = vmatmul.msk.bf16.gmra.mxu0 %vm164_vm1, %v2447_v9 }
  0x76   :  { %2286 = vmatmul.msk.bf16.gmra.mxu0 %vm164_vm1, %v2448_v10  ;;  %v2441_v10 = vld [vmem:[%s3712_s27 + $0x10] sm:$0xff]  ;;  %s3715_s27 = sld [smem:[#allocation8_spill]] }
  0x77   :  { %2318 = vmatmul.msk.bf16.gmra.mxu2 %vm432_vm3, %v2441_v10 }
  0x86   :  { %2287 = vmatmul.msk.bf16.gmra.mxu0 %vm164_vm1, %v2449_v11 }
  0x93   :  { %v2793_v13 = vpop.f32.mrf.mxu0 }
  0x94   :  { %v250_v40 = vmul.f32 %v2793_v13, %v2793_v13 }
  0x96   :  { %2288 = vmatmul.msk.bf16.gmra.mxu0 %vm164_vm1, %v2450_v12 }
  0x9b   :  { %v2796_v14 = vpop.f32.mrf.mxu0 }
  0x9c   :  { %v251_v52 = vmul.f32 %v2796_v14, %v2796_v14 }
  0xa3   :  { %v2798_v15 = vpop.f32.mrf.mxu0 }
  0xa4   :  { %v252_v62 = vmul.f32 %v2798_v15, %v2798_v15 }
  0xab   :  { %v2807_v20 = vpop.f32.mrf.mxu0 }
  0xac   :  { %v253_v11 = vmul.f32 %v2807_v20, %v2807_v20 }
  0xb3   :  { %v2809_v21 = vpop.f32.mrf.mxu0 }
  0xb4   :  { %v254_v31 = vmul.f32 %v2809_v21, %v2809_v21 }
  0xbb   :  { %v2811_v22 = vpop.f32.mrf.mxu0 }
  0xc3   :  { %v220_v23 = vpop.f32.mrf.mxu0 }
  0xc4   :  { %v256_v39 = vmul.f32 %v220_v23, %v220_v23 }
  0xc6   :  { %v262_v45 = vadd.f32 %v256_v39, %v250_v40 }
  0xcb   :  { %v222_v24 = vpop.f32.mrf.mxu0 }
  0xcc   :  { %v482_v25 = vpack.c.bf16 %v222_v24, %v220_v23  ;;  %v257_v49 = vmul.f32 %v222_v24, %v222_v24 }
  0xce   :  { %2326 = vmatmul.msk.bf16.vlgmr.msra.gmra.mxu3 %vm164_vm1, %v482_v25  ;;  %v263_v54 = vadd.f32 %v257_v49, %v251_v52 }
  0xd3   :  { %v225_v26 = vpop.f32.mrf.mxu0 }
  0xd4   :  { %v258_v59 = vmul.f32 %v225_v26, %v225_v26 }
  0xd6   :  { %v264_v1 = vadd.f32 %v258_v59, %v252_v62 }
  0xdb   :  { %v227_v28 = vpop.f32.mrf.mxu0 }
  0xdc   :  { %v483_v30 = vpack.c.bf16 %v227_v28, %v225_v26  ;;  %v259_v7 = vmul.f32 %v227_v28, %v227_v28 }
  0xde   :  { %2327 = vmatmul.msk.bf16.gmra.mxu3 %vm164_vm1, %v483_v30  ;;  %v265_v18 = vadd.f32 %v259_v7, %v253_v11 }
  0xe3   :  { %v2821_v34 = vpop.f32.mrf.mxu0 }
  0xe4   :  { %v260_v26 = vmul.f32 %v2821_v34, %v2821_v34 }
  0xe6   :  { %v266_v35 = vadd.f32 %v260_v26, %v254_v31 }
  0xeb   :  { %v2829_v37 = vpop.f32.mrf.mxu0 }
  0xec   :  { %v484_v38 = vpack.c.bf16 %v2829_v37, %v2821_v34  ;;  %v261_v52 = vmul.f32 %v2829_v37, %v2829_v37 }
  0xee   :  { %2328 = vmatmul.msk.bf16.gmra.mxu3 %vm164_vm1, %v484_v38 }
  0xf3   :  { %v235_v43 = vpop.f32.mrf.mxu0 }
  0xf4   :  { %v268_v46 = vmul.f32 %v235_v43, %v235_v43 }
  0xf6   :  { %v274_v48 = vadd.f32 %v268_v46, %v262_v45 }
  0xf8   :  { %v2844_v50 = vmax.f32 %v274_v48, 1e-08 }
  0xfa   :  { %2472 = vrsqrt.f32 %v2844_v50  ;;  %vm293_vm4 = vcmp.eq.f32.partialorder %v2844_v50, inf  ;;  %v296_v41 = vand.u32 2147483648, %v2844_v50  ;;  %vm295_vm6 = vcmp.eq.f32.partialorder %v2844_v50, 0.0 }
  0xfb   :  { %v237_v53 = vpop.f32.mrf.mxu0 }
  0xfc   :  { %v269_v55 = vmul.f32 %v237_v53, %v237_v53  ;;  %v485_v56 = vpack.c.bf16 %v237_v53, %v235_v43 }
  0xfe   :  { %v275_v57 = vadd.f32 %v269_v55, %v263_v54  ;;  %2329 = vmatmul.msk.bf16.gmra.mxu3 %vm164_vm1, %v485_v56  ;;  %v255_v55 = vmul.f32 %v2811_v22, %v2811_v22 }
 0x100   :  { %v2473_v58 = vpop.eup %2472  ;;  %v281_v60 = vmax.f32 %v275_v57, 1e-08 }
 0x101   :  { %v287_v61 = vmul.f32 %v2473_v58, %v2844_v50 }
 0x102   :  { %2474 = vrsqrt.f32 %v281_v60  ;;  %vm305_vm5 = vcmp.eq.f32.partialorder %v281_v60, inf  ;;  %v308_v42 = vand.u32 2147483648, %v281_v60  ;;  %vm307_vm7 = vcmp.eq.f32.partialorder %v281_v60, 0.0 }
 0x103   :  { %v240_v63 = vpop.f32.mrf.mxu0  ;;  %v288_v0 = vmul.f32 %v2473_v58, %v287_v61 }
 0x104   :  { %v270_v2 = vmul.f32 %v240_v63, %v240_v63 }
 0x105   :  { %v289_v3 = vmul.f32 0.5, %v288_v0 }
 0x106   :  { %v276_v4 = vadd.f32 %v270_v2, %v264_v1 }
 0x107   :  { %v290_v5 = vsub.f32 1.5, %v289_v3 }
 0x108   :  { %v2475_v6 = vpop.eup %2474  ;;  %v2857_v8 = vmax.f32 %v276_v4, 1e-08 }
 0x109   :  { %v299_v9 = vmul.f32 %v2475_v6, %v281_v60  ;;  %v291_v16 = vmul.f32 %v2473_v58, %v290_v5  ;;  %v267_v58 = vadd.f32 %v261_v52, %v255_v55 }
 0x10a   :  { %2476 = vrsqrt.f32 %v2857_v8  ;;  %vm317_vm8 = vcmp.eq.f32.partialorder %v2857_v8, inf  ;;  %v320_v7 = vand.u32 2147483648, %v2857_v8  ;;  %vm319_vm10 = vcmp.eq.f32.partialorder %v2857_v8, 0.0 }
 0x10b   :  { %v242_v12 = vpop.f32.mrf.mxu0  ;;  %v300_v17 = vmul.f32 %v2475_v6, %v299_v9  ;;  %v292_v27 = vmul.f32 %v291_v16, %v2844_v50 }
 0x10c   :  { %v271_v19 = vmul.f32 %v242_v12, %v242_v12  ;;  %v486_v23 = vpack.c.bf16 %v242_v12, %v240_v63 }
 0x10d   :  { %v301_v24 = vmul.f32 0.5, %v300_v17  ;;  %v294_v38 = vsel %vm293_vm4, %v2844_v50, %v292_v27 }
 0x10e   :  { %v277_v25 = vadd.f32 %v271_v19, %v265_v18  ;;  %2330 = vmatmul.msk.bf16.gmra.mxu3 %vm164_vm1, %v486_v23  ;;  %v297_v46 = vsel %vm295_vm6, %v296_v41, %v294_v38  ;;  %v481_v41 = vpack.c.bf16 %v2811_v22, %v2809_v21  ;;  %v2914_v21 = vld [vmem:[%s3679_s10] sm:$0xff]  ;;  %s2630_s10 = smov 24  }
 0x10f   :  { %v302_v28 = vsub.f32 1.5, %v301_v24  ;;  %1151 = vmatpush.bf16.msrb.mxu0 %v2914_v21 }
 0x110   :  { %v2477_v29 = vpop.eup %2476  ;;  %v283_v30 = vmax.f32 %v277_v25, 1e-08 }
 0x111   :  { %v303_v32 = vmul.f32 %v2475_v6, %v302_v28  ;;  %v311_v33 = vmul.f32 %v2477_v29, %v2857_v8 }
 0x112   :  { %2478 = vrsqrt.f32 %v283_v30  ;;  %vm329_vm9 = vcmp.eq.f32.partialorder %v283_v30, inf  ;;  %v332_v9 = vand.u32 2147483648, %v283_v30  ;;  %vm331_vm11 = vcmp.eq.f32.partialorder %v283_v30, 0.0 }
 0x113   :  { %v245_v36 = vpop.f32.mrf.mxu0  ;;  %v304_v39 = vmul.f32 %v303_v32, %v281_v60  ;;  %v312_v34 = vmul.f32 %v2477_v29, %v311_v33 }
 0x114   :  { %v272_v40 = vmul.f32 %v245_v36, %v245_v36 }
 0x115   :  { %v306_v43 = vsel %vm305_vm5, %v281_v60, %v304_v39  ;;  %v313_v44 = vmul.f32 0.5, %v312_v34  ;;  %v479_v39 = vpack.c.bf16 %v2796_v14, %v2793_v13  ;;  %v2456_v34 = vld [vmem:[%s3714_s1] sm:$0xff] }
 0x116   :  { %v278_v45 = vadd.f32 %v272_v40, %v266_v35  ;;  %v309_v47 = vsel %vm307_vm7, %v308_v42, %v306_v43  ;;  %v480_v40 = vpack.c.bf16 %v2807_v20, %v2798_v15  ;;  %v455_v42 = vpop.f32.mrf.mxu2  ;;  %v2905_v13 = vld [vmem:[%s3715_s27] ss:$0 sm:$0xff] }
 0x117   :  { %v358_v48 = vpack.c.bf16 %v309_v47, %v297_v46  ;;  %v314_v49 = vsub.f32 1.5, %v313_v44 }
 0x118   :  { %v2479_v51 = vpop.eup %2478  ;;  %v284_v53 = vmax.f32 %v278_v45, 1e-08 }
 0x119   :  { %2293 = vmatmul.msk.bf16.vlgmr.msra.gmra.mxu1 %vm164_vm1, %v358_v48  ;;  %v323_v54 = vmul.f32 %v2479_v51, %v283_v30  ;;  %v315_v56 = vmul.f32 %v2477_v29, %v314_v49 }
 0x11a   :  { %2480 = vrsqrt.f32 %v284_v53  ;;  %vm341_vm12 = vcmp.eq.f32.partialorder %v284_v53, inf  ;;  %v344_v32 = vand.u32 2147483648, %v284_v53  ;;  %vm343_vm14 = vcmp.eq.f32.partialorder %v284_v53, 0.0  ;;  %606 = vmatpush.bf16.msra.mxu1 %v2456_v34 }
 0x11b   :  { %v247_v50 = vpop.f32.mrf.mxu0  ;;  %v324_v57 = vmul.f32 %v2479_v51, %v323_v54  ;;  %v316_v37 = vmul.f32 %v315_v56, %v2857_v8 }
 0x11c   :  { %v273_v59 = vmul.f32 %v247_v50, %v247_v50  ;;  %v487_v60 = vpack.c.bf16 %v247_v50, %v245_v36 }
 0x11d   :  { %v325_v61 = vmul.f32 0.5, %v324_v57  ;;  %v318_v4 = vsel %vm317_vm8, %v2857_v8, %v316_v37 }
 0x11e   :  { %v279_v62 = vadd.f32 %v273_v59, %v267_v58  ;;  %2331 = vmatmul.msk.bf16.gmra.mxu3 %vm164_vm1, %v487_v60  ;;  %v321_v12 = vsel %vm319_vm10, %v320_v7, %v318_v4  ;;  %v457_v43 = vpop.f32.mrf.mxu2 }
 0x11f   :  { %v326_v63 = vsub.f32 1.5, %v325_v61 }
 0x120   :  { %v2481_v0 = vpop.eup %2480  ;;  %v285_v1 = vmax.f32 %v279_v62, 1e-08 }
 0x121   :  { %v327_v2 = vmul.f32 %v2479_v51, %v326_v63  ;;  %v335_v3 = vmul.f32 %v2481_v0, %v284_v53 }
 0x122   :  { %2482 = vrsqrt.f32 %v285_v1  ;;  %vm353_vm13 = vcmp.eq.f32.partialorder %v285_v1, inf  ;;  %vm355_vm15 = vcmp.eq.f32.partialorder %v285_v1, 0.0 }
 0x123   :  { %v328_v5 = vmul.f32 %v327_v2, %v283_v30  ;;  %v336_v6 = vmul.f32 %v2481_v0, %v335_v3 }
 0x125   :  { %v330_v10 = vsel %vm329_vm9, %v283_v30, %v328_v5  ;;  %v337_v11 = vmul.f32 0.5, %v336_v6  ;;  %v356_v30 = vand.u32 2147483648, %v285_v1 }
 0x126   :  { %v333_v16 = vsel %vm331_vm11, %v332_v9, %v330_v10  ;;  %v460_v22 = vpop.f32.mrf.mxu2 }
 0x127   :  { %v359_v17 = vpack.c.bf16 %v333_v16, %v321_v12  ;;  %v338_v18 = vsub.f32 1.5, %v337_v11 }
 0x128   :  { %v2483_v19 = vpop.eup %2482 }
 0x129   :  { %2294 = vmatmul.msk.bf16.gmra.mxu1 %vm164_vm1, %v359_v17  ;;  %v347_v23 = vmul.f32 %v2483_v19, %v285_v1  ;;  %v339_v24 = vmul.f32 %v2481_v0, %v338_v18 }
 0x12b   :  { %v348_v25 = vmul.f32 %v2483_v19, %v347_v23  ;;  %v340_v27 = vmul.f32 %v339_v24, %v284_v53 }
 0x12d   :  { %v349_v26 = vmul.f32 0.5, %v348_v25  ;;  %v342_v31 = vsel %vm341_vm12, %v284_v53, %v340_v27 }
 0x12e   :  { %v345_v35 = vsel %vm343_vm14, %v344_v32, %v342_v31  ;;  %v462_v50 = vpop.f32.mrf.mxu2 }
 0x12f   :  { %v350_v28 = vsub.f32 1.5, %v349_v26 }
 0x131   :  { %v351_v29 = vmul.f32 %v2483_v19, %v350_v28 }
 0x133   :  { %v352_v8 = vmul.f32 %v351_v29, %v285_v1 }
 0x135   :  { %v354_v33 = vsel %vm353_vm13, %v285_v1, %v352_v8 }
 0x136   :  { %v357_v36 = vsel %vm355_vm15, %v356_v30, %v354_v33  ;;  %v465_v6 = vpop.f32.mrf.mxu2 }
 0x137   :  { %v360_v38 = vpack.c.bf16 %v357_v36, %v345_v35 }
 0x139   :  { %2295 = vmatmul.msk.bf16.gmra.mxu1 %vm164_vm1, %v360_v38 }
 0x13e   :  { %v467_v38 = vpop.f32.mrf.mxu2 }
 0x149   :  { %2323 = vmatmul.msk.bf16.vlgmr.msrb.gmra.mxu1 %vm164_vm1, %v479_v39 }
 0x159   :  { %2324 = vmatmul.msk.bf16.gmra.mxu1 %vm164_vm1, %v480_v40 }
 0x169   :  { %2325 = vmatmul.msk.bf16.gmra.mxu1 %vm164_vm1, %v481_v41 }
 0x196   :  { %v387_v14 = vpop.f32.mrf.mxu1 }
 0x197   :  { %v456_v44 = vadd.f32 %v455_v42, %v387_v14 }
 0x199   :  { %v2908_v45 = vadd.f32 %v2905_v13, %v456_v44 }
 0x19b   :  { %v2345_v15 = vmul.f32 -1.442695, %v2908_v45 }
 0x19d   :  { %2484 = vpow2.f32 %v2345_v15 }
 0x19e   :  { %v389_v20 = vpop.f32.mrf.mxu1 }
 0x19f   :  { %v458_v46 = vadd.f32 %v457_v43, %v389_v20 }
 0x1a1   :  { %v2917_v47 = vadd.f32 %v2905_v13, %v458_v46 }
 0x1a3   :  { %v2485_v48 = vpop.eup %2484  ;;  %v577_v49 = vpack.c.bf16 %v2917_v47, %v2908_v45  ;;  %v2346_v51 = vmul.f32 -1.442695, %v2917_v47 }
 0x1a4   :  { %v773_v52 = vadd.f32 1.0, %v2485_v48 }
 0x1a5   :  { %2486 = vpow2.f32 %v2346_v51  ;;  %2336 = vmatmul.msk.bf16.vlgmr.msra.gmra.mxu1 %vm589_vm0, %v577_v49 }
 0x1a6   :  { %2488 = vrcp.f32 %v773_v52  ;;  %v392_v53 = vpop.f32.mrf.mxu1  ;;  %v790_v10 = vand.u32 2147483648, %v773_v52  ;;  %vm784_vm2 = vweird.f32 %v773_v52  ;;  %v788_v12 = vand.u32 2147483647, %v773_v52 }
 0x1a7   :  { %v461_v54 = vadd.f32 %v460_v22, %v392_v53 }
 0x1a8   :  { %v791_v26 = vor.u32 1.1754944e-38, %v790_v10  ;;  %vm789_vm5 = vcmp.eq.f32.partialorder %v788_v12, 8.507059e+37 }
 0x1a9   :  { %v2925_v55 = vadd.f32 %v2905_v13, %v461_v54 }
 0x1ab   :  { %v2487_v56 = vpop.eup %2486  ;;  %v2347_v57 = vmul.f32 -1.442695, %v2925_v55 }
 0x1ac   :  { %v2489_v58 = vpop.eup %2488  ;;  %v774_v59 = vadd.f32 1.0, %v2487_v56 }
 0x1ad   :  { %v780_v60 = vmul.f32 %v2489_v58, %v773_v52  ;;  %2490 = vpow2.f32 %v2347_v57  ;;  %vm785_vm1 = vweird.f32 %v2489_v58 }
 0x1ae   :  { %2492 = vrcp.f32 %v774_v59  ;;  %v394_v61 = vpop.f32.mrf.mxu1  ;;  %vm786_vm3 = vmor %vm784_vm2, %vm785_vm1  ;;  %v803_v18 = vand.u32 2147483647, %v774_v59  ;;  %v805_v19 = vand.u32 2147483648, %v774_v59  ;;  %vm799_vm6 = vweird.f32 %v774_v59 }
 0x1af   :  { %v781_v62 = vsub.f32 1.0, %v780_v60  ;;  %v463_v37 = vadd.f32 %v462_v50, %v394_v61  ;;  %vm921_vm2 = vcmask 1041408  }
 0x1b0   :  { %v806_v32 = vor.u32 1.1754944e-38, %v805_v19  ;;  %vm804_vm8 = vcmp.eq.f32.partialorder %v803_v18, 8.507059e+37 }
 0x1b1   :  { %v782_v63 = vmul.f32 %v2489_v58, %v781_v62  ;;  %v2929_v0 = vadd.f32 %v2905_v13, %v463_v37 }
 0x1b3   :  { %v2491_v1 = vpop.eup %2490  ;;  %v2348_v2 = vmul.f32 -1.442695, %v2929_v0  ;;  %v578_v3 = vpack.c.bf16 %v2929_v0, %v2925_v55  ;;  %v783_v7 = vadd.f32 %v2489_v58, %v782_v63 }
 0x1b4   :  { %v2493_v4 = vpop.eup %2492  ;;  %v2934_v5 = vadd.f32 1.0, %v2491_v1 }
 0x1b5   :  { %v795_v9 = vmul.f32 %v2493_v4, %v774_v59  ;;  %2494 = vpow2.f32 %v2348_v2  ;;  %2337 = vmatmul.msk.bf16.gmra.mxu1 %vm589_vm0, %v578_v3  ;;  %v787_v23 = vsel %vm786_vm3, %v2489_v58, %v783_v7  ;;  %vm800_vm4 = vweird.f32 %v2493_v4  ;;  %v875_v2 = vld [vmem:[%s3680_s9] sm:$0x3] }
 0x1b6   :  { %2496 = vrcp.f32 %v2934_v5  ;;  %v397_v11 = vpop.f32.mrf.mxu1  ;;  %v792_v8 = vsel %vm789_vm5, %v791_v26, %v787_v23  ;;  %vm801_vm7 = vmor %vm799_vm6, %vm800_vm4  ;;  %vm814_vm10 = vweird.f32 %v2934_v5  ;;  %v818_v49 = vand.u32 2147483647, %v2934_v5 }
 0x1b7   :  { %v796_v16 = vsub.f32 1.0, %v795_v9  ;;  %v466_v17 = vadd.f32 %v465_v6, %v397_v11  ;;  %v869_v34 = vmul.f32 %v792_v8, %v2908_v45  ;;  %v923_v6 = vsel %vm921_vm2, %v875_v2, 0 }
 0x1b8   :  { %vm819_vm13 = vcmp.eq.f32.partialorder %v818_v49, 8.507059e+37  ;;  %932 = vmatpush.bf16.msrb.mxu2 %v923_v6 }
 0x1b9   :  { %v797_v24 = vmul.f32 %v2493_v4, %v796_v16  ;;  %v2939_v25 = vadd.f32 %v2905_v13, %v466_v17 }
 0x1bb   :  { %v2495_v27 = vpop.eup %2494  ;;  %v798_v28 = vadd.f32 %v2493_v4, %v797_v24  ;;  %v2349_v29 = vmul.f32 -1.442695, %v2939_v25 }
 0x1bc   :  { %v2497_v31 = vpop.eup %2496  ;;  %v776_v30 = vadd.f32 1.0, %v2495_v27  ;;  %2462 = vmatpush.bf16.msra.mxu2 %v2914_v21 }
 0x1bd   :  { %v802_v33 = vsel %vm801_vm7, %v2493_v4, %v798_v28  ;;  %v810_v35 = vmul.f32 %v2497_v31, %v2934_v5  ;;  %2498 = vpow2.f32 %v2349_v29  ;;  %vm815_vm9 = vweird.f32 %v2497_v31 }
 0x1be   :  { %v807_v36 = vsel %vm804_vm8, %v806_v32, %v802_v33  ;;  %2500 = vrcp.f32 %v776_v30  ;;  %v399_v39 = vpop.f32.mrf.mxu1  ;;  %vm816_vm11 = vmor %vm814_vm10, %vm815_vm9  ;;  %v835_v52 = vand.u32 2147483648, %v776_v30  ;;  %v833_v50 = vand.u32 2147483647, %v776_v30 }
 0x1bf   :  { %v870_v40 = vmul.f32 %v807_v36, %v2917_v47  ;;  %v811_v41 = vsub.f32 1.0, %v810_v35  ;;  %v468_v42 = vadd.f32 %v467_v38, %v399_v39  ;;  %vm829_vm14 = vweird.f32 %v776_v30  ;;  %v2981_v35 = vpop.f32.mrf.mxu3 }
 0x1c0   :  { %v836_v61 = vor.u32 1.1754944e-38, %v835_v52  ;;  %vm834_vm1 = vcmp.eq.f32.partialorder %v833_v50, 8.507059e+37 }
 0x1c1   :  { %v812_v14 = vmul.f32 %v2497_v31, %v811_v41  ;;  %v2946_v43 = vadd.f32 %v2905_v13, %v468_v42  ;;  %v1087_v44 = vpack.c.bf16 %v870_v40, %v869_v34  ;;  %v820_v13 = vand.u32 2147483648, %v2934_v5  ;;  %v3000_v42 = vld [vmem:[%s3678_s8] ss:$0 sm:$0xff] }
 0x1c3   :  { %v2499_v15 = vpop.eup %2498  ;;  %v2350_v20 = vmul.f32 -1.442695, %v2946_v43  ;;  %2367 = vmatmul.msk.bf16.vlgmr.msrb.gmra.mxu0 %vm589_vm0, %v1087_v44  ;;  %v579_v46 = vpack.c.bf16 %v2946_v43, %v2939_v25  ;;  %v813_v45 = vadd.f32 %v2497_v31, %v812_v14  ;;  %v821_v56 = vor.u32 1.1754944e-38, %v820_v13 }
 0x1c4   :  { %v2501_v22 = vpop.eup %2500  ;;  %v777_v48 = vadd.f32 1.0, %v2499_v15 }
 0x1c5   :  { %v825_v47 = vmul.f32 %v2501_v22, %v776_v30  ;;  %2502 = vpow2.f32 %v2350_v20  ;;  %2338 = vmatmul.msk.bf16.gmra.mxu1 %vm589_vm0, %v579_v46  ;;  %v817_v53 = vsel %vm816_vm11, %v2497_v31, %v813_v45  ;;  %vm830_vm12 = vweird.f32 %v2501_v22 }
 0x1c6   :  { %2504 = vrcp.f32 %v777_v48  ;;  %v822_v60 = vsel %vm819_vm13, %v821_v56, %v817_v53  ;;  %vm831_vm15 = vmor %vm829_vm14, %vm830_vm12  ;;  %vm844_vm4 = vweird.f32 %v777_v48  ;;  %v848_v16 = vand.u32 2147483647, %v777_v48  ;;  %v2977_v30 = vpop.f32.mrf.mxu1 }
 0x1c7   :  { %v826_v51 = vsub.f32 1.0, %v825_v47  ;;  %v2960_v3 = vmul.f32 %v822_v60, %v2925_v55  ;;  %v850_v55 = vand.u32 2147483648, %v777_v48  ;;  %v2985_v38 = vpop.f32.mrf.mxu3 }
 0x1c8   :  { %vm849_vm7 = vcmp.eq.f32.partialorder %v848_v16, 8.507059e+37 }
 0x1c9   :  { %v827_v54 = vmul.f32 %v2501_v22, %v826_v51  ;;  %v851_v24 = vor.u32 1.1754944e-38, %v850_v55 }
 0x1cb   :  { %v2503_v57 = vpop.eup %2502  ;;  %v828_v58 = vadd.f32 %v2501_v22, %v827_v54 }
 0x1cc   :  { %v2505_v59 = vpop.eup %2504  ;;  %v778_v62 = vadd.f32 1.0, %v2503_v57 }
 0x1cd   :  { %v832_v37 = vsel %vm831_vm15, %v2501_v22, %v828_v58  ;;  %v840_v63 = vmul.f32 %v2505_v59, %v777_v48  ;;  %vm845_vm3 = vweird.f32 %v2505_v59 }
 0x1ce   :  { %v837_v1 = vsel %vm834_vm1, %v836_v61, %v832_v37  ;;  %2506 = vrcp.f32 %v778_v62  ;;  %vm846_vm5 = vmor %vm844_vm4, %vm845_vm3  ;;  %v865_v17 = vand.u32 2147483648, %v778_v62  ;;  %v863_v23 = vand.u32 2147483647, %v778_v62  ;;  %v2979_v33 = vpop.f32.mrf.mxu1 }
 0x1cf   :  { %v2963_v4 = vmul.f32 %v837_v1, %v2929_v0  ;;  %v841_v5 = vsub.f32 1.0, %v840_v63  ;;  %vm859_vm8 = vweird.f32 %v778_v62 }
 0x1d0   :  { %v866_v21 = vor.u32 1.1754944e-38, %v865_v17  ;;  %vm864_vm10 = vcmp.eq.f32.partialorder %v863_v23, 8.507059e+37 }
 0x1d1   :  { %v1088_v7 = vpack.c.bf16 %v2963_v4, %v2960_v3  ;;  %v842_v9 = vmul.f32 %v2505_v59, %v841_v5  ;;  %v878_v3 = vld [vmem:[%s3681_s11] sm:$0x3] }
 0x1d2   :  { %v1103_v4 = vsel %vm921_vm2, %v878_v3, 0 }
 0x1d3   :  { %v843_v11 = vadd.f32 %v2505_v59, %v842_v9  ;;  %1112 = vmatpush.bf16.msrb.mxu1 %v1103_v4 }
 0x1d4   :  { %v2507_v10 = vpop.eup %2506 }
 0x1d5   :  { %v855_v12 = vmul.f32 %v2507_v10, %v778_v62  ;;  %v847_v18 = vsel %vm846_vm5, %v2505_v59, %v843_v11  ;;  %vm860_vm6 = vweird.f32 %v2507_v10  ;;  %vm893_vm5 = vcmask 31744  }
 0x1d6   :  { %v852_v27 = vsel %vm849_vm7, %v851_v24, %v847_v18  ;;  %vm861_vm9 = vmor %vm859_vm8, %vm860_vm6  ;;  %v2983_v36 = vpop.f32.mrf.mxu1 }
 0x1d7   :  { %v856_v0 = vsub.f32 1.0, %v855_v12  ;;  %v2970_v31 = vmul.f32 %v852_v27, %v2939_v25  ;;  %v2989_v25 = vpop.f32.mrf.mxu3 }
 0x1d9   :  { %v857_v19 = vmul.f32 %v2507_v10, %v856_v0 }
 0x1db   :  { %v858_v26 = vadd.f32 %v2507_v10, %v857_v19 }
 0x1dd   :  { %v862_v28 = vsel %vm861_vm9, %v2507_v10, %v858_v26 }
 0x1de   :  { %v867_v29 = vsel %vm864_vm10, %v866_v21, %v862_v28  ;;  %v2987_v39 = vpop.f32.mrf.mxu1 }
 0x1df   :  { %v2973_v8 = vmul.f32 %v867_v29, %v2946_v43  ;;  %v2993_v40 = vpop.f32.mrf.mxu3 }
 0x1e1   :  { %v1089_v32 = vpack.c.bf16 %v2973_v8, %v2970_v31 }
 0x1e6   :  { %v2991_v34 = vpop.f32.mrf.mxu1 }
 0x1e7   :  { %v3002_v14 = vpop.f32.mrf.mxu3 }
 0x1ee   :  { %v2995_v41 = vpop.f32.mrf.mxu1 }
 0x1ef   :  { %v3006_v22 = vpop.f32.mrf.mxu3 }
 0x1f7   :  { %v562_v54 = vpop.f32.mrf.mxu3 }
 0x1ff   :  { %v564_v5 = vpop.f32.mrf.mxu3 }
 0x222   :  { %v608_v43 = vpop.f32.mrf.mxu1 }
 0x223   :  { %v609_v44 = vadd.f32 %v3000_v42, %v608_v43 }
 0x225   :  { %v2339_v15 = vmul.f32 -1.442695, %v609_v44 }
 0x227   :  { %2508 = vpow2.f32 %v2339_v15 }
 0x22a   :  { %v610_v20 = vpop.f32.mrf.mxu1 }
 0x22b   :  { %v611_v46 = vadd.f32 %v3000_v42, %v610_v20 }
 0x22d   :  { %v2509_v48 = vpop.eup %2508  ;;  %v2340_v45 = vmul.f32 -1.442695, %v611_v46 }
 0x22e   :  { %v641_v47 = vadd.f32 1.0, %v2509_v48 }
 0x22f   :  { %2510 = vpow2.f32 %v2340_v45  ;;  %v567_v45 = vpop.f32.mrf.mxu3 }
 0x230   :  { %2512 = vrcp.f32 %v641_v47  ;;  %v658_v6 = vand.u32 2147483648, %v641_v47  ;;  %vm652_vm12 = vweird.f32 %v641_v47  ;;  %v656_v10 = vand.u32 2147483647, %v641_v47 }
 0x232   :  { %v613_v13 = vpop.f32.mrf.mxu1  ;;  %v659_v19 = vor.u32 1.1754944e-38, %v658_v6  ;;  %vm657_vm1 = vcmp.eq.f32.partialorder %v656_v10, 8.507059e+37 }
 0x233   :  { %v614_v49 = vadd.f32 %v3000_v42, %v613_v13 }
 0x235   :  { %v2511_v51 = vpop.eup %2510  ;;  %v2341_v52 = vmul.f32 -1.442695, %v614_v49 }
 0x236   :  { %v2513_v53 = vpop.eup %2512  ;;  %v642_v50 = vadd.f32 1.0, %v2511_v51 }
 0x237   :  { %v648_v56 = vmul.f32 %v2513_v53, %v641_v47  ;;  %2514 = vpow2.f32 %v2341_v52  ;;  %vm653_vm11 = vweird.f32 %v2513_v53 }
 0x238   :  { %2516 = vrcp.f32 %v642_v50  ;;  %vm3013_vm13 = vmor %vm652_vm12, %vm653_vm11  ;;  %v671_v55 = vand.u32 2147483647, %v642_v50  ;;  %v673_v16 = vand.u32 2147483648, %v642_v50  ;;  %vm667_vm15 = vweird.f32 %v642_v50 }
 0x239   :  { %v649_v57 = vsub.f32 1.0, %v648_v56 }
 0x23a   :  { %v615_v58 = vpop.f32.mrf.mxu1  ;;  %v674_v29 = vor.u32 1.1754944e-38, %v673_v16  ;;  %vm672_vm4 = vcmp.eq.f32.partialorder %v671_v55, 8.507059e+37 }
 0x23b   :  { %v650_v59 = vmul.f32 %v2513_v53, %v649_v57  ;;  %v616_v60 = vadd.f32 %v3000_v42, %v615_v58 }
 0x23d   :  { %v2515_v61 = vpop.eup %2514  ;;  %v2342_v62 = vmul.f32 -1.442695, %v616_v60  ;;  %v651_v2 = vadd.f32 %v2513_v53, %v650_v59 }
 0x23e   :  { %v2517_v37 = vpop.eup %2516  ;;  %v3010_v63 = vadd.f32 1.0, %v2515_v61 }
 0x23f   :  { %v663_v1 = vmul.f32 %v2517_v37, %v642_v50  ;;  %2518 = vpow2.f32 %v2342_v62  ;;  %v655_v18 = vsel %vm3013_vm13, %v2513_v53, %v651_v2  ;;  %vm668_vm14 = vweird.f32 %v2517_v37  ;;  %v569_v2 = vpop.f32.mrf.mxu3 }
 0x240   :  { %2520 = vrcp.f32 %v3010_v63  ;;  %v3020_v28 = vsel %vm657_vm1, %v659_v19, %v655_v18  ;;  %vm669_vm3 = vmor %vm667_vm15, %vm668_vm14  ;;  %v688_v59 = vand.u32 2147483648, %v3010_v63  ;;  %vm682_vm7 = vweird.f32 %v3010_v63 }
 0x241   :  { %v664_v9 = vsub.f32 1.0, %v663_v1  ;;  %v737_v46 = vmul.f32 %v3020_v28, %v2977_v30  ;;  %v3030_v13 = vmul.f32 %v3020_v28, %v562_v54 }
 0x242   :  { %v618_v11 = vpop.f32.mrf.mxu1 }
 0x243   :  { %v665_v0 = vmul.f32 %v2517_v37, %v664_v9  ;;  %v619_v17 = vadd.f32 %v3000_v42, %v618_v11 }
 0x245   :  { %v2519_v23 = vpop.eup %2518  ;;  %v2343_v24 = vmul.f32 -1.442695, %v619_v17  ;;  %v666_v26 = vadd.f32 %v2517_v37, %v665_v0 }
 0x246   :  { %v2521_v27 = vpop.eup %2520  ;;  %v644_v21 = vadd.f32 1.0, %v2519_v23 }
 0x247   :  { %v678_v43 = vmul.f32 %v2521_v27, %v3010_v63  ;;  %2522 = vpow2.f32 %v2343_v24  ;;  %v670_v44 = vsel %vm669_vm3, %v2517_v37, %v666_v26  ;;  %vm683_vm6 = vweird.f32 %v2521_v27 }
 0x248   :  { %2524 = vrcp.f32 %v644_v21  ;;  %v3023_v15 = vsel %vm672_vm4, %v674_v29, %v670_v44  ;;  %vm684_vm8 = vmor %vm682_vm7, %vm683_vm6  ;;  %v703_v61 = vand.u32 2147483648, %v644_v21  ;;  %v701_v1 = vand.u32 2147483647, %v644_v21 }
 0x249   :  { %v679_v20 = vsub.f32 1.0, %v678_v43  ;;  %v738_v48 = vmul.f32 %v3023_v15, %v2979_v33  ;;  %v3033_v49 = vmul.f32 %v3023_v15, %v564_v5  ;;  %v689_v5 = vor.u32 1.1754944e-38, %v688_v59  ;;  %v572_v43 = vpop.f32.mrf.mxu3 }
 0x24a   :  { %v620_v47 = vpop.f32.mrf.mxu1  ;;  %vm697_vm11 = vweird.f32 %v644_v21  ;;  %v704_v55 = vor.u32 1.1754944e-38, %v703_v61  ;;  %vm702_vm13 = vcmp.eq.f32.partialorder %v701_v1, 8.507059e+37  ;;  %v743_v1 = vmul.f32 %v3020_v28, %v2981_v35 }
 0x24b   :  { %v621_v51 = vadd.f32 %v3000_v42, %v620_v47  ;;  %v884_v52 = vpack.c.bf16 %v738_v48, %v737_v46  ;;  %v680_v53 = vmul.f32 %v2521_v27, %v679_v20  ;;  %v890_v50 = vpack.c.bf16 %v3033_v49, %v3030_v13 }
 0x24c   :  { %v686_v42 = vand.u32 2147483647, %v3010_v63 }
 0x24d   :  { %v2523_v30 = vpop.eup %2522  ;;  %v2344_v56 = vmul.f32 -1.442695, %v621_v51  ;;  %2351 = vmatmul.msk.bf16.vlgmr.msrb.gmra.mxu2 %vm893_vm5, %v884_v52  ;;  %v681_v54 = vadd.f32 %v2521_v27, %v680_v53 }
 0x24e   :  { %v2525_v33 = vpop.eup %2524  ;;  %v645_v57 = vadd.f32 1.0, %v2523_v30  ;;  %vm687_vm10 = vcmp.eq.f32.partialorder %v686_v42, 8.507059e+37 }
 0x24f   :  { %v693_v58 = vmul.f32 %v2525_v33, %v644_v21  ;;  %2526 = vpow2.f32 %v2344_v56  ;;  %v685_v62 = vsel %vm684_vm8, %v2521_v27, %v681_v54  ;;  %vm698_vm9 = vweird.f32 %v2525_v33 }
 0x250   :  { %2528 = vrcp.f32 %v645_v57  ;;  %v690_v12 = vsel %vm687_vm10, %v689_v5, %v685_v62  ;;  %vm699_vm12 = vmor %vm697_vm11, %vm698_vm9  ;;  %v718_v46 = vand.u32 2147483648, %v645_v57  ;;  %vm712_vm15 = vweird.f32 %v645_v57 }
 0x251   :  { %v694_v60 = vsub.f32 1.0, %v693_v58  ;;  %v739_v18 = vmul.f32 %v690_v12, %v2983_v36  ;;  %v751_v23 = vmul.f32 %v690_v12, %v567_v45  ;;  %v716_v47 = vand.u32 2147483647, %v645_v57  ;;  %v574_v58 = vpop.f32.mrf.mxu3 }
 0x252   :  { %v719_v52 = vor.u32 1.1754944e-38, %v718_v46 }
 0x253   :  { %v695_v37 = vmul.f32 %v2525_v33, %v694_v60  ;;  %vm717_vm4 = vcmp.eq.f32.partialorder %v716_v47, 8.507059e+37 }
 0x255   :  { %v2527_v6 = vpop.eup %2526  ;;  %v696_v9 = vadd.f32 %v2525_v33, %v695_v37  ;;  %v744_v37 = vmul.f32 %v3023_v15, %v2985_v38 }
 0x256   :  { %v2529_v10 = vpop.eup %2528  ;;  %v646_v11 = vadd.f32 1.0, %v2527_v6 }
 0x257   :  { %v708_v16 = vmul.f32 %v2529_v10, %v645_v57  ;;  %v700_v0 = vsel %vm699_vm12, %v2525_v33, %v696_v9  ;;  %vm713_vm14 = vweird.f32 %v2529_v10 }
 0x258   :  { %2530 = vrcp.f32 %v646_v11  ;;  %v705_v63 = vsel %vm702_vm13, %v704_v55, %v700_v0  ;;  %vm714_vm1 = vmor %vm712_vm15, %vm713_vm14  ;;  %v733_v36 = vand.u32 2147483648, %v646_v11  ;;  %v731_v45 = vand.u32 2147483647, %v646_v11 }
 0x259   :  { %v709_v17 = vsub.f32 1.0, %v708_v16  ;;  %v740_v19 = vmul.f32 %v705_v63, %v2987_v39  ;;  %v752_v24 = vmul.f32 %v705_v63, %v569_v2  ;;  %vm727_vm6 = vweird.f32 %v646_v11 }
 0x25a   :  { %v734_v56 = vor.u32 1.1754944e-38, %v733_v36  ;;  %vm732_vm8 = vcmp.eq.f32.partialorder %v731_v45, 8.507059e+37  ;;  %v887_v2 = vpack.c.bf16 %v744_v37, %v743_v1  ;;  %v746_v5 = vmul.f32 %v705_v63, %v2993_v40 }
 0x25b   :  { %v885_v26 = vpack.c.bf16 %v740_v19, %v739_v18  ;;  %v710_v27 = vmul.f32 %v2529_v10, %v709_v17  ;;  %v891_v21 = vpack.c.bf16 %v752_v24, %v751_v23 }
 0x25d   :  { %2352 = vmatmul.msk.bf16.gmra.mxu2 %vm893_vm5, %v885_v26  ;;  %v711_v20 = vadd.f32 %v2529_v10, %v710_v27 }
 0x25e   :  { %v2531_v29 = vpop.eup %2530 }
 0x25f   :  { %v723_v44 = vmul.f32 %v2531_v29, %v646_v11  ;;  %v715_v51 = vsel %vm714_vm1, %v2529_v10, %v711_v20  ;;  %vm728_vm3 = vweird.f32 %v2531_v29 }
 0x260   :  { %v720_v30 = vsel %vm717_vm4, %v719_v52, %v715_v51  ;;  %vm729_vm7 = vmor %vm727_vm6, %vm728_vm3 }
 0x261   :  { %v724_v48 = vsub.f32 1.0, %v723_v44  ;;  %v741_v59 = vmul.f32 %v720_v30, %v2991_v34  ;;  %v753_v60 = vmul.f32 %v720_v30, %v572_v43  ;;  %v745_v34 = vmul.f32 %v690_v12, %v2989_v25 }
 0x262   :  { %v747_v9 = vmul.f32 %v720_v30, %v3002_v14 }
 0x263   :  { %v725_v39 = vmul.f32 %v2531_v29, %v724_v48 }
 0x265   :  { %v726_v53 = vadd.f32 %v2531_v29, %v725_v39 }
 0x267   :  { %v730_v33 = vsel %vm729_vm7, %v2531_v29, %v726_v53 }
 0x268   :  { %v735_v54 = vsel %vm732_vm8, %v734_v56, %v730_v33 }
 0x269   :  { %v742_v57 = vmul.f32 %v735_v54, %v2995_v41  ;;  %v754_v42 = vmul.f32 %v735_v54, %v574_v58  ;;  %v888_v41 = vpack.c.bf16 %v746_v5, %v745_v34  ;;  %v748_v6 = vmul.f32 %v735_v54, %v3006_v22 }
 0x26b   :  { %v886_v61 = vpack.c.bf16 %v742_v57, %v741_v59  ;;  %v892_v62 = vpack.c.bf16 %v754_v42, %v753_v60  ;;  %v889_v10 = vpack.c.bf16 %v748_v6, %v747_v9 }
 0x26d   :  { %2353 = vmatmul.msk.bf16.gmra.mxu2 %vm893_vm5, %v886_v61 }
 0x27d   :  { %2354 = vmatmul.msk.bf16.gmra.mxu2 %vm893_vm5, %v887_v2 }
 0x28d   :  { %2355 = vmatmul.msk.bf16.gmra.mxu2 %vm893_vm5, %v888_v41 }
 0x29d   :  { %2356 = vmatmul.msk.bf16.gmra.mxu2 %vm893_vm5, %v889_v10 }
 0x2ad   :  { %2357 = vmatmul.msk.bf16.gmra.mxu2 %vm893_vm5, %v890_v50 }
 0x2bd   :  { %2358 = vmatmul.msk.bf16.gmra.mxu2 %vm893_vm5, %v891_v21 }
 0x2cd   :  { %2359 = vmatmul.msk.bf16.gmra.mxu2 %vm893_vm5, %v892_v62 }
 0x2d0   :  { %v3065_v35 = vpop.f32.mrf.mxu2 }
 0x2d1   :  { %v979_v50 = vmul.f32 %v3065_v35, %v3065_v35 }
 0x2d8   :  { %v3067_v38 = vpop.f32.mrf.mxu2 }
 0x2d9   :  { %v980_v17 = vmul.f32 %v3067_v38, %v3067_v38 }
 0x2dd   :  { %2368 = vmatmul.msk.bf16.vlgmr.msra.gmra.mxu2 %vm589_vm0, %v1088_v7 }
 0x2e0   :  { %v3073_v25 = vpop.f32.mrf.mxu2 }
 0x2e1   :  { %v981_v44 = vmul.f32 %v3073_v25, %v3073_v25 }
 0x2e8   :  { %v3075_v40 = vpop.f32.mrf.mxu2 }
 0x2e9   :  { %v982_v56 = vmul.f32 %v3075_v40, %v3075_v40 }
 0x2ed   :  { %2369 = vmatmul.msk.bf16.gmra.mxu2 %vm589_vm0, %v1089_v32 }
 0x2f0   :  { %v3081_v14 = vpop.f32.mrf.mxu2 }
 0x2f1   :  { %v983_v34 = vmul.f32 %v3081_v14, %v3081_v14 }
 0x2f8   :  { %v3083_v22 = vpop.f32.mrf.mxu2 }
 0x300   :  { %v3085_v28 = vpop.f32.mrf.mxu2 }
 0x301   :  { %v985_v49 = vmul.f32 %v3085_v28, %v3085_v28 }
 0x303   :  { %v991_v12 = vadd.f32 %v985_v49, %v979_v50 }
 0x308   :  { %v3091_v7 = vpop.f32.mrf.mxu2 }
 0x309   :  { %v986_v0 = vmul.f32 %v3091_v7, %v3091_v7 }
 0x30b   :  { %v992_v19 = vadd.f32 %v986_v0, %v980_v17 }
 0x310   :  { %v3093_v15 = vpop.f32.mrf.mxu2 }
 0x311   :  { %v987_v21 = vmul.f32 %v3093_v15, %v3093_v15 }
 0x313   :  { %v993_v48 = vadd.f32 %v987_v21, %v981_v44 }
 0x318   :  { %v3095_v31 = vpop.f32.mrf.mxu2 }
 0x319   :  { %v988_v52 = vmul.f32 %v3095_v31, %v3095_v31 }
 0x31b   :  { %v994_v59 = vadd.f32 %v988_v52, %v982_v56 }
 0x320   :  { %v3097_v8 = vpop.f32.mrf.mxu2 }
 0x321   :  { %v989_v62 = vmul.f32 %v3097_v8, %v3097_v8 }
 0x323   :  { %v995_v9 = vadd.f32 %v989_v62, %v983_v34 }
 0x328   :  { %v3099_v32 = vpop.f32.mrf.mxu2 }
 0x329   :  { %v1182_v13 = vpack.c.bf16 %v3099_v32, %v3097_v8 }
 0x330   :  { %v3107_v11 = vpop.f32.mrf.mxu2 }
 0x331   :  { %v997_v55 = vmul.f32 %v3107_v11, %v3107_v11 }
 0x333   :  { %v1003_v16 = vadd.f32 %v997_v55, %v991_v12 }
 0x335   :  { %v1009_v63 = vmax.f32 %v1003_v16, 1e-08 }
 0x337   :  { %2532 = vrsqrt.f32 %v1009_v63  ;;  %vm1022_vm9 = vcmp.eq.f32.partialorder %v1009_v63, inf  ;;  %v1025_v12 = vand.u32 2147483648, %v1009_v63  ;;  %vm1024_vm11 = vcmp.eq.f32.partialorder %v1009_v63, 0.0 }
 0x338   :  { %v3115_v18 = vpop.f32.mrf.mxu2 }
 0x339   :  { %v998_v23 = vmul.f32 %v3115_v18, %v3115_v18  ;;  %v1183_v24 = vpack.c.bf16 %v3115_v18, %v3107_v11 }
 0x33b   :  { %v1004_v26 = vadd.f32 %v998_v23, %v992_v19 }
 0x33d   :  { %v2533_v27 = vpop.eup %2532  ;;  %v1010_v29 = vmax.f32 %v1004_v26, 1e-08 }
 0x33e   :  { %v1016_v43 = vmul.f32 %v2533_v27, %v1009_v63 }
 0x33f   :  { %2534 = vrsqrt.f32 %v1010_v29  ;;  %vm1034_vm10 = vcmp.eq.f32.partialorder %v1010_v29, inf  ;;  %v1037_v55 = vand.u32 2147483648, %v1010_v29  ;;  %vm1036_vm12 = vcmp.eq.f32.partialorder %v1010_v29, 0.0 }
 0x340   :  { %v3125_v20 = vpop.f32.mrf.mxu2  ;;  %v1017_v46 = vmul.f32 %v2533_v27, %v1016_v43  ;;  %v990_v43 = vmul.f32 %v3099_v32, %v3099_v32 }
 0x341   :  { %v999_v47 = vmul.f32 %v3125_v20, %v3125_v20 }
 0x342   :  { %v1018_v36 = vmul.f32 0.5, %v1017_v46 }
 0x343   :  { %v1005_v51 = vadd.f32 %v999_v47, %v993_v48 }
 0x344   :  { %v1019_v39 = vsub.f32 1.5, %v1018_v36  ;;  %v2458_v36 = vld [vmem:[%s3683_s14] sm:$0xff] }
 0x345   :  { %v2535_v45 = vpop.eup %2534  ;;  %v3131_v53 = vmax.f32 %v1005_v51, 1e-08  ;;  %v880_v51 = vld [vmem:[%s3684_s13] sm:$0x3]  ;;  %1298 = vmatpush.bf16.msrb.mxu3 %v2458_v36  ;;  %v1178_v36 = vpack.c.bf16 %v3075_v40, %v3073_v25 }
 0x346   :  { %v1028_v30 = vmul.f32 %v2535_v45, %v1010_v29  ;;  %v1020_v58 = vmul.f32 %v2533_v27, %v1019_v39  ;;  %v3203_v25 = vld [vmem:[%s3682_s12] ss:$0 sm:$0xff] }
 0x347   :  { %2536 = vrsqrt.f32 %v3131_v53  ;;  %vm1046_vm13 = vcmp.eq.f32.partialorder %v3131_v53, inf  ;;  %v1049_v34 = vand.u32 2147483648, %v3131_v53  ;;  %vm1048_vm15 = vcmp.eq.f32.partialorder %v3131_v53, 0.0 }
 0x348   :  { %v3136_v33 = vpop.f32.mrf.mxu2  ;;  %v1029_v54 = vmul.f32 %v2535_v45, %v1028_v30  ;;  %v1021_v37 = vmul.f32 %v1020_v58, %v1009_v63  ;;  %v1214_v30 = vsel %vm921_vm2, %v880_v51, 0  ;;  %v1180_v51 = vpack.c.bf16 %v3091_v7, %v3085_v28 }
 0x349   :  { %v1000_v57 = vmul.f32 %v3136_v33, %v3136_v33  ;;  %v1184_v60 = vpack.c.bf16 %v3136_v33, %v3125_v20  ;;  %1223 = vmatpush.bf16.msra.mxu1 %v1214_v30 }
 0x34a   :  { %v1030_v42 = vmul.f32 0.5, %v1029_v54  ;;  %v1023_v3 = vsel %vm1022_vm9, %v1009_v63, %v1021_v37  ;;  %v984_v63 = vmul.f32 %v3083_v22, %v3083_v22 }
 0x34b   :  { %v1006_v61 = vadd.f32 %v1000_v57, %v994_v59  ;;  %v1026_v19 = vsel %vm1024_vm11, %v1025_v12, %v1023_v3 }
 0x34c   :  { %v1031_v1 = vsub.f32 1.5, %v1030_v42  ;;  %v996_v39 = vadd.f32 %v990_v43, %v984_v63 }
 0x34d   :  { %v2537_v2 = vpop.eup %2536  ;;  %v3144_v5 = vmax.f32 %v1006_v61, 1e-08 }
 0x34e   :  { %v1032_v41 = vmul.f32 %v2535_v45, %v1031_v1  ;;  %v1040_v6 = vmul.f32 %v2537_v2, %v3131_v53 }
 0x34f   :  { %2538 = vrsqrt.f32 %v3144_v5  ;;  %vm1058_vm14 = vcmp.eq.f32.partialorder %v3144_v5, inf  ;;  %vm1060_vm1 = vcmp.eq.f32.partialorder %v3144_v5, 0.0 }
 0x350   :  { %v3150_v10 = vpop.f32.mrf.mxu2  ;;  %v1033_v4 = vmul.f32 %v1032_v41, %v1010_v29  ;;  %v1041_v49 = vmul.f32 %v2537_v2, %v1040_v6  ;;  %v1061_v41 = vand.u32 2147483648, %v3144_v5 }
 0x351   :  { %v1001_v50 = vmul.f32 %v3150_v10, %v3150_v10 }
 0x352   :  { %v1035_v16 = vsel %vm1034_vm10, %v1010_v29, %v1033_v4  ;;  %v1042_v0 = vmul.f32 0.5, %v1041_v49 }
 0x353   :  { %v1007_v17 = vadd.f32 %v1001_v50, %v995_v9  ;;  %v1038_v23 = vsel %vm1036_vm12, %v1037_v55, %v1035_v16 }
 0x354   :  { %v1090_v26 = vpack.c.bf16 %v1038_v23, %v1026_v19  ;;  %v1043_v27 = vsub.f32 1.5, %v1042_v0 }
 0x355   :  { %v2539_v21 = vpop.eup %2538  ;;  %v1013_v44 = vmax.f32 %v1007_v17, 1e-08 }
 0x356   :  { %2360 = vmatmul.msk.bf16.vlgmr.msrb.gmra.mxu1 %vm893_vm5, %v1090_v26  ;;  %v1052_v46 = vmul.f32 %v2539_v21, %v3144_v5  ;;  %v1044_v48 = vmul.f32 %v2537_v2, %v1043_v27 }
 0x357   :  { %2540 = vrsqrt.f32 %v1013_v44  ;;  %vm1070_vm3 = vcmp.eq.f32.partialorder %v1013_v44, inf  ;;  %vm1072_vm6 = vcmp.eq.f32.partialorder %v1013_v44, 0.0 }
 0x358   :  { %v3160_v29 = vpop.f32.mrf.mxu2  ;;  %v1053_v47 = vmul.f32 %v2539_v21, %v1052_v46  ;;  %v1045_v54 = vmul.f32 %v1044_v48, %v3131_v53 }
 0x359   :  { %v1002_v45 = vmul.f32 %v3160_v29, %v3160_v29  ;;  %v1185_v52 = vpack.c.bf16 %v3160_v29, %v3150_v10 }
 0x35a   :  { %v1054_v56 = vmul.f32 0.5, %v1053_v47  ;;  %v1047_v37 = vsel %vm1046_vm13, %v3131_v53, %v1045_v54  ;;  %v1177_v47 = vpack.c.bf16 %v3067_v38, %v3065_v35  ;;  %v1181_v35 = vpack.c.bf16 %v3095_v31, %v3093_v15  ;;  %v1153_v38 = vpop.f32.mrf.mxu0 }
 0x35b   :  { %v1008_v58 = vadd.f32 %v1002_v45, %v996_v39  ;;  %v1050_v3 = vsel %vm1048_vm15, %v1049_v34, %v1047_v37  ;;  %v2459_v39 = vld [vmem:[%s3685_s17] sm:$0xff] }
 0x35c   :  { %v1055_v59 = vsub.f32 1.5, %v1054_v56  ;;  %1841 = vmatpush.bf16.msrb.mxu2 %v2459_v39 }
 0x35d   :  { %v2541_v57 = vpop.eup %2540  ;;  %v1014_v42 = vmax.f32 %v1008_v58, 1e-08 }
 0x35e   :  { %v1056_v61 = vmul.f32 %v2539_v21, %v1055_v59  ;;  %v1064_v62 = vmul.f32 %v2541_v57, %v1013_v44  ;;  %v1073_v21 = vand.u32 2147483648, %v1013_v44 }
 0x35f   :  { %2542 = vrsqrt.f32 %v1014_v42  ;;  %vm1082_vm4 = vcmp.eq.f32.partialorder %v1014_v42, inf  ;;  %vm1084_vm7 = vcmp.eq.f32.partialorder %v1014_v42, 0.0 }
 0x360   :  { %v1057_v1 = vmul.f32 %v1056_v61, %v3144_v5  ;;  %v1065_v2 = vmul.f32 %v2541_v57, %v1064_v62  ;;  %v1158_v45 = vpop.f32.mrf.mxu2 }
 0x362   :  { %v1059_v6 = vsel %vm1058_vm14, %v3144_v5, %v1057_v1  ;;  %v1066_v9 = vmul.f32 0.5, %v1065_v2  ;;  %v1085_v5 = vand.u32 2147483648, %v1014_v42  ;;  %v1155_v7 = vpop.f32.mrf.mxu0 }
 0x363   :  { %v1062_v4 = vsel %vm1060_vm1, %v1061_v41, %v1059_v6 }
 0x364   :  { %v1091_v49 = vpack.c.bf16 %v1062_v4, %v1050_v3  ;;  %v1067_v50 = vsub.f32 1.5, %v1066_v9 }
 0x365   :  { %v2543_v12 = vpop.eup %2542 }
 0x366   :  { %2361 = vmatmul.msk.bf16.gmra.mxu1 %vm893_vm5, %v1091_v49  ;;  %v1076_v55 = vmul.f32 %v2543_v12, %v1014_v42  ;;  %v1068_v16 = vmul.f32 %v2541_v57, %v1067_v50 }
 0x368   :  { %v1077_v0 = vmul.f32 %v2543_v12, %v1076_v55  ;;  %v1069_v19 = vmul.f32 %v1068_v16, %v1013_v44  ;;  %v1160_v57 = vpop.f32.mrf.mxu2 }
 0x36a   :  { %v1078_v17 = vmul.f32 0.5, %v1077_v0  ;;  %v1071_v53 = vsel %vm1070_vm3, %v1013_v44, %v1069_v19  ;;  %v1179_v44 = vpack.c.bf16 %v3083_v22, %v3081_v14 }
 0x36b   :  { %v1074_v46 = vsel %vm1072_vm6, %v1073_v21, %v1071_v53 }
 0x36c   :  { %v1079_v23 = vsub.f32 1.5, %v1078_v17 }
 0x36e   :  { %v1080_v26 = vmul.f32 %v2543_v12, %v1079_v23 }
 0x370   :  { %v1081_v27 = vmul.f32 %v1080_v26, %v1014_v42  ;;  %v1163_v4 = vpop.f32.mrf.mxu2 }
 0x372   :  { %v1083_v43 = vsel %vm1082_vm4, %v1014_v42, %v1081_v27 }
 0x373   :  { %v1086_v63 = vsel %vm1084_vm7, %v1085_v5, %v1083_v43 }
 0x374   :  { %v1092_v48 = vpack.c.bf16 %v1086_v63, %v1074_v46 }
 0x376   :  { %2362 = vmatmul.msk.bf16.gmra.mxu1 %vm893_vm5, %v1092_v48 }
 0x378   :  { %v1165_v20 = vpop.f32.mrf.mxu2 }
 0x386   :  { %2370 = vmatmul.msk.bf16.vlgmr.msra.gmra.mxu1 %vm893_vm5, %v1177_v47 }
 0x396   :  { %2371 = vmatmul.msk.bf16.gmra.mxu1 %vm893_vm5, %v1178_v36 }
 0x3a6   :  { %2372 = vmatmul.msk.bf16.gmra.mxu1 %vm893_vm5, %v1179_v44 }
 0x3b6   :  { %2373 = vmatmul.msk.bf16.gmra.mxu1 %vm893_vm5, %v1180_v51 }
 0x3c6   :  { %2374 = vmatmul.msk.bf16.gmra.mxu1 %vm893_vm5, %v1181_v35 }
 0x3d3   :  { %v1114_v40 = vpop.f32.mrf.mxu1 }
 0x3d4   :  { %v1154_v14 = vadd.f32 %v1153_v38, %v1114_v40 }
 0x3d6   :  { %v3206_v22 = vadd.f32 %v3203_v25, %v1154_v14  ;;  %2375 = vmatmul.msk.bf16.gmra.mxu1 %vm893_vm5, %v1182_v13 }
 0x3d8   :  { %v2392_v28 = vmul.f32 -1.442695, %v3206_v22 }
 0x3da   :  { %2544 = vpow2.f32 %v2392_v28 }
 0x3db   :  { %v1116_v15 = vpop.f32.mrf.mxu1 }
 0x3dc   :  { %v1156_v31 = vadd.f32 %v1155_v7, %v1116_v15 }
 0x3de   :  { %v3217_v30 = vadd.f32 %v3203_v25, %v1156_v31 }
 0x3e0   :  { %v2545_v56 = vpop.eup %2544  ;;  %v1270_v8 = vpack.c.bf16 %v3217_v30, %v3206_v22  ;;  %v2393_v32 = vmul.f32 -1.442695, %v3217_v30 }
 0x3e1   :  { %v1465_v13 = vadd.f32 1.0, %v2545_v56 }
 0x3e2   :  { %2546 = vpow2.f32 %v2393_v32  ;;  %2383 = vmatmul.msk.bf16.vlgmr.msrb.gmra.mxu3 %vm589_vm0, %v1270_v8 }
 0x3e3   :  { %2548 = vrcp.f32 %v1465_v13  ;;  %v1119_v58 = vpop.f32.mrf.mxu1  ;;  %v1482_v55 = vand.u32 2147483648, %v1465_v13  ;;  %vm1476_vm9 = vweird.f32 %v1465_v13  ;;  %v1480_v0 = vand.u32 2147483647, %v1465_v13 }
 0x3e4   :  { %v1159_v54 = vadd.f32 %v1158_v45, %v1119_v58 }
 0x3e5   :  { %v1483_v43 = vor.u32 1.1754944e-38, %v1482_v55  ;;  %vm1481_vm12 = vcmp.eq.f32.partialorder %v1480_v0, 8.507059e+37 }
 0x3e6   :  { %v3224_v59 = vadd.f32 %v3203_v25, %v1159_v54  ;;  %2376 = vmatmul.msk.bf16.gmra.mxu1 %vm893_vm5, %v1183_v24 }
 0x3e8   :  { %v2547_v42 = vpop.eup %2546  ;;  %v2394_v61 = vmul.f32 -1.442695, %v3224_v59 }
 0x3e9   :  { %v2549_v62 = vpop.eup %2548  ;;  %v1466_v37 = vadd.f32 1.0, %v2547_v42 }
 0x3ea   :  { %v1472_v1 = vmul.f32 %v2549_v62, %v1465_v13  ;;  %2550 = vpow2.f32 %v2394_v61  ;;  %vm1477_vm8 = vweird.f32 %v2549_v62 }
 0x3eb   :  { %2552 = vrcp.f32 %v1466_v37  ;;  %v1121_v2 = vpop.f32.mrf.mxu1  ;;  %vm3241_vm10 = vmor %vm1476_vm9, %vm1477_vm8  ;;  %v1495_v26 = vand.u32 2147483647, %v1466_v37  ;;  %v1497_v53 = vand.u32 2147483648, %v1466_v37  ;;  %vm1491_vm13 = vweird.f32 %v1466_v37 }
 0x3ec   :  { %v1473_v34 = vsub.f32 1.0, %v1472_v1  ;;  %v1161_v41 = vadd.f32 %v1160_v57, %v1121_v2 }
 0x3ed   :  { %v1498_v44 = vor.u32 1.1754944e-38, %v1497_v53  ;;  %vm1496_vm15 = vcmp.eq.f32.partialorder %v1495_v26, 8.507059e+37 }
 0x3ee   :  { %v1474_v6 = vmul.f32 %v2549_v62, %v1473_v34  ;;  %v3232_v9 = vadd.f32 %v3203_v25, %v1161_v41 }
 0x3f0   :  { %v2551_v3 = vpop.eup %2550  ;;  %v2395_v11 = vmul.f32 -1.442695, %v3232_v9  ;;  %v1271_v18 = vpack.c.bf16 %v3232_v9, %v3224_v59  ;;  %v1475_v50 = vadd.f32 %v2549_v62, %v1474_v6 }
 0x3f1   :  { %v2553_v24 = vpop.eup %2552  ;;  %v3237_v49 = vadd.f32 1.0, %v2551_v3 }
 0x3f2   :  { %v1487_v12 = vmul.f32 %v2553_v24, %v1466_v37  ;;  %2554 = vpow2.f32 %v2395_v11  ;;  %2384 = vmatmul.msk.bf16.gmra.mxu3 %vm589_vm0, %v1271_v18  ;;  %v1479_v27 = vsel %vm3241_vm10, %v2549_v62, %v1475_v50  ;;  %vm1492_vm11 = vweird.f32 %v2553_v24 }
 0x3f3   :  { %2556 = vrcp.f32 %v3237_v49  ;;  %v1124_v16 = vpop.f32.mrf.mxu1  ;;  %v1484_v36 = vsel %vm1481_vm12, %v1483_v43, %v1479_v27  ;;  %vm1493_vm14 = vmor %vm1491_vm13, %vm1492_vm11  ;;  %v1512_v58 = vand.u32 2147483648, %v3237_v49  ;;  %vm1506_vm3 = vweird.f32 %v3237_v49 }
 0x3f4   :  { %v1488_v17 = vsub.f32 1.0, %v1487_v12  ;;  %v1164_v19 = vadd.f32 %v1163_v4, %v1124_v16  ;;  %v1561_v40 = vmul.f32 %v1484_v36, %v3206_v22  ;;  %v1510_v54 = vand.u32 2147483647, %v3237_v49 }
 0x3f5   :  { %v1513_v1 = vor.u32 1.1754944e-38, %v1512_v58 }
 0x3f6   :  { %v1489_v21 = vmul.f32 %v2553_v24, %v1488_v17  ;;  %v3248_v5 = vadd.f32 %v3203_v25, %v1164_v19  ;;  %2377 = vmatmul.msk.bf16.gmra.mxu1 %vm893_vm5, %v1184_v60  ;;  %vm1511_vm7 = vcmp.eq.f32.partialorder %v1510_v54, 8.507059e+37 }
 0x3f8   :  { %v2555_v46 = vpop.eup %2554  ;;  %v1490_v63 = vadd.f32 %v2553_v24, %v1489_v21  ;;  %v2396_v48 = vmul.f32 -1.442695, %v3248_v5 }
 0x3f9   :  { %v2557_v47 = vpop.eup %2556  ;;  %v1468_v51 = vadd.f32 1.0, %v2555_v46 }
 0x3fa   :  { %v1494_v35 = vsel %vm1493_vm14, %v2553_v24, %v1490_v63  ;;  %v1502_v38 = vmul.f32 %v2557_v47, %v3237_v49  ;;  %2558 = vpow2.f32 %v2396_v48  ;;  %vm1507_vm1 = vweird.f32 %v2557_v47 }
 0x3fb   :  { %v1499_v33 = vsel %vm1496_vm15, %v1498_v44, %v1494_v35  ;;  %2560 = vrcp.f32 %v1468_v51  ;;  %v1126_v60 = vpop.f32.mrf.mxu1  ;;  %vm1508_vm4 = vmor %vm1506_vm3, %vm1507_vm1  ;;  %v1527_v42 = vand.u32 2147483648, %v1468_v51  ;;  %v1525_v37 = vand.u32 2147483647, %v1468_v51 }
 0x3fc   :  { %v1562_v14 = vmul.f32 %v1499_v33, %v3217_v30  ;;  %v1503_v28 = vsub.f32 1.0, %v1502_v38  ;;  %v1166_v7 = vadd.f32 %v1165_v20, %v1126_v60  ;;  %vm1521_vm8 = vweird.f32 %v1468_v51 }
 0x3fd   :  { %v1528_v3 = vor.u32 1.1754944e-38, %v1527_v42  ;;  %vm1526_vm10 = vcmp.eq.f32.partialorder %v1525_v37, 8.507059e+37 }
 0x3fe   :  { %v1777_v15 = vpack.c.bf16 %v1562_v14, %v1561_v40  ;;  %v1504_v31 = vmul.f32 %v2557_v47, %v1503_v28  ;;  %v3259_v39 = vadd.f32 %v3203_v25, %v1166_v7 }
 0x400   :  { %v2559_v45 = vpop.eup %2558  ;;  %v2397_v56 = vmul.f32 -1.442695, %v3259_v39  ;;  %2414 = vmatmul.msk.bf16.vlgmr.msrb.gmra.mxu2 %vm589_vm0, %v1777_v15  ;;  %v1272_v8 = vpack.c.bf16 %v3259_v39, %v3248_v5  ;;  %v1505_v22 = vadd.f32 %v2557_v47, %v1504_v31 }
 0x401   :  { %v2561_v32 = vpop.eup %2560  ;;  %v1469_v13 = vadd.f32 1.0, %v2559_v45 }
 0x402   :  { %v1517_v30 = vmul.f32 %v2561_v32, %v1468_v51  ;;  %2562 = vpow2.f32 %v2397_v56  ;;  %2385 = vmatmul.msk.bf16.gmra.mxu3 %vm589_vm0, %v1272_v8  ;;  %v1509_v61 = vsel %vm1508_vm4, %v2557_v47, %v1505_v22  ;;  %vm1522_vm6 = vweird.f32 %v2561_v32 }
 0x403   :  { %2564 = vrcp.f32 %v1469_v13  ;;  %v3267_v25 = vpop.f32.mrf.mxu1  ;;  %v1514_v6 = vsel %vm1511_vm7, %v1513_v1, %v1509_v61  ;;  %vm1523_vm9 = vmor %vm1521_vm8, %vm1522_vm6  ;;  %v1542_v17 = vand.u32 2147483648, %v1469_v13  ;;  %vm1536_vm12 = vweird.f32 %v1469_v13 }
 0x404   :  { %v1518_v57 = vsub.f32 1.0, %v1517_v30  ;;  %v1563_v10 = vmul.f32 %v1514_v6, %v3224_v59  ;;  %v1540_v19 = vand.u32 2147483647, %v1469_v13 }
 0x405   :  { %v1543_v21 = vor.u32 1.1754944e-38, %v1542_v17 }
 0x406   :  { %v1519_v62 = vmul.f32 %v2561_v32, %v1518_v57  ;;  %2378 = vmatmul.msk.bf16.gmra.mxu1 %vm893_vm5, %v1185_v52  ;;  %vm1541_vm15 = vcmp.eq.f32.partialorder %v1540_v19, 8.507059e+37 }
 0x408   :  { %v2563_v2 = vpop.eup %2562  ;;  %v1520_v34 = vadd.f32 %v2561_v32, %v1519_v62 }
 0x409   :  { %v2565_v41 = vpop.eup %2564  ;;  %v1470_v11 = vadd.f32 1.0, %v2563_v2 }
 0x40a   :  { %v1524_v18 = vsel %vm1523_vm9, %v2561_v32, %v1520_v34  ;;  %v1532_v24 = vmul.f32 %v2565_v41, %v1469_v13  ;;  %vm1537_vm11 = vweird.f32 %v2565_v41 }
 0x40b   :  { %v1529_v4 = vsel %vm1526_vm10, %v1528_v3, %v1524_v18  ;;  %2566 = vrcp.f32 %v1470_v11  ;;  %v3275_v49 = vpop.f32.mrf.mxu1  ;;  %vm1538_vm13 = vmor %vm1536_vm12, %vm1537_vm11  ;;  %v1557_v26 = vand.u32 2147483648, %v1470_v11  ;;  %vm1551_vm1 = vweird.f32 %v1470_v11 }
 0x40c   :  { %v1564_v29 = vmul.f32 %v1529_v4, %v3232_v9  ;;  %v1533_v52 = vsub.f32 1.0, %v1532_v24  ;;  %v1555_v9 = vand.u32 2147483647, %v1470_v11 }
 0x40d   :  { %v1558_v63 = vor.u32 1.1754944e-38, %v1557_v26 }
 0x40e   :  { %v1534_v50 = vmul.f32 %v2565_v41, %v1533_v52  ;;  %v1778_v12 = vpack.c.bf16 %v1564_v29, %v1563_v10  ;;  %vm1556_vm4 = vcmp.eq.f32.partialorder %v1555_v9, 8.507059e+37 }
 0x410   :  { %2415 = vmatmul.msk.bf16.gmra.mxu2 %vm589_vm0, %v1778_v12  ;;  %v1535_v16 = vadd.f32 %v2565_v41, %v1534_v50 }
 0x411   :  { %v2567_v55 = vpop.eup %2566 }
 0x412   :  { %v1547_v0 = vmul.f32 %v2567_v55, %v1470_v11  ;;  %v1539_v59 = vsel %vm1538_vm13, %v2565_v41, %v1535_v16  ;;  %vm1552_vm14 = vweird.f32 %v2567_v55 }
 0x413   :  { %v3280_v53 = vpop.f32.mrf.mxu1  ;;  %v1544_v46 = vsel %vm1541_vm15, %v1543_v21, %v1539_v59  ;;  %vm1553_vm3 = vmor %vm1551_vm1, %vm1552_vm14 }
 0x414   :  { %v1548_v23 = vsub.f32 1.0, %v1547_v0  ;;  %v1565_v36 = vmul.f32 %v1544_v46, %v3248_v5  ;;  %v3302_v5 = vld [vmem:[%s3686_s15] ss:$0 sm:$0xff] }
 0x416   :  { %v1549_v27 = vmul.f32 %v2567_v55, %v1548_v23 }
 0x418   :  { %v1550_v43 = vadd.f32 %v2567_v55, %v1549_v27 }
 0x41a   :  { %v1554_v48 = vsel %vm1553_vm3, %v2567_v55, %v1550_v43 }
 0x41b   :  { %v1559_v47 = vsel %vm1556_vm4, %v1558_v63, %v1554_v48  ;;  %v3284_v35 = vpop.f32.mrf.mxu1 }
 0x41c   :  { %v1566_v44 = vmul.f32 %v1559_v47, %v3259_v39  ;;  %v1567_v39 = vld [vmem:[%s3687_s16] sm:$0x3] }
 0x41d   :  { %v1613_v56 = vsel %vm921_vm2, %v1567_v39, 0 }
 0x41e   :  { %v1779_v51 = vpack.c.bf16 %v1566_v44, %v1565_v36  ;;  %1622 = vmatpush.bf16.msra.mxu0 %v1613_v56 }
 0x420   :  { %2416 = vmatmul.msk.bf16.gmra.mxu2 %vm589_vm0, %v1779_v51 }
 0x423   :  { %v3287_v38 = vpop.f32.mrf.mxu1 }
 0x42b   :  { %v3289_v20 = vpop.f32.mrf.mxu1 }
 0x433   :  { %v3291_v33 = vpop.f32.mrf.mxu1 }
 0x43b   :  { %v3293_v60 = vpop.f32.mrf.mxu1 }
 0x443   :  { %v3295_v40 = vpop.f32.mrf.mxu1 }
 0x44b   :  { %v3297_v14 = vpop.f32.mrf.mxu1 }
 0x453   :  { %v3304_v28 = vpop.f32.mrf.mxu1 }
 0x45b   :  { %v3312_v32 = vpop.f32.mrf.mxu1 }
 0x463   :  { %v1255_v62 = vpop.f32.mrf.mxu1 }
 0x465   :  { %v1300_v7 = vpop.f32.mrf.mxu3 }
 0x466   :  { %v1301_v15 = vadd.f32 %v3302_v5, %v1300_v7 }
 0x468   :  { %v2386_v31 = vmul.f32 -1.442695, %v1301_v15 }
 0x46a   :  { %2568 = vpow2.f32 %v2386_v31 }
 0x46b   :  { %v1257_v52 = vpop.f32.mrf.mxu1 }
 0x46d   :  { %v1302_v45 = vpop.f32.mrf.mxu3 }
 0x46e   :  { %v1303_v8 = vadd.f32 %v3302_v5, %v1302_v45 }
 0x470   :  { %v2569_v13 = vpop.eup %2568  ;;  %v2387_v22 = vmul.f32 -1.442695, %v1303_v8 }
 0x471   :  { %v1333_v30 = vadd.f32 1.0, %v2569_v13 }
 0x472   :  { %2570 = vpow2.f32 %v2387_v22 }
 0x473   :  { %2572 = vrcp.f32 %v1333_v30  ;;  %v1350_v29 = vand.u32 2147483648, %v1333_v30  ;;  %vm1344_vm7 = vweird.f32 %v1333_v30  ;;  %v1348_v50 = vand.u32 2147483647, %v1333_v30  ;;  %v1260_v31 = vpop.f32.mrf.mxu1 }
 0x475   :  { %v1305_v58 = vpop.f32.mrf.mxu3  ;;  %v1351_v59 = vor.u32 1.1754944e-38, %v1350_v29  ;;  %vm1349_vm10 = vcmp.eq.f32.partialorder %v1348_v50, 8.507059e+37 }
 0x476   :  { %v1306_v54 = vadd.f32 %v3302_v5, %v1305_v58 }
 0x478   :  { %v2571_v57 = vpop.eup %2570  ;;  %v2388_v42 = vmul.f32 -1.442695, %v1306_v54 }
 0x479   :  { %v2573_v61 = vpop.eup %2572  ;;  %v1334_v37 = vadd.f32 1.0, %v2571_v57 }
 0x47a   :  { %v1340_v1 = vmul.f32 %v2573_v61, %v1333_v30  ;;  %2574 = vpow2.f32 %v2388_v42  ;;  %vm1345_vm6 = vweird.f32 %v2573_v61 }
 0x47b   :  { %2576 = vrcp.f32 %v1334_v37  ;;  %vm3319_vm8 = vmor %vm1344_vm7, %vm1345_vm6  ;;  %v1363_v16 = vand.u32 2147483647, %v1334_v37  ;;  %v1365_v0 = vand.u32 2147483648, %v1334_v37  ;;  %vm1359_vm11 = vweird.f32 %v1334_v37 }
 0x47c   :  { %v1341_v2 = vsub.f32 1.0, %v1340_v1 }
 0x47d   :  { %v1307_v34 = vpop.f32.mrf.mxu3  ;;  %v1366_v46 = vor.u32 1.1754944e-38, %v1365_v0  ;;  %vm1364_vm13 = vcmp.eq.f32.partialorder %v1363_v16, 8.507059e+37 }
 0x47e   :  { %v1342_v41 = vmul.f32 %v2573_v61, %v1341_v2  ;;  %v1308_v6 = vadd.f32 %v3302_v5, %v1307_v34 }
 0x480   :  { %v2575_v3 = vpop.eup %2574  ;;  %v2389_v11 = vmul.f32 -1.442695, %v1308_v6  ;;  %v1343_v4 = vadd.f32 %v2573_v61, %v1342_v41  ;;  %v1262_v41 = vpop.f32.mrf.mxu1 }
 0x481   :  { %v2577_v18 = vpop.eup %2576  ;;  %v3316_v24 = vadd.f32 1.0, %v2575_v3 }
 0x482   :  { %v1355_v10 = vmul.f32 %v2577_v18, %v1334_v37  ;;  %2578 = vpow2.f32 %v2389_v11  ;;  %vm1360_vm9 = vweird.f32 %v2577_v18  ;;  %v1347_v26 = vsel %vm3319_vm8, %v2573_v61, %v1343_v4 }
 0x483   :  { %2580 = vrcp.f32 %v3316_v24  ;;  %vm1361_vm12 = vmor %vm1359_vm11, %vm1360_vm9  ;;  %v3326_v48 = vsel %vm1349_vm10, %v1351_v59, %v1347_v26  ;;  %v1380_v61 = vand.u32 2147483648, %v3316_v24  ;;  %vm1374_vm15 = vweird.f32 %v3316_v24 }
 0x484   :  { %v1356_v12 = vsub.f32 1.0, %v1355_v10  ;;  %v1429_v7 = vmul.f32 %v3326_v48, %v3267_v25  ;;  %v3336_v45 = vmul.f32 %v3326_v48, %v1255_v62 }
 0x485   :  { %v1310_v17 = vpop.f32.mrf.mxu3  ;;  %v1381_v6 = vor.u32 1.1754944e-38, %v1380_v61  ;;  %v1435_v61 = vmul.f32 %v3326_v48, %v3291_v33 }
 0x486   :  { %v1357_v19 = vmul.f32 %v2577_v18, %v1356_v12  ;;  %v1311_v23 = vadd.f32 %v3302_v5, %v1310_v17 }
 0x488   :  { %v2579_v27 = vpop.eup %2578  ;;  %v1358_v9 = vadd.f32 %v2577_v18, %v1357_v19  ;;  %v2390_v21 = vmul.f32 -1.442695, %v1311_v23 }
 0x489   :  { %v2581_v43 = vpop.eup %2580  ;;  %v1336_v63 = vadd.f32 1.0, %v2579_v27  ;;  %v1265_v27 = vpop.f32.mrf.mxu1 }
 0x48a   :  { %v1370_v47 = vmul.f32 %v2581_v43, %v3316_v24  ;;  %2582 = vpow2.f32 %v2390_v21  ;;  %v1362_v36 = vsel %vm1361_vm12, %v2577_v18, %v1358_v9  ;;  %vm1375_vm14 = vweird.f32 %v2581_v43 }
 0x48b   :  { %2584 = vrcp.f32 %v1336_v63  ;;  %v3329_v44 = vsel %vm1364_vm13, %v1366_v46, %v1362_v36  ;;  %vm1376_vm1 = vmor %vm1374_vm15, %vm1375_vm14  ;;  %v1395_v37 = vand.u32 2147483648, %v1336_v63  ;;  %v1393_v34 = vand.u32 2147483647, %v1336_v63 }
 0x48c   :  { %v1371_v51 = vsub.f32 1.0, %v1370_v47  ;;  %v1430_v15 = vmul.f32 %v3329_v44, %v3275_v49  ;;  %v3339_v56 = vmul.f32 %v3329_v44, %v1257_v52  ;;  %vm1389_vm6 = vweird.f32 %v1336_v63 }
 0x48d   :  { %v1312_v39 = vpop.f32.mrf.mxu3  ;;  %v1396_v29 = vor.u32 1.1754944e-38, %v1395_v37  ;;  %vm1394_vm8 = vcmp.eq.f32.partialorder %v1393_v34, 8.507059e+37 }
 0x48e   :  { %v1313_v8 = vadd.f32 %v3302_v5, %v1312_v39  ;;  %v1576_v13 = vpack.c.bf16 %v1430_v15, %v1429_v7  ;;  %v1372_v22 = vmul.f32 %v2581_v43, %v1371_v51  ;;  %v1582_v30 = vpack.c.bf16 %v3339_v56, %v3336_v45 }
 0x48f   :  { %v1378_v5 = vand.u32 2147483647, %v3316_v24 }
 0x490   :  { %v2583_v58 = vpop.eup %2582  ;;  %v2391_v25 = vmul.f32 -1.442695, %v1313_v8  ;;  %2398 = vmatmul.msk.bf16.vlgmr.msra.gmra.mxu0 %vm893_vm5, %v1576_v13  ;;  %v1373_v42 = vadd.f32 %v2581_v43, %v1372_v22 }
 0x491   :  { %v2585_v49 = vpop.eup %2584  ;;  %v1337_v54 = vadd.f32 1.0, %v2583_v58  ;;  %vm1379_vm4 = vcmp.eq.f32.partialorder %v1378_v5, 8.507059e+37  ;;  %v1267_v8 = vpop.f32.mrf.mxu1 }
 0x492   :  { %v1385_v57 = vmul.f32 %v2585_v49, %v1336_v63  ;;  %2586 = vpow2.f32 %v2391_v25  ;;  %v1377_v1 = vsel %vm1376_vm1, %v2581_v43, %v1373_v42  ;;  %vm1390_vm3 = vweird.f32 %v2585_v49 }
 0x493   :  { %2588 = vrcp.f32 %v1337_v54  ;;  %v1382_v10 = vsel %vm1379_vm4, %v1381_v6, %v1377_v1  ;;  %vm1391_vm7 = vmor %vm1389_vm6, %vm1390_vm3  ;;  %v1410_v43 = vand.u32 2147483648, %v1337_v54  ;;  %vm1404_vm10 = vweird.f32 %v1337_v54 }
 0x494   :  { %v1386_v62 = vsub.f32 1.0, %v1385_v57  ;;  %v1431_v55 = vmul.f32 %v1382_v10, %v3280_v53  ;;  %v1443_v0 = vmul.f32 %v1382_v10, %v1260_v31  ;;  %v1408_v63 = vand.u32 2147483647, %v1337_v54 }
 0x495   :  { %v1411_v51 = vor.u32 1.1754944e-38, %v1410_v43  ;;  %v1436_v42 = vmul.f32 %v3329_v44, %v3293_v60 }
 0x496   :  { %v1387_v2 = vmul.f32 %v2585_v49, %v1386_v62  ;;  %vm1409_vm14 = vcmp.eq.f32.partialorder %v1408_v63, 8.507059e+37 }
 0x497   :  { %v1579_v62 = vpack.c.bf16 %v1436_v42, %v1435_v61 }
 0x498   :  { %v2587_v3 = vpop.eup %2586  ;;  %v1388_v11 = vadd.f32 %v2585_v49, %v1387_v2 }
 0x499   :  { %v2589_v18 = vpop.eup %2588  ;;  %v1338_v4 = vadd.f32 1.0, %v2587_v3 }
 0x49a   :  { %v1400_v52 = vmul.f32 %v2589_v18, %v1337_v54  ;;  %v1392_v50 = vsel %vm1391_vm7, %v2585_v49, %v1388_v11  ;;  %vm1405_vm9 = vweird.f32 %v2589_v18 }
 0x49b   :  { %2590 = vrcp.f32 %v1338_v4  ;;  %v1397_v24 = vsel %vm1394_vm8, %v1396_v29, %v1392_v50  ;;  %vm1406_vm11 = vmor %vm1404_vm10, %vm1405_vm9  ;;  %v1425_v53 = vand.u32 2147483648, %v1338_v4  ;;  %v1423_v36 = vand.u32 2147483647, %v1338_v4 }
 0x49c   :  { %v1401_v12 = vsub.f32 1.0, %v1400_v52  ;;  %v1432_v16 = vmul.f32 %v1397_v24, %v3284_v35  ;;  %v1444_v17 = vmul.f32 %v1397_v24, %v1262_v41  ;;  %vm1419_vm13 = vweird.f32 %v1338_v4 }
 0x49d   :  { %v1426_v31 = vor.u32 1.1754944e-38, %v1425_v53  ;;  %vm1424_vm1 = vcmp.eq.f32.partialorder %v1423_v36, 8.507059e+37  ;;  %v1438_v5 = vmul.f32 %v1397_v24, %v3297_v14 }
 0x49e   :  { %v1402_v19 = vmul.f32 %v2589_v18, %v1401_v12  ;;  %v1577_v23 = vpack.c.bf16 %v1432_v16, %v1431_v55  ;;  %v1583_v26 = vpack.c.bf16 %v1444_v17, %v1443_v0 }
 0x4a0   :  { %2399 = vmatmul.msk.bf16.gmra.mxu0 %vm893_vm5, %v1577_v23  ;;  %v1403_v21 = vadd.f32 %v2589_v18, %v1402_v19 }
 0x4a1   :  { %v2591_v59 = vpop.eup %2590 }
 0x4a2   :  { %v1415_v9 = vmul.f32 %v2591_v59, %v1338_v4  ;;  %v1407_v35 = vsel %vm1406_vm11, %v2589_v18, %v1403_v21  ;;  %vm1420_vm12 = vweird.f32 %v2591_v59 }
 0x4a3   :  { %v1412_v15 = vsel %vm1409_vm14, %v1411_v51, %v1407_v35  ;;  %vm1421_vm15 = vmor %vm1419_vm13, %vm1420_vm12 }
 0x4a4   :  { %v1416_v46 = vsub.f32 1.0, %v1415_v9  ;;  %v1433_v22 = vmul.f32 %v1412_v15, %v3287_v38  ;;  %v1445_v25 = vmul.f32 %v1412_v15, %v1265_v27  ;;  %v1437_v38 = vmul.f32 %v1382_v10, %v3295_v40 }
 0x4a5   :  { %v1439_v1 = vmul.f32 %v1412_v15, %v3304_v28 }
 0x4a6   :  { %v1417_v47 = vmul.f32 %v2591_v59, %v1416_v46 }
 0x4a8   :  { %v1418_v7 = vadd.f32 %v2591_v59, %v1417_v47 }
 0x4aa   :  { %v1422_v39 = vsel %vm1421_vm15, %v2591_v59, %v1418_v7 }
 0x4ab   :  { %v1427_v13 = vsel %vm1424_vm1, %v1426_v31, %v1422_v39 }
 0x4ac   :  { %v1434_v58 = vmul.f32 %v1427_v13, %v3289_v20  ;;  %v1446_v49 = vmul.f32 %v1427_v13, %v1267_v8  ;;  %v1580_v20 = vpack.c.bf16 %v1438_v5, %v1437_v38  ;;  %v1440_v37 = vmul.f32 %v1427_v13, %v3312_v32 }
 0x4ae   :  { %v1578_v54 = vpack.c.bf16 %v1434_v58, %v1433_v22  ;;  %v1584_v57 = vpack.c.bf16 %v1446_v49, %v1445_v25  ;;  %v1581_v2 = vpack.c.bf16 %v1440_v37, %v1439_v1 }
 0x4b0   :  { %2400 = vmatmul.msk.bf16.gmra.mxu0 %vm893_vm5, %v1578_v54 }
 0x4c0   :  { %2401 = vmatmul.msk.bf16.gmra.mxu0 %vm893_vm5, %v1579_v62 }
 0x4d0   :  { %2402 = vmatmul.msk.bf16.gmra.mxu0 %vm893_vm5, %v1580_v20 }
 0x4e0   :  { %2403 = vmatmul.msk.bf16.gmra.mxu0 %vm893_vm5, %v1581_v2 }
 0x4f0   :  { %2404 = vmatmul.msk.bf16.gmra.mxu0 %vm893_vm5, %v1582_v30  ;;  %v1570_v30 = vld [vmem:[%s3688_s18] sm:$0x3] }
 0x4f1   :  { %v1793_v34 = vsel %vm921_vm2, %v1570_v30, 0 }
 0x4f2   :  { %1802 = vmatpush.bf16.msra.mxu3 %v1793_v34 }
 0x500   :  { %2405 = vmatmul.msk.bf16.gmra.mxu0 %vm893_vm5, %v1583_v26 }
 0x50d   :  { %v3370_v33 = vpop.f32.mrf.mxu0 }
 0x50e   :  { %v1669_v50 = vmul.f32 %v3370_v33, %v3370_v33 }
 0x510   :  { %2406 = vmatmul.msk.bf16.gmra.mxu0 %vm893_vm5, %v1584_v57 }
 0x515   :  { %v3373_v60 = vpop.f32.mrf.mxu0 }
 0x516   :  { %v1867_v40 = vpack.c.bf16 %v3373_v60, %v3370_v33  ;;  %v1670_v19 = vmul.f32 %v3373_v60, %v3373_v60  ;;  %v1843_v33 = vpop.f32.mrf.mxu2 }
 0x51d   :  { %v3377_v14 = vpop.f32.mrf.mxu0 }
 0x51e   :  { %v1671_v53 = vmul.f32 %v3377_v14, %v3377_v14  ;;  %v1845_v60 = vpop.f32.mrf.mxu2 }
 0x525   :  { %v3379_v28 = vpop.f32.mrf.mxu0 }
 0x526   :  { %v1868_v32 = vpack.c.bf16 %v3379_v28, %v3377_v14  ;;  %v1672_v58 = vmul.f32 %v3379_v28, %v3379_v28  ;;  %v2470_v28 = vld [vmem:[%s3690_s19] ss:$0 sm:$0xff] }
 0x52d   :  { %v3383_v48 = vpop.f32.mrf.mxu0 }
 0x52e   :  { %v1673_v30 = vmul.f32 %v3383_v48, %v3383_v48 }
 0x535   :  { %v3385_v44 = vpop.f32.mrf.mxu0 }
 0x536   :  { %v1869_v45 = vpack.c.bf16 %v3385_v44, %v3383_v48 }
 0x53d   :  { %v3389_v56 = vpop.f32.mrf.mxu0 }
 0x53e   :  { %v1675_v52 = vmul.f32 %v3389_v56, %v3389_v56 }
 0x540   :  { %v1681_v12 = vadd.f32 %v1675_v52, %v1669_v50 }
 0x545   :  { %v3395_v41 = vpop.f32.mrf.mxu0 }
 0x546   :  { %v1870_v6 = vpack.c.bf16 %v3395_v41, %v3389_v56  ;;  %v1676_v0 = vmul.f32 %v3395_v41, %v3395_v41 }
 0x548   :  { %v1682_v26 = vadd.f32 %v1676_v0, %v1670_v19 }
 0x54d   :  { %v3399_v3 = vpop.f32.mrf.mxu0 }
 0x54e   :  { %v1677_v43 = vmul.f32 %v3399_v3, %v3399_v3 }
 0x550   :  { %v1683_v36 = vadd.f32 %v1677_v43, %v1671_v53 }
 0x555   :  { %v3401_v11 = vpop.f32.mrf.mxu0 }
 0x556   :  { %v1871_v18 = vpack.c.bf16 %v3401_v11, %v3399_v3  ;;  %v1678_v8 = vmul.f32 %v3401_v11, %v3401_v11 }
 0x558   :  { %v1684_v57 = vadd.f32 %v1678_v8, %v1672_v58 }
 0x55d   :  { %v3405_v4 = vpop.f32.mrf.mxu0 }
 0x55e   :  { %v1679_v38 = vmul.f32 %v3405_v4, %v3405_v4 }
 0x560   :  { %v1685_v50 = vadd.f32 %v1679_v38, %v1673_v30 }
 0x565   :  { %v3407_v10 = vpop.f32.mrf.mxu0 }
 0x566   :  { %v1872_v29 = vpack.c.bf16 %v3407_v10, %v3405_v4 }
 0x56d   :  { %v3415_v24 = vpop.f32.mrf.mxu0 }
 0x56e   :  { %v1687_v55 = vmul.f32 %v3415_v24, %v3415_v24 }
 0x570   :  { %v1693_v16 = vadd.f32 %v1687_v55, %v1681_v12 }
 0x572   :  { %v1699_v17 = vmax.f32 %v1693_v16, 1e-08 }
 0x574   :  { %2592 = vrsqrt.f32 %v1699_v17  ;;  %vm1712_vm3 = vcmp.eq.f32.partialorder %v1699_v17, inf  ;;  %vm1714_vm6 = vcmp.eq.f32.partialorder %v1699_v17, 0.0 }
 0x575   :  { %v3423_v23 = vpop.f32.mrf.mxu0 }
 0x576   :  { %v1688_v59 = vmul.f32 %v3423_v23, %v3423_v23  ;;  %v1873_v27 = vpack.c.bf16 %v3423_v23, %v3415_v24 }
 0x578   :  { %v1694_v9 = vadd.f32 %v1688_v59, %v1682_v26  ;;  %v1715_v26 = vand.u32 2147483648, %v1699_v17 }
 0x57a   :  { %v2593_v21 = vpop.eup %2592  ;;  %v1700_v46 = vmax.f32 %v1694_v9, 1e-08 }
 0x57b   :  { %v1706_v63 = vmul.f32 %v2593_v21, %v1699_v17 }
 0x57c   :  { %2594 = vrsqrt.f32 %v1700_v46  ;;  %vm1724_vm4 = vcmp.eq.f32.partialorder %v1700_v46, inf  ;;  %v1727_v59 = vand.u32 2147483648, %v1700_v46  ;;  %vm1726_vm7 = vcmp.eq.f32.partialorder %v1700_v46, 0.0 }
 0x57d   :  { %v3433_v47 = vpop.f32.mrf.mxu0  ;;  %v1707_v35 = vmul.f32 %v2593_v21, %v1706_v63 }
 0x57e   :  { %v1689_v51 = vmul.f32 %v3433_v47, %v3433_v47 }
 0x57f   :  { %v1708_v7 = vmul.f32 0.5, %v1707_v35 }
 0x580   :  { %v1695_v15 = vadd.f32 %v1689_v51, %v1683_v36 }
 0x581   :  { %v1709_v31 = vsub.f32 1.5, %v1708_v7  ;;  %v1680_v7 = vmul.f32 %v3407_v10, %v3407_v10 }
 0x582   :  { %v2595_v39 = vpop.eup %2594  ;;  %v3439_v13 = vmax.f32 %v1695_v15, 1e-08 }
 0x583   :  { %v1718_v22 = vmul.f32 %v2595_v39, %v1700_v46  ;;  %v1710_v49 = vmul.f32 %v2593_v21, %v1709_v31 }
 0x584   :  { %2596 = vrsqrt.f32 %v3439_v13  ;;  %vm1738_vm9 = vcmp.eq.f32.partialorder %v3439_v13, 0.0 }
 0x585   :  { %v3444_v25 = vpop.f32.mrf.mxu0  ;;  %v1719_v54 = vmul.f32 %v2595_v39, %v1718_v22  ;;  %v1711_v20 = vmul.f32 %v1710_v49, %v1699_v17 }
 0x586   :  { %v1690_v42 = vmul.f32 %v3444_v25, %v3444_v25  ;;  %v1874_v61 = vpack.c.bf16 %v3444_v25, %v3433_v47 }
 0x587   :  { %v1720_v62 = vmul.f32 0.5, %v1719_v54  ;;  %v1713_v55 = vsel %vm1712_vm3, %v1699_v17, %v1711_v20  ;;  %v1572_v17 = vld [vmem:[%s3689_s20] sm:$0x3] }
 0x588   :  { %v1696_v5 = vadd.f32 %v1690_v42, %v1684_v57  ;;  %v1716_v63 = vsel %vm1714_vm6, %v1715_v26, %v1713_v55  ;;  %v1904_v58 = vsel %vm921_vm2, %v1572_v17, 0  ;;  %vm1736_vm2 = vcmp.eq.f32.partialorder %v3439_v13, inf }
 0x589   :  { %v1721_v37 = vsub.f32 1.5, %v1720_v62  ;;  %1913 = vmatpush.bf16.msrb.mxu3 %v1904_v58  ;;  %v1739_v55 = vand.u32 2147483648, %v3439_v13 }
 0x58a   :  { %v2597_v1 = vpop.eup %2596  ;;  %v3452_v2 = vmax.f32 %v1696_v5, 1e-08 }
 0x58b   :  { %v1722_v34 = vmul.f32 %v2595_v39, %v1721_v37  ;;  %v1730_v52 = vmul.f32 %v2597_v1, %v3439_v13 }
 0x58c   :  { %2598 = vrsqrt.f32 %v3452_v2  ;;  %vm1748_vm8 = vcmp.eq.f32.partialorder %v3452_v2, inf  ;;  %vm1750_vm10 = vcmp.eq.f32.partialorder %v3452_v2, 0.0 }
 0x58d   :  { %v3458_v12 = vpop.f32.mrf.mxu0  ;;  %v1723_v16 = vmul.f32 %v1722_v34, %v1700_v46  ;;  %v1731_v0 = vmul.f32 %v2597_v1, %v1730_v52 }
 0x58e   :  { %v1691_v19 = vmul.f32 %v3458_v12, %v3458_v12 }
 0x58f   :  { %v1725_v9 = vsel %vm1724_vm4, %v1700_v46, %v1723_v16  ;;  %v1732_v21 = vmul.f32 0.5, %v1731_v0  ;;  %v1674_v46 = vmul.f32 %v3385_v44, %v3385_v44  ;;  %v1751_v16 = vand.u32 2147483648, %v3452_v2  ;;  %v1848_v44 = vpop.f32.mrf.mxu2 }
 0x590   :  { %v1697_v43 = vadd.f32 %v1691_v19, %v1685_v50  ;;  %v1728_v53 = vsel %vm1726_vm7, %v1727_v59, %v1725_v9 }
 0x591   :  { %v1780_v35 = vpack.c.bf16 %v1728_v53, %v1716_v63  ;;  %v1733_v36 = vsub.f32 1.5, %v1732_v21  ;;  %v1686_v49 = vadd.f32 %v1680_v7, %v1674_v46 }
 0x592   :  { %v2599_v51 = vpop.eup %2598  ;;  %v1703_v15 = vmax.f32 %v1697_v43, 1e-08 }
 0x593   :  { %2407 = vmatmul.msk.bf16.vlgmr.msra.gmra.mxu3 %vm893_vm5, %v1780_v35  ;;  %v1742_v31 = vmul.f32 %v2599_v51, %v3452_v2  ;;  %v1734_v8 = vmul.f32 %v2597_v1, %v1733_v36 }
 0x594   :  { %2600 = vrsqrt.f32 %v1703_v15  ;;  %vm1760_vm11 = vcmp.eq.f32.partialorder %v1703_v15, inf  ;;  %v1763_v46 = vand.u32 2147483648, %v1703_v15  ;;  %vm1762_vm13 = vcmp.eq.f32.partialorder %v1703_v15, 0.0 }
 0x595   :  { %v3471_v39 = vpop.f32.mrf.mxu0  ;;  %v1743_v22 = vmul.f32 %v2599_v51, %v1742_v31  ;;  %v1735_v5 = vmul.f32 %v1734_v8, %v3439_v13 }
 0x596   :  { %v1692_v54 = vmul.f32 %v3471_v39, %v3471_v39  ;;  %v1875_v57 = vpack.c.bf16 %v3471_v39, %v3458_v12  ;;  %v3572_v39 = vld [vmem:[%s3692_s22] ss:$0 sm:$0xff]  ;;  %s2628_s22 = smov 16  }
 0x597   :  { %v1744_v42 = vmul.f32 0.5, %v1743_v22  ;;  %v1737_v34 = vsel %vm1736_vm2, %v3439_v13, %v1735_v5  ;;  %v1850_v3 = vpop.f32.mrf.mxu2 }
 0x598   :  { %v1698_v62 = vadd.f32 %v1692_v54, %v1686_v49  ;;  %v1740_v26 = vsel %vm1738_vm9, %v1739_v55, %v1737_v34 }
 0x599   :  { %v1745_v38 = vsub.f32 1.5, %v1744_v42 }
 0x59a   :  { %v2601_v20 = vpop.eup %2600  ;;  %v1704_v37 = vmax.f32 %v1698_v62, 1e-08 }
 0x59b   :  { %v1746_v30 = vmul.f32 %v2599_v51, %v1745_v38  ;;  %v1754_v1 = vmul.f32 %v2601_v20, %v1703_v15 }
 0x59c   :  { %2602 = vrsqrt.f32 %v1704_v37  ;;  %vm1772_vm12 = vcmp.eq.f32.partialorder %v1704_v37, inf  ;;  %vm1774_vm14 = vcmp.eq.f32.partialorder %v1704_v37, 0.0 }
 0x59d   :  { %v1747_v52 = vmul.f32 %v1746_v30, %v3452_v2  ;;  %v1755_v50 = vmul.f32 %v2601_v20, %v1754_v1 }
 0x59f   :  { %v1749_v0 = vsel %vm1748_vm8, %v3452_v2, %v1747_v52  ;;  %v1756_v19 = vmul.f32 0.5, %v1755_v50  ;;  %v1775_v2 = vand.u32 2147483648, %v1704_v37  ;;  %v1853_v24 = vpop.f32.mrf.mxu2 }
 0x5a0   :  { %v1752_v59 = vsel %vm1750_vm10, %v1751_v16, %v1749_v0 }
 0x5a1   :  { %v1781_v9 = vpack.c.bf16 %v1752_v59, %v1740_v26  ;;  %v1757_v21 = vsub.f32 1.5, %v1756_v19 }
 0x5a2   :  { %v2603_v43 = vpop.eup %2602 }
 0x5a3   :  { %2408 = vmatmul.msk.bf16.gmra.mxu3 %vm893_vm5, %v1781_v9  ;;  %v1766_v63 = vmul.f32 %v2603_v43, %v1704_v37  ;;  %v1758_v53 = vmul.f32 %v2601_v20, %v1757_v21 }
 0x5a5   :  { %v1767_v35 = vmul.f32 %v2603_v43, %v1766_v63  ;;  %v1759_v51 = vmul.f32 %v1758_v53, %v1703_v15 }
 0x5a7   :  { %v1768_v36 = vmul.f32 0.5, %v1767_v35  ;;  %v1761_v13 = vsel %vm1760_vm11, %v1703_v15, %v1759_v51  ;;  %v2460_v15 = vld [vmem:[%s3691_s21] sm:$0xff]  ;;  %v1855_v42 = vpop.f32.mrf.mxu2 }
 0x5a8   :  { %v1764_v22 = vsel %vm1762_vm13, %v1763_v46, %v1761_v13  ;;  %1988 = vmatpush.bf16.msra.mxu2 %v2460_v15 }
 0x5a9   :  { %v1769_v7 = vsub.f32 1.5, %v1768_v36 }
 0x5ab   :  { %v1770_v31 = vmul.f32 %v2603_v43, %v1769_v7 }
 0x5ad   :  { %v1771_v17 = vmul.f32 %v1770_v31, %v1704_v37 }
 0x5af   :  { %v1773_v8 = vsel %vm1772_vm12, %v1704_v37, %v1771_v17 }
 0x5b0   :  { %v1776_v58 = vsel %vm1774_vm14, %v1775_v2, %v1773_v8 }
 0x5b1   :  { %v1782_v49 = vpack.c.bf16 %v1776_v58, %v1764_v22 }
 0x5b3   :  { %2409 = vmatmul.msk.bf16.gmra.mxu3 %vm893_vm5, %v1782_v49 }
 0x5c3   :  { %2417 = vmatmul.msk.bf16.vlgmr.msrb.gmra.mxu3 %vm893_vm5, %v1867_v40 }
 0x5d3   :  { %2418 = vmatmul.msk.bf16.gmra.mxu3 %vm893_vm5, %v1868_v32 }
 0x5e3   :  { %2419 = vmatmul.msk.bf16.gmra.mxu3 %vm893_vm5, %v1869_v45 }
 0x5f3   :  { %2420 = vmatmul.msk.bf16.gmra.mxu3 %vm893_vm5, %v1870_v6 }
 0x603   :  { %2421 = vmatmul.msk.bf16.gmra.mxu3 %vm893_vm5, %v1871_v18 }
 0x613   :  { %2422 = vmatmul.msk.bf16.gmra.mxu3 %vm893_vm5, %v1872_v29 }
 0x616   :  { %v1804_v40 = vpop.f32.mrf.mxu3 }
 0x617   :  { %v1844_v14 = vadd.f32 %v1843_v33, %v1804_v40 }
 0x619   :  { %v3520_v45 = vadd.f32 %v2470_v28, %v1844_v14 }
 0x61e   :  { %v1806_v32 = vpop.f32.mrf.mxu3 }
 0x61f   :  { %v1846_v48 = vadd.f32 %v1845_v60, %v1806_v32 }
 0x621   :  { %v3522_v56 = vadd.f32 %v2470_v28, %v1846_v48 }
 0x623   :  { %v1960_v41 = vpack.c.bf16 %v3522_v56, %v3520_v45  ;;  %2423 = vmatmul.msk.bf16.gmra.mxu3 %vm893_vm5, %v1873_v27 }
 0x625   :  { %2430 = vmatmul.msk.bf16.vlgmr.msra.gmra.mxu2 %vm589_vm0, %v1960_v41 }
 0x626   :  { %v1809_v6 = vpop.f32.mrf.mxu3 }
 0x627   :  { %v1849_v11 = vadd.f32 %v1848_v44, %v1809_v6 }
 0x629   :  { %v3531_v10 = vadd.f32 %v2470_v28, %v1849_v11 }
 0x62e   :  { %v1811_v18 = vpop.f32.mrf.mxu3 }
 0x62f   :  { %v1851_v4 = vadd.f32 %v1850_v3, %v1811_v18 }
 0x631   :  { %v3533_v29 = vadd.f32 %v2470_v28, %v1851_v4 }
 0x633   :  { %v1961_v54 = vpack.c.bf16 %v3533_v29, %v3531_v10  ;;  %2424 = vmatmul.msk.bf16.gmra.mxu3 %vm893_vm5, %v1874_v61 }
 0x635   :  { %2431 = vmatmul.msk.bf16.gmra.mxu2 %vm589_vm0, %v1961_v54 }
 0x636   :  { %v1814_v23 = vpop.f32.mrf.mxu3 }
 0x637   :  { %v1854_v27 = vadd.f32 %v1853_v24, %v1814_v23 }
 0x639   :  { %v3542_v38 = vadd.f32 %v2470_v28, %v1854_v27 }
 0x63e   :  { %v1816_v62 = vpop.f32.mrf.mxu3 }
 0x63f   :  { %v1856_v5 = vadd.f32 %v1855_v42, %v1816_v62 }
 0x641   :  { %v3544_v20 = vadd.f32 %v2470_v28, %v1856_v5 }
 0x643   :  { %v1962_v37 = vpack.c.bf16 %v3544_v20, %v3542_v38  ;;  %2425 = vmatmul.msk.bf16.gmra.mxu3 %vm893_vm5, %v1875_v57 }
 0x645   :  { %2432 = vmatmul.msk.bf16.gmra.mxu2 %vm589_vm0, %v1962_v37 }
 0x646   :  { %v1915_v47 = vpop.f32.mrf.mxu3 }
 0x64e   :  { %v3553_v25 = vpop.f32.mrf.mxu3 }
 0x656   :  { %v3555_v61 = vpop.f32.mrf.mxu3 }
 0x65e   :  { %v3557_v30 = vpop.f32.mrf.mxu3 }
 0x666   :  { %v3559_v1 = vpop.f32.mrf.mxu3 }
 0x66e   :  { %v3561_v34 = vpop.f32.mrf.mxu3 }
 0x676   :  { %v3563_v52 = vpop.f32.mrf.mxu3 }
 0x67e   :  { %v3565_v50 = vpop.f32.mrf.mxu3 }
 0x686   :  { %v3567_v12 = vpop.f32.mrf.mxu3 }
 0x68e   :  { %v3575_v0 = vpop.f32.mrf.mxu3 }
 0x696   :  { %v3578_v43 = vpop.f32.mrf.mxu3 }
 0x69e   :  { %v3581_v17 = vpop.f32.mrf.mxu3 }
 0x6a6   :  { %v1945_v54 = vpop.f32.mrf.mxu3 }
 0x6a8   :  { %v1990_v57 = vpop.f32.mrf.mxu2 }
 0x6a9   :  { %v1991_v55 = vadd.f32 %v3572_v39, %v1990_v57 }
 0x6ab   :  { %v2433_v16 = vmul.f32 -1.442695, %v1991_v55 }
 0x6ad   :  { %2604 = vpow2.f32 %v2433_v16 }
 0x6b0   :  { %v1992_v19 = vpop.f32.mrf.mxu2 }
 0x6b1   :  { %v1993_v26 = vadd.f32 %v3572_v39, %v1992_v19 }
 0x6b3   :  { %v2605_v59 = vpop.eup %2604  ;;  %v2434_v9 = vmul.f32 -1.442695, %v1993_v26 }
 0x6b4   :  { %v2023_v21 = vadd.f32 1.0, %v2605_v59 }
 0x6b5   :  { %2606 = vpow2.f32 %v2434_v9 }
 0x6b6   :  { %2608 = vrcp.f32 %v2023_v21  ;;  %v2040_v2 = vand.u32 2147483648, %v2023_v21  ;;  %v2038_v58 = vand.u32 2147483647, %v2023_v21  ;;  %vm2034_vm15 = vweird.f32 %v2023_v21 }
 0x6b8   :  { %v1995_v63 = vpop.f32.mrf.mxu2  ;;  %v2041_v14 = vor.u32 1.1754944e-38, %v2040_v2  ;;  %vm2039_vm3 = vcmp.eq.f32.partialorder %v2038_v58, 8.507059e+37 }
 0x6b9   :  { %v1996_v53 = vadd.f32 %v3572_v39, %v1995_v63 }
 0x6bb   :  { %v2607_v35 = vpop.eup %2606  ;;  %v2435_v36 = vmul.f32 -1.442695, %v1996_v53 }
 0x6bc   :  { %v2609_v51 = vpop.eup %2608  ;;  %v2024_v7 = vadd.f32 1.0, %v2607_v35 }
 0x6bd   :  { %2610 = vpow2.f32 %v2435_v36  ;;  %v2030_v31 = vmul.f32 %v2609_v51, %v2023_v21  ;;  %vm2035_vm5 = vweird.f32 %v2609_v51 }
 0x6be   :  { %2612 = vrcp.f32 %v2024_v7  ;;  %vm2036_vm1 = vmor %vm2034_vm15, %vm2035_vm5  ;;  %v2055_v3 = vand.u32 2147483648, %v2024_v7  ;;  %v2053_v4 = vand.u32 2147483647, %v2024_v7  ;;  %vm2049_vm6 = vweird.f32 %v2024_v7 }
 0x6bf   :  { %v2031_v13 = vsub.f32 1.0, %v2030_v31 }
 0x6c0   :  { %v1997_v46 = vpop.f32.mrf.mxu2  ;;  %v2056_v5 = vor.u32 1.1754944e-38, %v2055_v3  ;;  %vm2054_vm2 = vcmp.eq.f32.partialorder %v2053_v4, 8.507059e+37 }
 0x6c1   :  { %v1998_v8 = vadd.f32 %v3572_v39, %v1997_v46  ;;  %v2032_v22 = vmul.f32 %v2609_v51, %v2031_v13 }
 0x6c3   :  { %v2611_v49 = vpop.eup %2610  ;;  %v2436_v15 = vmul.f32 -1.442695, %v1998_v8  ;;  %v2033_v33 = vadd.f32 %v2609_v51, %v2032_v22 }
 0x6c4   :  { %v2613_v60 = vpop.eup %2612  ;;  %v2025_v40 = vadd.f32 1.0, %v2611_v49 }
 0x6c5   :  { %2614 = vpow2.f32 %v2436_v15  ;;  %v2037_v28 = vsel %vm2036_vm1, %v2609_v51, %v2033_v33  ;;  %v2045_v32 = vmul.f32 %v2613_v60, %v2024_v7  ;;  %vm2050_vm4 = vweird.f32 %v2613_v60  ;;  %v1947_v51 = vpop.f32.mrf.mxu3 }
 0x6c6   :  { %2616 = vrcp.f32 %v2025_v40  ;;  %v2042_v48 = vsel %vm2039_vm3, %v2041_v14, %v2037_v28  ;;  %vm2051_vm7 = vmor %vm2049_vm6, %vm2050_vm4  ;;  %v2070_v59 = vand.u32 2147483648, %v2025_v40  ;;  %v2068_v63 = vand.u32 2147483647, %v2025_v40 }
 0x6c7   :  { %v2119_v44 = vmul.f32 %v2042_v48, %v1915_v47  ;;  %v2046_v41 = vsub.f32 1.0, %v2045_v32  ;;  %v2125_v55 = vmul.f32 %v2042_v48, %v3563_v52  ;;  %vm2064_vm9 = vweird.f32 %v2025_v40 }
 0x6c8   :  { %v2000_v6 = vpop.f32.mrf.mxu2  ;;  %v2071_v7 = vor.u32 1.1754944e-38, %v2070_v59  ;;  %vm2069_vm11 = vcmp.eq.f32.partialorder %v2068_v63, 8.507059e+37  ;;  %v2131_v8 = vmul.f32 %v2042_v48, %v1945_v54 }
 0x6c9   :  { %v2001_v11 = vadd.f32 %v3572_v39, %v2000_v6  ;;  %2143 = vrot.lane.b32.xlu0 %v2119_v44, %s2628_s22  ;;  %v2047_v18 = vmul.f32 %v2613_v60, %v2046_v41 }
 0x6cb   :  { %v2615_v24 = vpop.eup %2614  ;;  %v2437_v23 = vmul.f32 -1.442695, %v2001_v11  ;;  %v2048_v27 = vadd.f32 %v2613_v60, %v2047_v18 }
 0x6cc   :  { %v2617_v42 = vpop.eup %2616  ;;  %v3586_v62 = vadd.f32 1.0, %v2615_v24 }
 0x6cd   :  { %2618 = vpow2.f32 %v2437_v23  ;;  %v2052_v37 = vsel %vm2051_vm7, %v2613_v60, %v2048_v27  ;;  %v2060_v47 = vmul.f32 %v2617_v42, %v2025_v40  ;;  %vm2065_vm8 = vweird.f32 %v2617_v42  ;;  %v1950_v14 = vpop.f32.mrf.mxu3 }
 0x6ce   :  { %2620 = vrcp.f32 %v3586_v62  ;;  %v2057_v57 = vsel %vm2054_vm2, %v2056_v5, %v2052_v37  ;;  %vm2066_vm10 = vmor %vm2064_vm9, %vm2065_vm8  ;;  %vm2079_vm13 = vweird.f32 %v3586_v62  ;;  %v2083_v44 = vand.u32 2147483647, %v3586_v62 }
 0x6cf   :  { %v2126_v16 = vmul.f32 %v2057_v57, %v3565_v50  ;;  %v2061_v19 = vsub.f32 1.0, %v2060_v47  ;;  %v2132_v22 = vmul.f32 %v2057_v57, %v1947_v51  ;;  %v2120_v32 = vmul.f32 %v2057_v57, %v3553_v25 }
 0x6d0   :  { %v2002_v26 = vpop.f32.mrf.mxu2  ;;  %vm2084_vm15 = vcmp.eq.f32.partialorder %v2083_v44, 8.507059e+37  ;;  %vm2215_vm9 = vcmask 162816  }
 0x6d1   :  { %v2003_v9 = vadd.f32 %v3572_v39, %v2002_v26  ;;  %2167 = vrot.lane.b32.xlu0 %v2125_v55, %s2629_s28  ;;  %2169 = vrot.lane.b32.xlu1 %v2126_v16, %s2629_s28  ;;  %v2062_v21 = vmul.f32 %v2617_v42, %v2061_v19 }
 0x6d3   :  { %v2619_v53 = vpop.eup %2618  ;;  %v2438_v35 = vmul.f32 -1.442695, %v2003_v9  ;;  %v2063_v36 = vadd.f32 %v2617_v42, %v2062_v21 }
 0x6d4   :  { %v2621_v52 = vpop.eup %2620  ;;  %v2027_v50 = vadd.f32 1.0, %v2619_v53 }
 0x6d5   :  { %v2075_v31 = vmul.f32 %v2621_v52, %v3586_v62  ;;  %2622 = vpow2.f32 %v2438_v35  ;;  %v2067_v39 = vsel %vm2066_vm10, %v2617_v42, %v2063_v36  ;;  %vm2080_vm12 = vweird.f32 %v2621_v52  ;;  %v1952_v19 = vpop.f32.mrf.mxu3 }
 0x6d6   :  { %2624 = vrcp.f32 %v2027_v50  ;;  %v2072_v13 = vsel %vm2069_vm11, %v2071_v7, %v2067_v39  ;;  %vm2081_vm14 = vmor %vm2079_vm13, %vm2080_vm12  ;;  %v2100_v6 = vand.u32 2147483648, %v2027_v50  ;;  %v2098_v18 = vand.u32 2147483647, %v2027_v50 }
 0x6d7   :  { %v2076_v46 = vsub.f32 1.0, %v2075_v31  ;;  %v2127_v2 = vmul.f32 %v2072_v13, %v3567_v12  ;;  %v2085_v12 = vand.u32 2147483648, %v3586_v62  ;;  %v2133_v48 = vmul.f32 %v2072_v13, %v1950_v14 }
 0x6d8   :  { %v2121_v41 = vmul.f32 %v2072_v13, %v3555_v61  ;;  %vm2094_vm1 = vweird.f32 %v2027_v50  ;;  %v2101_v61 = vor.u32 1.1754944e-38, %v2100_v6  ;;  %vm2099_vm4 = vcmp.eq.f32.partialorder %v2098_v18, 8.507059e+37 }
 0x6d9   :  { %2171 = vrot.lane.b32.xlu2 %v2127_v2, %s2629_s28  ;;  %2191 = vrot.lane.b32.xlu0 %v2131_v8, %s2630_s10  ;;  %v2077_v58 = vmul.f32 %v2621_v52, %v2076_v46  ;;  %v2086_v4 = vor.u32 1.1754944e-38, %v2085_v12  ;;  %vm2222_vm10 = vcmask 195584   ;;  %vm2229_vm11 = vcmask 228352  }
 0x6da   :  { %2193 = vrot.lane.b32.xlu1 %v2132_v22, %s2630_s10 }
 0x6db   :  { %v2623_v49 = vpop.eup %2622  ;;  %v2078_v40 = vadd.f32 %v2621_v52, %v2077_v58 }
 0x6dc   :  { %v2625_v15 = vpop.eup %2624  ;;  %v2028_v33 = vadd.f32 1.0, %v2623_v49 }
 0x6dd   :  { %v2090_v60 = vmul.f32 %v2625_v15, %v2027_v50  ;;  %v2082_v3 = vsel %vm2081_vm14, %v2621_v52, %v2078_v40  ;;  %vm2095_vm5 = vweird.f32 %v2625_v15  ;;  %v1955_v63 = vpop.f32.mrf.mxu3 }
 0x6de   :  { %2626 = vrcp.f32 %v2028_v33  ;;  %v2087_v24 = vsel %vm2084_vm15, %v2086_v4, %v2082_v3  ;;  %vm2096_vm3 = vmor %vm2094_vm1, %vm2095_vm5  ;;  %v2115_v57 = vand.u32 2147483648, %v2028_v33  ;;  %v2113_v16 = vand.u32 2147483647, %v2028_v33 }
 0x6df   :  { %v2091_v28 = vsub.f32 1.0, %v2090_v60  ;;  %v2128_v5 = vmul.f32 %v2087_v24, %v3575_v0  ;;  %v2122_v47 = vmul.f32 %v2087_v24, %v3557_v30  ;;  %vm2109_vm7 = vweird.f32 %v2028_v33 }
 0x6e0   :  { %v2116_v59 = vor.u32 1.1754944e-38, %v2115_v57  ;;  %vm2114_vm8 = vcmp.eq.f32.partialorder %v2113_v16, 8.507059e+37  ;;  %v2134_v9 = vmul.f32 %v2087_v24, %v1952_v19 }
 0x6e1   :  { %2145 = vrot.lane.b32.xlu0 %v2120_v32, %s2628_s22  ;;  %2195 = vrot.lane.b32.xlu2 %v2133_v48, %s2630_s10  ;;  %v2092_v11 = vmul.f32 %v2625_v15, %v2091_v28 }
 0x6e2   :  { %2147 = vrot.lane.b32.xlu1 %v2121_v41, %s2628_s22 }
 0x6e3   :  { %v2093_v25 = vadd.f32 %v2625_v15, %v2092_v11 }
 0x6e4   :  { %v2627_v54 = vpop.eup %2626 }
 0x6e5   :  { %v2105_v23 = vmul.f32 %v2627_v54, %v2028_v33  ;;  %v2097_v27 = vsel %vm2096_vm3, %v2625_v15, %v2093_v25  ;;  %vm2110_vm6 = vweird.f32 %v2627_v54  ;;  %v1957_v36 = vpop.f32.mrf.mxu3 }
 0x6e6   :  { %v2102_v42 = vsel %vm2099_vm4, %v2101_v61, %v2097_v27  ;;  %vm2111_vm2 = vmor %vm2109_vm7, %vm2110_vm6 }
 0x6e7   :  { %v2106_v62 = vsub.f32 1.0, %v2105_v23  ;;  %v2123_v37 = vmul.f32 %v2102_v42, %v3559_v1  ;;  %v2129_v21 = vmul.f32 %v2102_v42, %v3578_v43  ;;  %v2135_v35 = vmul.f32 %v2102_v42, %v1955_v63 }
 0x6e9   :  { %2173 = vrot.lane.b32.xlu0 %v2128_v5, %s2629_s28  ;;  %2151 = vrot.lane.b32.xlu2 %v2123_v37, %s2628_s22  ;;  %v2107_v55 = vmul.f32 %v2627_v54, %v2106_v62 }
 0x6ea   :  { %2149 = vrot.lane.b32.xlu1 %v2122_v47, %s2628_s22 }
 0x6eb   :  { %v2108_v26 = vadd.f32 %v2627_v54, %v2107_v55 }
 0x6ed   :  { %v2112_v0 = vsel %vm2111_vm2, %v2627_v54, %v2108_v26 }
 0x6ee   :  { %v2117_v1 = vsel %vm2114_vm8, %v2116_v59, %v2112_v0 }
 0x6ef   :  { %v2124_v30 = vmul.f32 %v2117_v1, %v3561_v34  ;;  %v2130_v53 = vmul.f32 %v2117_v1, %v3581_v17  ;;  %v2136_v52 = vmul.f32 %v2117_v1, %v1957_v36 }
 0x6f1   :  { %2197 = vrot.lane.b32.xlu0 %v2134_v9, %s2630_s10  ;;  %2153 = vrot.lane.b32.xlu2 %v2124_v30, %s2628_s22 }
 0x6f2   :  { %2175 = vrot.lane.b32.xlu1 %v2129_v21, %s2629_s28 }
 0x6f9   :  { %2177 = vrot.lane.b32.xlu2 %v2130_v53, %s2629_s28 }
 0x6fa   :  { %2199 = vrot.lane.b32.xlu1 %v2135_v35, %s2630_s10 }
 0x701   :  { %2201 = vrot.lane.b32.xlu2 %v2136_v52, %s2630_s10 }
 0x733   :  { %v2172_v34 = vpop.permute.xlu2 %2171 }
 0x73b   :  { %v2144_v43 = vpop.permute.xlu0 %2143  ;;  %v2196_v51 = vpop.permute.xlu2 %2195 }
 0x73c   :  { %v2209_v17 = vsel %vm589_vm0, %v3520_v45, %v2144_v43 }
 0x743   :  { %v2168_v50 = vpop.permute.xlu0 %2167  ;;  %v2170_v7 = vpop.permute.xlu1 %2169 }
 0x744   :  { %v2152_v31 = vpop.permute.xlu2 %2151  ;;  %v2216_v39 = vsel %vm2215_vm9, %v2209_v17, %v2168_v50 }
 0x745   :  { %v2213_v11 = vsel %vm589_vm0, %v3542_v38, %v2152_v31 }
 0x74b   :  { %v2192_v13 = vpop.permute.xlu0 %2191 }
 0x74c   :  { %v2223_v46 = vsel %vm2222_vm10, %v2216_v39, %v2192_v13  ;;  %v2194_v2 = vpop.permute.xlu1 %2193  ;;  %v2154_v8 = vpop.permute.xlu2 %2153 }
 0x74d   :  { %2230 = vst.msk [vmem:[%s3693_s23] sm:$0xff] %vm2229_vm11, %v2223_v46 }
 0x753   :  { %v2146_v22 = vpop.permute.xlu0 %2145 }
 0x754   :  { %v2210_v58 = vsel %vm589_vm0, %v3522_v56, %v2146_v22  ;;  %v2148_v49 = vpop.permute.xlu1 %2147  ;;  %v2178_v15 = vpop.permute.xlu2 %2177  ;;  %v2214_v56 = vsel %vm589_vm0, %v3544_v20, %v2154_v8 }
 0x755   :  { %v2217_v45 = vsel %vm2215_vm9, %v2210_v58, %v2170_v7  ;;  %v2211_v33 = vsel %vm589_vm0, %v3531_v10, %v2148_v49  ;;  %v2221_v12 = vsel %vm2215_vm9, %v2214_v56, %v2178_v15 }
 0x756   :  { %v2224_v60 = vsel %vm2222_vm10, %v2217_v45, %v2194_v2  ;;  %v2218_v40 = vsel %vm2215_vm9, %v2211_v33, %v2172_v34 }
 0x757   :  { %2231 = vst.msk [vmem:[%s3693_s23 + $0x8] sm:$0xff] %vm2229_vm11, %v2224_v60  ;;  %v2225_v14 = vsel %vm2222_vm10, %v2218_v40, %v2196_v51 }
 0x758   :  { %2232 = vst.msk [vmem:[%s3693_s23 + $0x10] sm:$0xff] %vm2229_vm11, %v2225_v14 }
 0x75b   :  { %v2174_v10 = vpop.permute.xlu0 %2173 }
 0x75c   :  { %v2150_v28 = vpop.permute.xlu1 %2149  ;;  %v2202_v32 = vpop.permute.xlu2 %2201 }
 0x75d   :  { %v2228_v48 = vsel %vm2222_vm10, %v2221_v12, %v2202_v32  ;;  %v2212_v44 = vsel %vm589_vm0, %v3533_v29, %v2150_v28 }
 0x75e   :  { %2235 = vst.msk [vmem:[%s3693_s23 + $0x28] sm:$0xff] %vm2229_vm11, %v2228_v48  ;;  %v2219_v41 = vsel %vm2215_vm9, %v2212_v44, %v2174_v10 }
 0x763   :  { %v2198_v6 = vpop.permute.xlu0 %2197 }
 0x764   :  { %v2226_v20 = vsel %vm2222_vm10, %v2219_v41, %v2198_v6  ;;  %v2176_v3 = vpop.permute.xlu1 %2175 }
 0x765   :  { %2233 = vst.msk [vmem:[%s3693_s23 + $0x18] sm:$0xff] %vm2229_vm11, %v2226_v20  ;;  %v2220_v18 = vsel %vm2215_vm9, %v2213_v11, %v2176_v3 }
 0x76c   :  { %v2200_v4 = vpop.permute.xlu1 %2199 }
 0x76d   :  { %v2227_v25 = vsel %vm2222_vm10, %v2220_v18, %v2200_v4 }
 0x76e   :  { %2234 = vst.msk [vmem:[%s3693_s23 + $0x20] sm:$0xff] %vm2229_vm11, %v2227_v25 }

</bundles_post_ra>
